<compile_context>
chip_gen: v7x
topology: tpu7x:2x2x1
jax: 0.10.0
libtpu: 0.0.40
codegen_flags: <defaults>
</compile_context>

<pallas_src>
import jax
import jax.numpy as jnp
from jax import lax
from jax.experimental import pallas as pl
from jax.experimental.pallas import tpu as pltpu

_LANE = 128


def _shift_cols_right(a):
    """out[:, c, :] = a[:, c-1, :]; column 0 becomes zero (dw=0 'left' tap)."""
    zero = jnp.zeros_like(a[:, :1, :])
    return jnp.concatenate([zero, a[:, :-1, :]], axis=1)


def _shift_cols_left(a):
    """out[:, c, :] = a[:, c+1, :]; last column zero (dw=2 'right' tap)."""
    zero = jnp.zeros_like(a[:, :1, :])
    return jnp.concatenate([a[:, 1:, :], zero], axis=1)


def residual_block_kernel(x_ref, w1_ref, w2_ref, b1_ref, b2_ref, out_ref,
                          x_l_ref, x_c_ref, x_r_ref,
                          h_l_ref, h_c_ref, h_r_ref, patch_ref):
    # x_ref:    (H, W, Cp)        one batch element (channel-padded), f32/bf16
    # w1_ref:   (9*Cp, Cp)  bf16  conv1 im2col weights (BN1 scale folded in)
    # w2_ref:   (9*Cp, Cp)  bf16  conv2 im2col weights (BN2 scale folded in)
    # b1_ref:   (1, Cp)     f32   folded conv1+BN1 bias
    # b2_ref:   (1, Cp)     f32   folded conv2+BN2 bias
    # out_ref:  (H, W, Cp)        same dtype as x
    # x_{l,c,r}_ref: (H+2, W, Cp) bf16  conv1 input, column-shifted (dw=0/1/2)
    # h_{l,c,r}_ref: (H+2, W, Cp) bf16  conv2 input, column-shifted (dw=0/1/2)
    # patch_ref:(TH, W, 9*Cp) bf16  per-strip im2col patches
    H, W, Cp = x_ref.shape
    TH = patch_ref.shape[0]
    NS = H // TH

    # Zero only the 1-row top/bottom halo of every shifted buffer (full-width,
    # lane-dense, aligned stores).  Re-done every grid step: scratch is
    # per-TensorCore under megacore "parallel" batch sharding, so guarding
    # with program_id == 0 would leave core-1's scratch uninitialized.
    zrow = jnp.zeros((1, W, Cp), jnp.bfloat16)
    for ref in (x_l_ref, x_c_ref, x_r_ref, h_l_ref, h_c_ref, h_r_ref):
        ref[0:1, :, :] = zrow
        ref[H + 1:H + 2, :, :] = zrow

    # Build the three dw-pre-shifted copies of the conv1 input once per image
    # (column shift happens in-register; stores are full-width & aligned).
    xb = x_ref[...].astype(jnp.bfloat16)
    x_c_ref[1:H + 1, :, :] = xb
    x_l_ref[1:H + 1, :, :] = _shift_cols_right(xb)
    x_r_ref[1:H + 1, :, :] = _shift_cols_left(xb)

    b1 = b1_ref[...]            # (1, Cp) f32
    b2 = b2_ref[...]

    def conv_strip(sh_l, sh_c, sh_r, w_ref, b_row, r0):
        # im2col for output rows [r0, r0+TH): 9 pure leading-dim (dh) slices
        # of the pre-shifted buffers; destination lane offsets are multiples
        # of 128 -> unmasked full-width stores.
        for dw, ref in ((0, sh_l), (1, sh_c), (2, sh_r)):
            for dh in range(3):
                tap = dh * 3 + dw
                patch_ref[:, :, tap * Cp:(tap + 1) * Cp] = (
                    ref[pl.ds(r0 + dh, TH), :, :])
        p = patch_ref[...].reshape(TH * W, 9 * Cp)
        # One MXU matmul per strip: M = TH*W (~256), K = 9*Cp, N = Cp.
        acc = jnp.dot(p, w_ref[...], preferred_element_type=jnp.float32)
        return acc + b_row                                   # (TH*W, Cp) f32

    # ---- conv1 + BN1 + ReLU  ->  dw-pre-shifted conv2 input buffers.
    def body1(s, carry):
        r0 = pl.multiple_of(s * TH, TH)
        out1 = jnp.maximum(
            conv_strip(x_l_ref, x_c_ref, x_r_ref, w1_ref, b1, r0), 0.0)
        ob = out1.reshape(TH, W, Cp).astype(jnp.bfloat16)
        h_c_ref[pl.ds(1 + r0, TH), :, :] = ob
        h_l_ref[pl.ds(1 + r0, TH), :, :] = _shift_cols_right(ob)
        h_r_ref[pl.ds(1 + r0, TH), :, :] = _shift_cols_left(ob)
        return carry

    lax.fori_loop(0, NS, body1, 0)

    # ---- conv2 + BN2 + residual (full-precision add) + ReLU  ->  out.
    def body2(s, carry):
        r0 = pl.multiple_of(s * TH, TH)
        acc = conv_strip(h_l_ref, h_c_ref, h_r_ref, w2_ref, b2, r0)
        res = x_ref[pl.ds(r0, TH), :, :].astype(jnp.float32).reshape(TH * W, Cp)
        y = jnp.maximum(acc + res, 0.0)
        out_ref[pl.ds(r0, TH), :, :] = y.reshape(TH, W, Cp).astype(out_ref.dtype)
        return carry

    lax.fori_loop(0, NS, body2, 0)


def _round_up(v, m):
    return (v + m - 1) // m * m


def _strip_height(H, W):
    """Largest divisor of H with TH*W <= 256.

    TH*W is the matmul M dim: 256 fills the 256x256 MXU rows on v6e/v7x and
    caps the f32 accumulator at 128 KiB (32 vregs), regardless of H % 8.
    """
    best = 1
    for d in range(1, H + 1):
        if H % d == 0 and d * W <= 256:
            best = d
    return best


def fold_conv_bn(w_oihw, conv_bias, gamma, beta, mean, var, eps=1e-5):
    """Fold eval-mode BN (and the conv bias) into the conv weight/bias.

    Returns (w_hwio_bf16_scaled, bias_f32).
    """
    scale = gamma / jnp.sqrt(var + eps)                      # (Cout,)
    bias = (conv_bias - mean) * scale + beta                 # (Cout,)
    w_hwio = jnp.transpose(w_oihw, (2, 3, 1, 0)) * scale[None, None, None, :]
    # TODO(synk): optional per-channel fp8 weight quantization for v7x.
    return w_hwio.astype(jnp.bfloat16), bias.astype(jnp.float32)


def _pack_taps(w_hwio_bf16, cp):
    """(3,3,Cin,Cout) bf16 -> channel-padded (9*cp, cp) im2col weight."""
    kh, kw, cin, cout = w_hwio_bf16.shape
    w = jnp.zeros((kh, kw, cp, cp), jnp.bfloat16)
    w = w.at[:, :, :cin, :cout].set(w_hwio_bf16)
    return w.reshape(kh * kw * cp, cp)


def residual_block(x_nhwc, w1_hwio, bias1, w2_hwio, bias2):
    """x: (N,H,W,C) f32 or bf16; w*: (3,3,C,C) bf16 (BN folded); bias*: (C,) f32."""
    N, H, W, C = x_nhwc.shape
    assert w1_hwio.shape[2] == C and w1_hwio.shape[3] == C and \
        w2_hwio.shape[2] == C and w2_hwio.shape[3] == C, (
            "kernel supports in_channels == out_channels, stride=1, "
            "downsample=None only")

    cp = max(_LANE, _round_up(C, _LANE))          # lane-dense channel padding
    th = _strip_height(H, W)

    # TODO(synk): when C % 128 != 0 this pad/slice costs an extra HBM copy and
    #             inflates kernel HBM traffic by cp/C; for production use
    #             C % 128 == 0 (no-op here), or DMA unpadded blocks and zero
    #             the padded lanes in-kernel.
    xp = x_nhwc if cp == C else jnp.pad(
        x_nhwc, ((0, 0), (0, 0), (0, 0), (0, cp - C)))
    w1p = _pack_taps(w1_hwio, cp)
    w2p = _pack_taps(w2_hwio, cp)
    b1p = jnp.pad(bias1, (0, cp - C)).reshape(1, cp)
    b2p = jnp.pad(bias2, (0, cp - C)).reshape(1, cp)

    def const2d(shape):
        # Constant operands: index_map never changes, so single-buffer them
        # (saves weight VMEM at real ResNet channel counts, esp. on v7x).
        return pl.BlockSpec(shape, lambda n: (0, 0),
                            pipeline_mode=pl.Buffered(1))

    out = pl.pallas_call(
        residual_block_kernel,
        out_shape=jax.ShapeDtypeStruct((N, H, W, cp), x_nhwc.dtype),
        grid_spec=pltpu.PrefetchScalarGridSpec(
            num_scalar_prefetch=0,
            grid=(N,),
            in_specs=[
                pl.BlockSpec((None, H, W, cp), lambda n: (n, 0, 0, 0)),
                const2d((9 * cp, cp)),
                const2d((9 * cp, cp)),
                const2d((1, cp)),
                const2d((1, cp)),
            ],
            out_specs=pl.BlockSpec((None, H, W, cp), lambda n: (n, 0, 0, 0)),
            scratch_shapes=(
                [pltpu.VMEM((H + 2, W, cp), jnp.bfloat16) for _ in range(6)]
                + [pltpu.VMEM((th, W, 9 * cp), jnp.bfloat16)]),
        ),
        compiler_params=pltpu.CompilerParams(
            dimension_semantics=("parallel",)),
    )(xp, w1p, w2p, b1p, b2p)
    return out if cp == C else out[..., :C]


def _reference(x_nhwc, w1_hwio, bias1, w2_hwio, bias2):
    """Pure-JAX reference with matching numerics (bf16 conv operands, f32 acc)."""
    dn = ('NHWC', 'HWIO', 'NHWC')
    h = lax.conv_general_dilated(x_nhwc.astype(jnp.bfloat16), w1_hwio, (1, 1),
                                 'SAME', dimension_numbers=dn,
                                 preferred_element_type=jnp.float32)
    h = jnp.maximum(h + bias1, 0.0)
    h = lax.conv_general_dilated(h.astype(jnp.bfloat16), w2_hwio, (1, 1),
                                 'SAME', dimension_numbers=dn,
                                 preferred_element_type=jnp.float32)
    h = h + bias2
    return jnp.maximum(h + x_nhwc, 0.0)


if __name__ == "__main__":
    # Small shapes consistent with the module: batch=2, channels=4, spatial=16.
    N, C, H, W = 2, 4, 16, 16   # in_channels == out_channels, stride=1
    key = jax.random.PRNGKey(0)
    (kx, kw1, kcb1, kw2, kcb2,
     kg1, kbe1, km1, kv1,
     kg2, kbe2, km2, kv2) = jax.random.split(key, 13)

    # PyTorch-layout input (NCHW) -> kernel layout (NHWC).
    x_nchw = jax.random.normal(kx, (N, C, H, W), jnp.float32)
    x_nhwc = jnp.transpose(x_nchw, (0, 2, 3, 1))

    # Conv weights / biases in PyTorch layout (Cout, Cin, 3, 3) + (Cout,).
    w1_oihw = 0.1 * jax.random.normal(kw1, (C, C, 3, 3), jnp.float32)
    cb1 = 0.1 * jax.random.normal(kcb1, (C,), jnp.float32)
    w2_oihw = 0.1 * jax.random.normal(kw2, (C, C, 3, 3), jnp.float32)
    cb2 = 0.1 * jax.random.normal(kcb2, (C,), jnp.float32)

    # BatchNorm parameters (inference / eval mode).
    g1 = 1.0 + 0.1 * jax.random.normal(kg1, (C,), jnp.float32)
    be1 = 0.1 * jax.random.normal(kbe1, (C,), jnp.float32)
    m1 = 0.1 * jax.random.normal(km1, (C,), jnp.float32)
    v1 = 1.0 + 0.1 * jax.random.uniform(kv1, (C,), jnp.float32)
    g2 = 1.0 + 0.1 * jax.random.normal(kg2, (C,), jnp.float32)
    be2 = 0.1 * jax.random.normal(kbe2, (C,), jnp.float32)
    m2 = 0.1 * jax.random.normal(km2, (C,), jnp.float32)
    v2 = 1.0 + 0.1 * jax.random.uniform(kv2, (C,), jnp.float32)

    w1f, bias1 = fold_conv_bn(w1_oihw, cb1, g1, be1, m1, v1)
    w2f, bias2 = fold_conv_bn(w2_oihw, cb2, g2, be2, m2, v2)

    # --- f32 activations (module default dtype) ---
    out_nhwc = jax.block_until_ready(
        residual_block(x_nhwc, w1f, bias1, w2f, bias2))
    assert out_nhwc.shape == (N, H, W, C) and out_nhwc.dtype == x_nhwc.dtype

    # Bit-comparable reference (same bf16-folded weights, f32 accumulation).
    ref_nhwc = _reference(x_nhwc, w1f, bias1, w2f, bias2)
    max_err = float(jnp.max(jnp.abs(out_nhwc - ref_nhwc)))
    assert jnp.allclose(out_nhwc, ref_nhwc, rtol=2e-3, atol=2e-3), max_err

    # Bound the error against a full-f32 ResidualBlock (unquantized weights),
    # so the bf16 / BN-fold error is not hidden by reusing folded weights.
    dn = ('NHWC', 'HWIO', 'NHWC')
    w1_f32 = (jnp.transpose(w1_oihw, (2, 3, 1, 0))
              * (g1 / jnp.sqrt(v1 + 1e-5))[None, None, None, :])
    w2_f32 = (jnp.transpose(w2_oihw, (2, 3, 1, 0))
              * (g2 / jnp.sqrt(v2 + 1e-5))[None, None, None, :])
    hf = lax.conv_general_dilated(x_nhwc, w1_f32, (1, 1), 'SAME',
                                  dimension_numbers=dn)
    hf = jnp.maximum(hf + bias1, 0.0)
    hf = lax.conv_general_dilated(hf, w2_f32, (1, 1), 'SAME',
                                  dimension_numbers=dn)
    full_f32 = jnp.maximum(hf + bias2 + x_nhwc, 0.0)
    err_f32 = float(jnp.max(jnp.abs(out_nhwc - full_f32)))
    assert err_f32 < 0.06, err_f32

    # --- bf16 activations end-to-end (halves input/residual/output HBM I/O) ---
    out_bf16 = jax.block_until_ready(
        residual_block(x_nhwc.astype(jnp.bfloat16), w1f, bias1, w2f, bias2))
    assert out_bf16.dtype == jnp.bfloat16
    assert jnp.allclose(out_bf16.astype(jnp.float32), ref_nhwc,
                        rtol=5e-2, atol=1e-1)

    # Back to PyTorch layout (NCHW) if a caller needs it.
    out_nchw = jnp.transpose(out_nhwc, (0, 3, 1, 2))
    jax.block_until_ready(out_nchw)
    print("KERNEL_OK")
</pallas_src>

<mosaic_0001>
module attributes {stable_mosaic.version = 11 : i64} {
  func.func @residual_block_kernel(%arg0: i32, %arg1: memref<1x16x16x128xf32, #tpu.memory_space<vmem>>, %arg2: memref<1152x128xbf16, #tpu.memory_space<vmem>>, %arg3: memref<1152x128xbf16, #tpu.memory_space<vmem>>, %arg4: memref<1x128xf32, #tpu.memory_space<vmem>>, %arg5: memref<1x128xf32, #tpu.memory_space<vmem>>, %arg6: memref<1x16x16x128xf32, #tpu.memory_space<vmem>>, %arg7: memref<18x16x128xbf16, #tpu.memory_space<vmem>>, %arg8: memref<18x16x128xbf16, #tpu.memory_space<vmem>>, %arg9: memref<18x16x128xbf16, #tpu.memory_space<vmem>>, %arg10: memref<18x16x128xbf16, #tpu.memory_space<vmem>>, %arg11: memref<18x16x128xbf16, #tpu.memory_space<vmem>>, %arg12: memref<18x16x128xbf16, #tpu.memory_space<vmem>>, %arg13: memref<16x16x1152xbf16, #tpu.memory_space<vmem>>) attributes {dimension_semantics = [#tpu.dimension_semantics<parallel>], iteration_bounds = array<i64: 2>, scalar_prefetch = 0 : i64, scratch_operands = 7 : i64, tpu.core_type = #tpu.core_type<tc>, window_params = [{transform_indices = @transform_0, window_bounds = array<i64: 1, 16, 16, 128>}, {pipeline_mode = #tpu.pipeline_mode<synchronous>, transform_indices = @transform_1, window_bounds = array<i64: 1152, 128>}, {pipeline_mode = #tpu.pipeline_mode<synchronous>, transform_indices = @transform_2, window_bounds = array<i64: 1152, 128>}, {pipeline_mode = #tpu.pipeline_mode<synchronous>, transform_indices = @transform_3, window_bounds = array<i64: 1, 128>}, {pipeline_mode = #tpu.pipeline_mode<synchronous>, transform_indices = @transform_4, window_bounds = array<i64: 1, 128>}, {transform_indices = @transform_5, window_bounds = array<i64: 1, 16, 16, 128>}]} {
    %cst = arith.constant 0.000000e+00 : bf16
    %0 = vector.broadcast %cst : bf16 to vector<1x16x128xbf16>
    %c0 = arith.constant 0 : index
    %c0_0 = arith.constant 0 : index
    %c0_1 = arith.constant 0 : index
    %1 = vector.load %arg7[%c0, %c0_0, %c0_1] : memref<18x16x128xbf16, #tpu.memory_space<vmem>>, vector<1x16x128xbf16>
    tpu.vector_store %arg7[%c0, %c0_0, %c0_1], %0 {strides = array<i32>} : memref<18x16x128xbf16, #tpu.memory_space<vmem>>, vector<1x16x128xbf16>,
    %c17 = arith.constant 17 : index
    %c0_2 = arith.constant 0 : index
    %c0_3 = arith.constant 0 : index
    %2 = vector.load %arg7[%c17, %c0_2, %c0_3] : memref<18x16x128xbf16, #tpu.memory_space<vmem>>, vector<1x16x128xbf16>
    tpu.vector_store %arg7[%c17, %c0_2, %c0_3], %0 {strides = array<i32>} : memref<18x16x128xbf16, #tpu.memory_space<vmem>>, vector<1x16x128xbf16>,
    %c0_4 = arith.constant 0 : index
    %c0_5 = arith.constant 0 : index
    %c0_6 = arith.constant 0 : index
    %3 = vector.load %arg8[%c0_4, %c0_5, %c0_6] : memref<18x16x128xbf16, #tpu.memory_space<vmem>>, vector<1x16x128xbf16>
    tpu.vector_store %arg8[%c0_4, %c0_5, %c0_6], %0 {strides = array<i32>} : memref<18x16x128xbf16, #tpu.memory_space<vmem>>, vector<1x16x128xbf16>,
    %c17_7 = arith.constant 17 : index
    %c0_8 = arith.constant 0 : index
    %c0_9 = arith.constant 0 : index
    %4 = vector.load %arg8[%c17_7, %c0_8, %c0_9] : memref<18x16x128xbf16, #tpu.memory_space<vmem>>, vector<1x16x128xbf16>
    tpu.vector_store %arg8[%c17_7, %c0_8, %c0_9], %0 {strides = array<i32>} : memref<18x16x128xbf16, #tpu.memory_space<vmem>>, vector<1x16x128xbf16>,
    %c0_10 = arith.constant 0 : index
    %c0_11 = arith.constant 0 : index
    %c0_12 = arith.constant 0 : index
    %5 = vector.load %arg9[%c0_10, %c0_11, %c0_12] : memref<18x16x128xbf16, #tpu.memory_space<vmem>>, vector<1x16x128xbf16>
    tpu.vector_store %arg9[%c0_10, %c0_11, %c0_12], %0 {strides = array<i32>} : memref<18x16x128xbf16, #tpu.memory_space<vmem>>, vector<1x16x128xbf16>,
    %c17_13 = arith.constant 17 : index
    %c0_14 = arith.constant 0 : index
    %c0_15 = arith.constant 0 : index
    %6 = vector.load %arg9[%c17_13, %c0_14, %c0_15] : memref<18x16x128xbf16, #tpu.memory_space<vmem>>, vector<1x16x128xbf16>
    tpu.vector_store %arg9[%c17_13, %c0_14, %c0_15], %0 {strides = array<i32>} : memref<18x16x128xbf16, #tpu.memory_space<vmem>>, vector<1x16x128xbf16>,
    %c0_16 = arith.constant 0 : index
    %c0_17 = arith.constant 0 : index
    %c0_18 = arith.constant 0 : index
    %7 = vector.load %arg10[%c0_16, %c0_17, %c0_18] : memref<18x16x128xbf16, #tpu.memory_space<vmem>>, vector<1x16x128xbf16>
    tpu.vector_store %arg10[%c0_16, %c0_17, %c0_18], %0 {strides = array<i32>} : memref<18x16x128xbf16, #tpu.memory_space<vmem>>, vector<1x16x128xbf16>,
    %c17_19 = arith.constant 17 : index
    %c0_20 = arith.constant 0 : index
    %c0_21 = arith.constant 0 : index
    %8 = vector.load %arg10[%c17_19, %c0_20, %c0_21] : memref<18x16x128xbf16, #tpu.memory_space<vmem>>, vector<1x16x128xbf16>
    tpu.vector_store %arg10[%c17_19, %c0_20, %c0_21], %0 {strides = array<i32>} : memref<18x16x128xbf16, #tpu.memory_space<vmem>>, vector<1x16x128xbf16>,
    %c0_22 = arith.constant 0 : index
    %c0_23 = arith.constant 0 : index
    %c0_24 = arith.constant 0 : index
    %9 = vector.load %arg11[%c0_22, %c0_23, %c0_24] : memref<18x16x128xbf16, #tpu.memory_space<vmem>>, vector<1x16x128xbf16>
    tpu.vector_store %arg11[%c0_22, %c0_23, %c0_24], %0 {strides = array<i32>} : memref<18x16x128xbf16, #tpu.memory_space<vmem>>, vector<1x16x128xbf16>,
    %c17_25 = arith.constant 17 : index
    %c0_26 = arith.constant 0 : index
    %c0_27 = arith.constant 0 : index
    %10 = vector.load %arg11[%c17_25, %c0_26, %c0_27] : memref<18x16x128xbf16, #tpu.memory_space<vmem>>, vector<1x16x128xbf16>
    tpu.vector_store %arg11[%c17_25, %c0_26, %c0_27], %0 {strides = array<i32>} : memref<18x16x128xbf16, #tpu.memory_space<vmem>>, vector<1x16x128xbf16>,
    %c0_28 = arith.constant 0 : index
    %c0_29 = arith.constant 0 : index
    %c0_30 = arith.constant 0 : index
    %11 = vector.load %arg12[%c0_28, %c0_29, %c0_30] : memref<18x16x128xbf16, #tpu.memory_space<vmem>>, vector<1x16x128xbf16>
    tpu.vector_store %arg12[%c0_28, %c0_29, %c0_30], %0 {strides = array<i32>} : memref<18x16x128xbf16, #tpu.memory_space<vmem>>, vector<1x16x128xbf16>,
    %c17_31 = arith.constant 17 : index
    %c0_32 = arith.constant 0 : index
    %c0_33 = arith.constant 0 : index
    %12 = vector.load %arg12[%c17_31, %c0_32, %c0_33] : memref<18x16x128xbf16, #tpu.memory_space<vmem>>, vector<1x16x128xbf16>
    tpu.vector_store %arg12[%c17_31, %c0_32, %c0_33], %0 {strides = array<i32>} : memref<18x16x128xbf16, #tpu.memory_space<vmem>>, vector<1x16x128xbf16>,
    %c0_34 = arith.constant 0 : index
    %c0_35 = arith.constant 0 : index
    %c0_36 = arith.constant 0 : index
    %c0_37 = arith.constant 0 : index
    %13 = vector.load %arg1[%c0_34, %c0_35, %c0_36, %c0_37] : memref<1x16x16x128xf32, #tpu.memory_space<vmem>>, vector<1x16x16x128xf32>
    %14 = vector.shape_cast %13 : vector<1x16x16x128xf32> to vector<16x16x128xf32>
    %15 = arith.truncf %14 : vector<16x16x128xf32> to vector<16x16x128xbf16>
    %c1 = arith.constant 1 : index
    %c0_38 = arith.constant 0 : index
    %c0_39 = arith.constant 0 : index
    %16 = vector.load %arg8[%c1, %c0_38, %c0_39] : memref<18x16x128xbf16, #tpu.memory_space<vmem>>, vector<16x16x128xbf16>
    tpu.vector_store %arg8[%c1, %c0_38, %c0_39], %15 {strides = array<i32>} : memref<18x16x128xbf16, #tpu.memory_space<vmem>>, vector<16x16x128xbf16>,
    %cst_40 = arith.constant 0.000000e+00 : bf16
    %17 = vector.broadcast %cst_40 : bf16 to vector<16x1x128xbf16>
    %18 = vector.extract_strided_slice %15 {offsets = [0, 0, 0], sizes = [16, 15, 128], strides = [1, 1, 1]} : vector<16x16x128xbf16> to vector<16x15x128xbf16>
    %19 = tpu.concatenate %17, %18 in 1 : vector<16x1x128xbf16>, vector<16x15x128xbf16> -> vector<16x16x128xbf16>
    %c1_41 = arith.constant 1 : index
    %c0_42 = arith.constant 0 : index
    %c0_43 = arith.constant 0 : index
    %20 = vector.load %arg7[%c1_41, %c0_42, %c0_43] : memref<18x16x128xbf16, #tpu.memory_space<vmem>>, vector<16x16x128xbf16>
    tpu.vector_store %arg7[%c1_41, %c0_42, %c0_43], %19 {strides = array<i32>} : memref<18x16x128xbf16, #tpu.memory_space<vmem>>, vector<16x16x128xbf16>,
    %cst_44 = arith.constant 0.000000e+00 : bf16
    %21 = vector.broadcast %cst_44 : bf16 to vector<16x1x128xbf16>
    %22 = vector.extract_strided_slice %15 {offsets = [0, 1, 0], sizes = [16, 15, 128], strides = [1, 1, 1]} : vector<16x16x128xbf16> to vector<16x15x128xbf16>
    %23 = tpu.concatenate %22, %21 in 1 : vector<16x15x128xbf16>, vector<16x1x128xbf16> -> vector<16x16x128xbf16>
    %c1_45 = arith.constant 1 : index
    %c0_46 = arith.constant 0 : index
    %c0_47 = arith.constant 0 : index
    %24 = vector.load %arg9[%c1_45, %c0_46, %c0_47] : memref<18x16x128xbf16, #tpu.memory_space<vmem>>, vector<16x16x128xbf16>
    tpu.vector_store %arg9[%c1_45, %c0_46, %c0_47], %23 {strides = array<i32>} : memref<18x16x128xbf16, #tpu.memory_space<vmem>>, vector<16x16x128xbf16>,
    %c0_48 = arith.constant 0 : index
    %c0_49 = arith.constant 0 : index
    %25 = vector.load %arg4[%c0_48, %c0_49] : memref<1x128xf32, #tpu.memory_space<vmem>>, vector<1x128xf32>
    %c0_50 = arith.constant 0 : index
    %c0_51 = arith.constant 0 : index
    %26 = vector.load %arg5[%c0_50, %c0_51] : memref<1x128xf32, #tpu.memory_space<vmem>>, vector<1x128xf32>
    %c0_i32 = arith.constant 0 : i32
    %c16_i32 = arith.constant 16 : i32
    %27 = arith.muli %c0_i32, %c16_i32 : i32
    %28 = tpu.assume_multiple %27, 16 : i32
    %c0_i32_52 = arith.constant 0 : i32
    %29 = arith.addi %28, %c0_i32_52 : i32
    %30 = arith.index_cast %29 : i32 to index
    %c0_53 = arith.constant 0 : index
    %c0_54 = arith.constant 0 : index
    %31 = vector.load %arg7[%30, %c0_53, %c0_54] : memref<18x16x128xbf16, #tpu.memory_space<vmem>>, vector<16x16x128xbf16>
    %c0_55 = arith.constant 0 : index
    %c0_56 = arith.constant 0 : index
    %c0_57 = arith.constant 0 : index
    %32 = vector.load %arg13[%c0_55, %c0_56, %c0_57] : memref<16x16x1152xbf16, #tpu.memory_space<vmem>>, vector<16x16x128xbf16>
    tpu.vector_store %arg13[%c0_55, %c0_56, %c0_57], %31 {strides = array<i32>} : memref<16x16x1152xbf16, #tpu.memory_space<vmem>>, vector<16x16x128xbf16>,
    %c1_i32 = arith.constant 1 : i32
    %33 = arith.addi %28, %c1_i32 : i32
    %34 = arith.index_cast %33 : i32 to index
    %c0_58 = arith.constant 0 : index
    %c0_59 = arith.constant 0 : index
    %35 = vector.load %arg7[%34, %c0_58, %c0_59] : memref<18x16x128xbf16, #tpu.memory_space<vmem>>, vector<16x16x128xbf16>
    %c0_60 = arith.constant 0 : index
    %c0_61 = arith.constant 0 : index
    %c384 = arith.constant 384 : index
    %36 = vector.load %arg13[%c0_60, %c0_61, %c384] : memref<16x16x1152xbf16, #tpu.memory_space<vmem>>, vector<16x16x128xbf16>
    tpu.vector_store %arg13[%c0_60, %c0_61, %c384], %35 {strides = array<i32>} : memref<16x16x1152xbf16, #tpu.memory_space<vmem>>, vector<16x16x128xbf16>,
    %c2_i32 = arith.constant 2 : i32
    %37 = arith.addi %28, %c2_i32 : i32
    %38 = arith.index_cast %37 : i32 to index
    %c0_62 = arith.constant 0 : index
    %c0_63 = arith.constant 0 : index
    %39 = vector.load %arg7[%38, %c0_62, %c0_63] : memref<18x16x128xbf16, #tpu.memory_space<vmem>>, vector<16x16x128xbf16>
    %c0_64 = arith.constant 0 : index
    %c0_65 = arith.constant 0 : index
    %c768 = arith.constant 768 : index
    %40 = vector.load %arg13[%c0_64, %c0_65, %c768] : memref<16x16x1152xbf16, #tpu.memory_space<vmem>>, vector<16x16x128xbf16>
    tpu.vector_store %arg13[%c0_64, %c0_65, %c768], %39 {strides = array<i32>} : memref<16x16x1152xbf16, #tpu.memory_space<vmem>>, vector<16x16x128xbf16>,
    %c0_i32_66 = arith.constant 0 : i32
    %41 = arith.addi %28, %c0_i32_66 : i32
    %42 = arith.index_cast %41 : i32 to index
    %c0_67 = arith.constant 0 : index
    %c0_68 = arith.constant 0 : index
    %43 = vector.load %arg8[%42, %c0_67, %c0_68] : memref<18x16x128xbf16, #tpu.memory_space<vmem>>, vector<16x16x128xbf16>
    %c0_69 = arith.constant 0 : index
    %c0_70 = arith.constant 0 : index
    %c128 = arith.constant 128 : index
    %44 = vector.load %arg13[%c0_69, %c0_70, %c128] : memref<16x16x1152xbf16, #tpu.memory_space<vmem>>, vector<16x16x128xbf16>
    tpu.vector_store %arg13[%c0_69, %c0_70, %c128], %43 {strides = array<i32>} : memref<16x16x1152xbf16, #tpu.memory_space<vmem>>, vector<16x16x128xbf16>,
    %c1_i32_71 = arith.constant 1 : i32
    %45 = arith.addi %28, %c1_i32_71 : i32
    %46 = arith.index_cast %45 : i32 to index
    %c0_72 = arith.constant 0 : index
    %c0_73 = arith.constant 0 : index
    %47 = vector.load %arg8[%46, %c0_72, %c0_73] : memref<18x16x128xbf16, #tpu.memory_space<vmem>>, vector<16x16x128xbf16>
    %c0_74 = arith.constant 0 : index
    %c0_75 = arith.constant 0 : index
    %c512 = arith.constant 512 : index
    %48 = vector.load %arg13[%c0_74, %c0_75, %c512] : memref<16x16x1152xbf16, #tpu.memory_space<vmem>>, vector<16x16x128xbf16>
    tpu.vector_store %arg13[%c0_74, %c0_75, %c512], %47 {strides = array<i32>} : memref<16x16x1152xbf16, #tpu.memory_space<vmem>>, vector<16x16x128xbf16>,
    %c2_i32_76 = arith.constant 2 : i32
    %49 = arith.addi %28, %c2_i32_76 : i32
    %50 = arith.index_cast %49 : i32 to index
    %c0_77 = arith.constant 0 : index
    %c0_78 = arith.constant 0 : index
    %51 = vector.load %arg8[%50, %c0_77, %c0_78] : memref<18x16x128xbf16, #tpu.memory_space<vmem>>, vector<16x16x128xbf16>
    %c0_79 = arith.constant 0 : index
    %c0_80 = arith.constant 0 : index
    %c896 = arith.constant 896 : index
    %52 = vector.load %arg13[%c0_79, %c0_80, %c896] : memref<16x16x1152xbf16, #tpu.memory_space<vmem>>, vector<16x16x128xbf16>
    tpu.vector_store %arg13[%c0_79, %c0_80, %c896], %51 {strides = array<i32>} : memref<16x16x1152xbf16, #tpu.memory_space<vmem>>, vector<16x16x128xbf16>,
    %c0_i32_81 = arith.constant 0 : i32
    %53 = arith.addi %28, %c0_i32_81 : i32
    %54 = arith.index_cast %53 : i32 to index
    %c0_82 = arith.constant 0 : index
    %c0_83 = arith.constant 0 : index
    %55 = vector.load %arg9[%54, %c0_82, %c0_83] : memref<18x16x128xbf16, #tpu.memory_space<vmem>>, vector<16x16x128xbf16>
    %c0_84 = arith.constant 0 : index
    %c0_85 = arith.constant 0 : index
    %c256 = arith.constant 256 : index
    %56 = vector.load %arg13[%c0_84, %c0_85, %c256] : memref<16x16x1152xbf16, #tpu.memory_space<vmem>>, vector<16x16x128xbf16>
    tpu.vector_store %arg13[%c0_84, %c0_85, %c256], %55 {strides = array<i32>} : memref<16x16x1152xbf16, #tpu.memory_space<vmem>>, vector<16x16x128xbf16>,
    %c1_i32_86 = arith.constant 1 : i32
    %57 = arith.addi %28, %c1_i32_86 : i32
    %58 = arith.index_cast %57 : i32 to index
    %c0_87 = arith.constant 0 : index
    %c0_88 = arith.constant 0 : index
    %59 = vector.load %arg9[%58, %c0_87, %c0_88] : memref<18x16x128xbf16, #tpu.memory_space<vmem>>, vector<16x16x128xbf16>
    %c0_89 = arith.constant 0 : index
    %c0_90 = arith.constant 0 : index
    %c640 = arith.constant 640 : index
    %60 = vector.load %arg13[%c0_89, %c0_90, %c640] : memref<16x16x1152xbf16, #tpu.memory_space<vmem>>, vector<16x16x128xbf16>
    tpu.vector_store %arg13[%c0_89, %c0_90, %c640], %59 {strides = array<i32>} : memref<16x16x1152xbf16, #tpu.memory_space<vmem>>, vector<16x16x128xbf16>,
    %c2_i32_91 = arith.constant 2 : i32
    %61 = arith.addi %28, %c2_i32_91 : i32
    %62 = arith.index_cast %61 : i32 to index
    %c0_92 = arith.constant 0 : index
    %c0_93 = arith.constant 0 : index
    %63 = vector.load %arg9[%62, %c0_92, %c0_93] : memref<18x16x128xbf16, #tpu.memory_space<vmem>>, vector<16x16x128xbf16>
    %c0_94 = arith.constant 0 : index
    %c0_95 = arith.constant 0 : index
    %c1024 = arith.constant 1024 : index
    %64 = vector.load %arg13[%c0_94, %c0_95, %c1024] : memref<16x16x1152xbf16, #tpu.memory_space<vmem>>, vector<16x16x128xbf16>
    tpu.vector_store %arg13[%c0_94, %c0_95, %c1024], %63 {strides = array<i32>} : memref<16x16x1152xbf16, #tpu.memory_space<vmem>>, vector<16x16x128xbf16>,
    %c0_96 = arith.constant 0 : index
    %c0_97 = arith.constant 0 : index
    %c0_98 = arith.constant 0 : index
    %65 = vector.load %arg13[%c0_96, %c0_97, %c0_98] : memref<16x16x1152xbf16, #tpu.memory_space<vmem>>, vector<16x16x1152xbf16>
    %66 = vector.shape_cast %65 : vector<16x16x1152xbf16> to vector<256x1152xbf16>
    %c0_99 = arith.constant 0 : index
    %c0_100 = arith.constant 0 : index
    %67 = vector.load %arg2[%c0_99, %c0_100] : memref<1152x128xbf16, #tpu.memory_space<vmem>>, vector<1152x128xbf16>
    %cst_101 = arith.constant dense<0.000000e+00> : vector<256x128xf32>
    %68 = tpu.matmul %66, %67, %cst_101 {dimension_numbers = #tpu.dot_dimension_numbers<[1], [0], [0], [1], [0, 0, 1, 1], [], []>} : vector<256x1152xbf16>, vector<1152x128xbf16>, vector<256x128xf32> -> vector<256x128xf32>
    %69 = vector.broadcast %25 : vector<1x128xf32> to vector<256x128xf32>
    %70 = arith.addf %68, %69 : vector<256x128xf32>
    %cst_102 = arith.constant 0.000000e+00 : f32
    %71 = vector.broadcast %cst_102 : f32 to vector<256x128xf32>
    %72 = arith.maximumf %70, %71 : vector<256x128xf32>
    %73 = vector.shape_cast %72 : vector<256x128xf32> to vector<16x16x128xf32>
    %74 = arith.truncf %73 : vector<16x16x128xf32> to vector<16x16x128xbf16>
    %c1_i32_103 = arith.constant 1 : i32
    %75 = arith.addi %c1_i32_103, %28 : i32
    %76 = arith.index_cast %75 : i32 to index
    %c0_104 = arith.constant 0 : index
    %c0_105 = arith.constant 0 : index
    %77 = vector.load %arg11[%76, %c0_104, %c0_105] : memref<18x16x128xbf16, #tpu.memory_space<vmem>>, vector<16x16x128xbf16>
    tpu.vector_store %arg11[%76, %c0_104, %c0_105], %74 {strides = array<i32>} : memref<18x16x128xbf16, #tpu.memory_space<vmem>>, vector<16x16x128xbf16>,
    %cst_106 = arith.constant 0.000000e+00 : bf16
    %78 = vector.broadcast %cst_106 : bf16 to vector<16x1x128xbf16>
    %79 = vector.extract_strided_slice %74 {offsets = [0, 0, 0], sizes = [16, 15, 128], strides = [1, 1, 1]} : vector<16x16x128xbf16> to vector<16x15x128xbf16>
    %80 = tpu.concatenate %78, %79 in 1 : vector<16x1x128xbf16>, vector<16x15x128xbf16> -> vector<16x16x128xbf16>
    %c1_i32_107 = arith.constant 1 : i32
    %81 = arith.addi %c1_i32_107, %28 : i32
    %82 = arith.index_cast %81 : i32 to index
    %c0_108 = arith.constant 0 : index
    %c0_109 = arith.constant 0 : index
    %83 = vector.load %arg10[%82, %c0_108, %c0_109] : memref<18x16x128xbf16, #tpu.memory_space<vmem>>, vector<16x16x128xbf16>
    tpu.vector_store %arg10[%82, %c0_108, %c0_109], %80 {strides = array<i32>} : memref<18x16x128xbf16, #tpu.memory_space<vmem>>, vector<16x16x128xbf16>,
    %cst_110 = arith.constant 0.000000e+00 : bf16
    %84 = vector.broadcast %cst_110 : bf16 to vector<16x1x128xbf16>
    %85 = vector.extract_strided_slice %74 {offsets = [0, 1, 0], sizes = [16, 15, 128], strides = [1, 1, 1]} : vector<16x16x128xbf16> to vector<16x15x128xbf16>
    %86 = tpu.concatenate %85, %84 in 1 : vector<16x15x128xbf16>, vector<16x1x128xbf16> -> vector<16x16x128xbf16>
    %c1_i32_111 = arith.constant 1 : i32
    %87 = arith.addi %c1_i32_111, %28 : i32
    %88 = arith.index_cast %87 : i32 to index
    %c0_112 = arith.constant 0 : index
    %c0_113 = arith.constant 0 : index
    %89 = vector.load %arg12[%88, %c0_112, %c0_113] : memref<18x16x128xbf16, #tpu.memory_space<vmem>>, vector<16x16x128xbf16>
    tpu.vector_store %arg12[%88, %c0_112, %c0_113], %86 {strides = array<i32>} : memref<18x16x128xbf16, #tpu.memory_space<vmem>>, vector<16x16x128xbf16>,
    %c1_i32_114 = arith.constant 1 : i32
    %c0_i32_115 = arith.constant 0 : i32
    %c16_i32_116 = arith.constant 16 : i32
    %90 = arith.muli %c0_i32_115, %c16_i32_116 : i32
    %91 = tpu.assume_multiple %90, 16 : i32
    %c0_i32_117 = arith.constant 0 : i32
    %92 = arith.addi %91, %c0_i32_117 : i32
    %93 = arith.index_cast %92 : i32 to index
    %c0_118 = arith.constant 0 : index
    %c0_119 = arith.constant 0 : index
    %94 = vector.load %arg10[%93, %c0_118, %c0_119] : memref<18x16x128xbf16, #tpu.memory_space<vmem>>, vector<16x16x128xbf16>
    %c0_120 = arith.constant 0 : index
    %c0_121 = arith.constant 0 : index
    %c0_122 = arith.constant 0 : index
    %95 = vector.load %arg13[%c0_120, %c0_121, %c0_122] : memref<16x16x1152xbf16, #tpu.memory_space<vmem>>, vector<16x16x128xbf16>
    tpu.vector_store %arg13[%c0_120, %c0_121, %c0_122], %94 {strides = array<i32>} : memref<16x16x1152xbf16, #tpu.memory_space<vmem>>, vector<16x16x128xbf16>,
    %c1_i32_123 = arith.constant 1 : i32
    %96 = arith.addi %91, %c1_i32_123 : i32
    %97 = arith.index_cast %96 : i32 to index
    %c0_124 = arith.constant 0 : index
    %c0_125 = arith.constant 0 : index
    %98 = vector.load %arg10[%97, %c0_124, %c0_125] : memref<18x16x128xbf16, #tpu.memory_space<vmem>>, vector<16x16x128xbf16>
    %c0_126 = arith.constant 0 : index
    %c0_127 = arith.constant 0 : index
    %c384_128 = arith.constant 384 : index
    %99 = vector.load %arg13[%c0_126, %c0_127, %c384_128] : memref<16x16x1152xbf16, #tpu.memory_space<vmem>>, vector<16x16x128xbf16>
    tpu.vector_store %arg13[%c0_126, %c0_127, %c384_128], %98 {strides = array<i32>} : memref<16x16x1152xbf16, #tpu.memory_space<vmem>>, vector<16x16x128xbf16>,
    %c2_i32_129 = arith.constant 2 : i32
    %100 = arith.addi %91, %c2_i32_129 : i32
    %101 = arith.index_cast %100 : i32 to index
    %c0_130 = arith.constant 0 : index
    %c0_131 = arith.constant 0 : index
    %102 = vector.load %arg10[%101, %c0_130, %c0_131] : memref<18x16x128xbf16, #tpu.memory_space<vmem>>, vector<16x16x128xbf16>
    %c0_132 = arith.constant 0 : index
    %c0_133 = arith.constant 0 : index
    %c768_134 = arith.constant 768 : index
    %103 = vector.load %arg13[%c0_132, %c0_133, %c768_134] : memref<16x16x1152xbf16, #tpu.memory_space<vmem>>, vector<16x16x128xbf16>
    tpu.vector_store %arg13[%c0_132, %c0_133, %c768_134], %102 {strides = array<i32>} : memref<16x16x1152xbf16, #tpu.memory_space<vmem>>, vector<16x16x128xbf16>,
    %c0_i32_135 = arith.constant 0 : i32
    %104 = arith.addi %91, %c0_i32_135 : i32
    %105 = arith.index_cast %104 : i32 to index
    %c0_136 = arith.constant 0 : index
    %c0_137 = arith.constant 0 : index
    %106 = vector.load %arg11[%105, %c0_136, %c0_137] : memref<18x16x128xbf16, #tpu.memory_space<vmem>>, vector<16x16x128xbf16>
    %c0_138 = arith.constant 0 : index
    %c0_139 = arith.constant 0 : index
    %c128_140 = arith.constant 128 : index
    %107 = vector.load %arg13[%c0_138, %c0_139, %c128_140] : memref<16x16x1152xbf16, #tpu.memory_space<vmem>>, vector<16x16x128xbf16>
    tpu.vector_store %arg13[%c0_138, %c0_139, %c128_140], %106 {strides = array<i32>} : memref<16x16x1152xbf16, #tpu.memory_space<vmem>>, vector<16x16x128xbf16>,
    %c1_i32_141 = arith.constant 1 : i32
    %108 = arith.addi %91, %c1_i32_141 : i32
    %109 = arith.index_cast %108 : i32 to index
    %c0_142 = arith.constant 0 : index
    %c0_143 = arith.constant 0 : index
    %110 = vector.load %arg11[%109, %c0_142, %c0_143] : memref<18x16x128xbf16, #tpu.memory_space<vmem>>, vector<16x16x128xbf16>
    %c0_144 = arith.constant 0 : index
    %c0_145 = arith.constant 0 : index
    %c512_146 = arith.constant 512 : index
    %111 = vector.load %arg13[%c0_144, %c0_145, %c512_146] : memref<16x16x1152xbf16, #tpu.memory_space<vmem>>, vector<16x16x128xbf16>
    tpu.vector_store %arg13[%c0_144, %c0_145, %c512_146], %110 {strides = array<i32>} : memref<16x16x1152xbf16, #tpu.memory_space<vmem>>, vector<16x16x128xbf16>,
    %c2_i32_147 = arith.constant 2 : i32
    %112 = arith.addi %91, %c2_i32_147 : i32
    %113 = arith.index_cast %112 : i32 to index
    %c0_148 = arith.constant 0 : index
    %c0_149 = arith.constant 0 : index
    %114 = vector.load %arg11[%113, %c0_148, %c0_149] : memref<18x16x128xbf16, #tpu.memory_space<vmem>>, vector<16x16x128xbf16>
    %c0_150 = arith.constant 0 : index
    %c0_151 = arith.constant 0 : index
    %c896_152 = arith.constant 896 : index
    %115 = vector.load %arg13[%c0_150, %c0_151, %c896_152] : memref<16x16x1152xbf16, #tpu.memory_space<vmem>>, vector<16x16x128xbf16>
    tpu.vector_store %arg13[%c0_150, %c0_151, %c896_152], %114 {strides = array<i32>} : memref<16x16x1152xbf16, #tpu.memory_space<vmem>>, vector<16x16x128xbf16>,
    %c0_i32_153 = arith.constant 0 : i32
    %116 = arith.addi %91, %c0_i32_153 : i32
    %117 = arith.index_cast %116 : i32 to index
    %c0_154 = arith.constant 0 : index
    %c0_155 = arith.constant 0 : index
    %118 = vector.load %arg12[%117, %c0_154, %c0_155] : memref<18x16x128xbf16, #tpu.memory_space<vmem>>, vector<16x16x128xbf16>
    %c0_156 = arith.constant 0 : index
    %c0_157 = arith.constant 0 : index
    %c256_158 = arith.constant 256 : index
    %119 = vector.load %arg13[%c0_156, %c0_157, %c256_158] : memref<16x16x1152xbf16, #tpu.memory_space<vmem>>, vector<16x16x128xbf16>
    tpu.vector_store %arg13[%c0_156, %c0_157, %c256_158], %118 {strides = array<i32>} : memref<16x16x1152xbf16, #tpu.memory_space<vmem>>, vector<16x16x128xbf16>,
    %c1_i32_159 = arith.constant 1 : i32
    %120 = arith.addi %91, %c1_i32_159 : i32
    %121 = arith.index_cast %120 : i32 to index
    %c0_160 = arith.constant 0 : index
    %c0_161 = arith.constant 0 : index
    %122 = vector.load %arg12[%121, %c0_160, %c0_161] : memref<18x16x128xbf16, #tpu.memory_space<vmem>>, vector<16x16x128xbf16>
    %c0_162 = arith.constant 0 : index
    %c0_163 = arith.constant 0 : index
    %c640_164 = arith.constant 640 : index
    %123 = vector.load %arg13[%c0_162, %c0_163, %c640_164] : memref<16x16x1152xbf16, #tpu.memory_space<vmem>>, vector<16x16x128xbf16>
    tpu.vector_store %arg13[%c0_162, %c0_163, %c640_164], %122 {strides = array<i32>} : memref<16x16x1152xbf16, #tpu.memory_space<vmem>>, vector<16x16x128xbf16>,
    %c2_i32_165 = arith.constant 2 : i32
    %124 = arith.addi %91, %c2_i32_165 : i32
    %125 = arith.index_cast %124 : i32 to index
    %c0_166 = arith.constant 0 : index
    %c0_167 = arith.constant 0 : index
    %126 = vector.load %arg12[%125, %c0_166, %c0_167] : memref<18x16x128xbf16, #tpu.memory_space<vmem>>, vector<16x16x128xbf16>
    %c0_168 = arith.constant 0 : index
    %c0_169 = arith.constant 0 : index
    %c1024_170 = arith.constant 1024 : index
    %127 = vector.load %arg13[%c0_168, %c0_169, %c1024_170] : memref<16x16x1152xbf16, #tpu.memory_space<vmem>>, vector<16x16x128xbf16>
    tpu.vector_store %arg13[%c0_168, %c0_169, %c1024_170], %126 {strides = array<i32>} : memref<16x16x1152xbf16, #tpu.memory_space<vmem>>, vector<16x16x128xbf16>,
    %c0_171 = arith.constant 0 : index
    %c0_172 = arith.constant 0 : index
    %c0_173 = arith.constant 0 : index
    %128 = vector.load %arg13[%c0_171, %c0_172, %c0_173] : memref<16x16x1152xbf16, #tpu.memory_space<vmem>>, vector<16x16x1152xbf16>
    %129 = vector.shape_cast %128 : vector<16x16x1152xbf16> to vector<256x1152xbf16>
    %c0_174 = arith.constant 0 : index
    %c0_175 = arith.constant 0 : index
    %130 = vector.load %arg3[%c0_174, %c0_175] : memref<1152x128xbf16, #tpu.memory_space<vmem>>, vector<1152x128xbf16>
    %cst_176 = arith.constant dense<0.000000e+00> : vector<256x128xf32>
    %131 = tpu.matmul %129, %130, %cst_176 {dimension_numbers = #tpu.dot_dimension_numbers<[1], [0], [0], [1], [0, 0, 1, 1], [], []>} : vector<256x1152xbf16>, vector<1152x128xbf16>, vector<256x128xf32> -> vector<256x128xf32>
    %132 = vector.broadcast %26 : vector<1x128xf32> to vector<256x128xf32>
    %133 = arith.addf %131, %132 : vector<256x128xf32>
    %c0_177 = arith.constant 0 : index
    %134 = arith.index_cast %91 : i32 to index
    %c0_178 = arith.constant 0 : index
    %c0_179 = arith.constant 0 : index
    %135 = vector.load %arg1[%c0_177, %134, %c0_178, %c0_179] : memref<1x16x16x128xf32, #tpu.memory_space<vmem>>, vector<1x16x16x128xf32>
    %136 = vector.shape_cast %135 : vector<1x16x16x128xf32> to vector<16x16x128xf32>
    %137 = vector.shape_cast %136 : vector<16x16x128xf32> to vector<256x128xf32>
    %138 = arith.addf %133, %137 : vector<256x128xf32>
    %cst_180 = arith.constant 0.000000e+00 : f32
    %139 = vector.broadcast %cst_180 : f32 to vector<256x128xf32>
    %140 = arith.maximumf %138, %139 : vector<256x128xf32>
    %141 = vector.shape_cast %140 : vector<256x128xf32> to vector<16x16x128xf32>
    %c0_181 = arith.constant 0 : index
    %142 = arith.index_cast %91 : i32 to index
    %c0_182 = arith.constant 0 : index
    %c0_183 = arith.constant 0 : index
    %143 = vector.load %arg6[%c0_181, %142, %c0_182, %c0_183] : memref<1x16x16x128xf32, #tpu.memory_space<vmem>>, vector<1x16x16x128xf32>
    %144 = vector.shape_cast %143 : vector<1x16x16x128xf32> to vector<16x16x128xf32>
    %145 = vector.shape_cast %141 : vector<16x16x128xf32> to vector<1x16x16x128xf32>
    tpu.vector_store %arg6[%c0_181, %142, %c0_182, %c0_183], %145 {strides = array<i32>} : memref<1x16x16x128xf32, #tpu.memory_space<vmem>>, vector<1x16x16x128xf32>,
    %c1_i32_184 = arith.constant 1 : i32
    return
  }
  func.func @transform_0(%arg0: i32) -> (i32, i32, i32, i32) {
    %c0_i32 = arith.constant 0 : i32
    %c0_i32_0 = arith.constant 0 : i32
    %c0_i32_1 = arith.constant 0 : i32
    %c0_i32_2 = arith.constant 0 : i32
    return %arg0, %c0_i32, %c0_i32_0, %c0_i32_1 : i32, i32, i32, i32
  }
  func.func @transform_1(%arg0: i32) -> (i32, i32) {
    %c0_i32 = arith.constant 0 : i32
    %c0_i32_0 = arith.constant 0 : i32
    %c0_i32_1 = arith.constant 0 : i32
    return %c0_i32, %c0_i32_0 : i32, i32
  }
  func.func @transform_2(%arg0: i32) -> (i32, i32) {
    %c0_i32 = arith.constant 0 : i32
    %c0_i32_0 = arith.constant 0 : i32
    %c0_i32_1 = arith.constant 0 : i32
    return %c0_i32, %c0_i32_0 : i32, i32
  }
  func.func @transform_3(%arg0: i32) -> (i32, i32) {
    %c0_i32 = arith.constant 0 : i32
    %c0_i32_0 = arith.constant 0 : i32
    %c0_i32_1 = arith.constant 0 : i32
    return %c0_i32, %c0_i32_0 : i32, i32
  }
  func.func @transform_4(%arg0: i32) -> (i32, i32) {
    %c0_i32 = arith.constant 0 : i32
    %c0_i32_0 = arith.constant 0 : i32
    %c0_i32_1 = arith.constant 0 : i32
    return %c0_i32, %c0_i32_0 : i32, i32
  }
  func.func @transform_5(%arg0: i32) -> (i32, i32, i32, i32) {
    %c0_i32 = arith.constant 0 : i32
    %c0_i32_0 = arith.constant 0 : i32
    %c0_i32_1 = arith.constant 0 : i32
    %c0_i32_2 = arith.constant 0 : i32
    return %arg0, %c0_i32, %c0_i32_0, %c0_i32_1 : i32, i32, i32, i32
  }
}

</mosaic_0001>

<bundles_post_ra>
// kernel: tpu_custom_call.1
= control target key start
LH: loop header
LB: loop body
LE: loop exit
PB: predicated region body
PF: predicated region fallthrough
CT: control target
= control target key end

     0   :  { %10 = vsyncpa [#allocation10], 0  ;;  %s7986_s0 = inlined_call_operand.hbm [shape: f32[2,16,16,128], index: 0, kind: input, shape index: {}]   ;;  %s7987_s1 = inlined_call_operand.hbm [shape: bf16[1152,128], index: 1, kind: input, shape index: {}]   ;;  %s7988_s2 = inlined_call_operand.hbm [shape: bf16[1152,128], index: 2, kind: input, shape index: {}]   ;;  %s7989_s3 = inlined_call_operand.vmem [shape: f32[1,128], index: 3, kind: input, shape index: {}]   ;;  %s7990_s4 = inlined_call_operand.vmem [shape: f32[1,128], index: 4, kind: input, shape index: {}]   ;;  %s7991_s5 = inlined_call_operand.hbm [shape: f32[2,16,16,128], index: 5, kind: output, shape index: {}]  }
   0x1   :  { %12 = vsyncpa [#allocation10 + $0x1], 0 }
   0x2   :  { %13 = vsyncpa [#allocation13], 0 }
   0x3   :  { %14 = vsyncpa [#allocation11], 0 }
   0x4   :  { %16 = vsyncpa [#allocation11 + $0x1], 0  ;;  %s6446_s18 = smov 0   ;;  %s6448_s19 = smov 0  }
   0x5   :  { %s6450_s20 = smov 0   ;;  %s6452_s21 = smov 0  }
   0x6 LB: > { %s6467_s22 = sadd.s32 4294967295, %s6403_s21   ;;  %s4823_s23 = sadd.s32 4294967294, %s6403_s21   ;;  %s6403_s21 = sphi %s6452_s21, %s8015_s21   ;;  %s6399_s20 = sphi %s6450_s20, %s8014_s20   ;;  %s6395_s19 = sphi %s6448_s19, %s8013_s19   ;;  %s6391_s18 = sphi %s6446_s18, %s8012_s18  }
   0x7   : > { %p42_p0 = scmp.ne.s32.totalorder %s6395_s19, %s6391_s18  ;;  %p7992_p1 = scmp.eq.s32.totalorder %s6467_s22, 0 }
   0x8   : > { %p156_p3 = scmp.eq.s32.totalorder %s4823_s23, 1  ;;  %p4824_p5 = scmp.ge.s32.totalorder %s6403_s21, 1 }
   0x9   : > { %p6476_p4 = por %p7992_p1, %p42_p0  ;;  %p163_p7 = scmp.lt.s32.totalorder %s6403_s21, 3 }
   0xa   : > { %p6481_p6 = por %p156_p3, %p42_p0  ;;  %s6405_s27 = smov [#allocation12]  }
   0xb   : > { %s7995_s24 = scalar_select %p6476_p4, 1, 0 }
   0xc   : > { %s7996_s25 = scalar_select %p6481_p6, 1, 0 }
   0xd   : > { %p6486_p8 = pnand %p4824_p5, %p163_p7  ;;  %s175_s28 = sshll.u32 %s6405_s27, 4  ;;  %s6490_s28 = int_to_ptr.vmem [resolvable:$true] %s175_s28 }
   0xe   : > { %s6406_s30 = smov [#allocation14]   ;;  %s6247_s9 = scalar_lea.hbm %s7987_s1, 9216 }
   0xf   : > { %p6041_p9 = pneg %p6486_p8  ;;  %s188_s6 = sshll.u32 %s6406_s30, 4  ;;  %s6501_s6 = int_to_ptr.vmem [resolvable:$true] %s188_s6 }
  0x10   : > { %p6248_p12 = scmp.ne.s32.totalorder %s7987_s1, %s6247_s9  ;;  %p6254_p5 = scmp.lt.u32.totalorder %s6247_s9, %s7987_s1 }
  0x11   : > { %p6497_p11 = pnand %p6041_p9, %p7992_p1 }
  0x13   : > { %p6249_p13 = pneg %p6497_p11 }
  0x15   : > { %p6250_p0 = pnand %p6249_p13, %p6248_p12 }
  0x17   : > { %p6251_p3 = pneg %p6250_p0 }
  0x19   : > { %p6256_p7 = pnand %p6254_p5, %p6251_p3 }
  0x1b   : > { %6259 = shalt.err (!%p6256_p7)
}
  0x1c   : > { %s6260_s14 = scalar_lea.vmem %s6490_s28, 9216  ;;  %p6268_p2 = scmp.lt.s32.totalorder %s6490_s28, %s6490_s28 }
  0x1d   : > { %p6261_p9 = scmp.ne.s32.totalorder %s6490_s28, %s6260_s14  ;;  %p6269_p12 = scmp.lt.s32.totalorder %s6260_s14, %s6260_s14 }
  0x1f   : > { %p6263_p10 = pnand %p6261_p9, %p6249_p13  ;;  %p6270_p0 = por %p6269_p12, %p6268_p2 }
  0x21   : > { %p6264_p1 = pneg %p6263_p10 }
  0x23   : > { %p6271_p6 = pnand %p6270_p0, %p6264_p1 }
  0x25   : > { %6274 = shalt.err (!%p6271_p6)
}
  0x26   : > { %s6407_s15 = smov 64   ;;  %s6408_s16 = smov 4  }
  0x27   : > { %6044 = dma.hbm_to_vmem [thread:$0]  (!%p6497_p11), %s7987_s1, 9216, %s6490_s28, [#allocation13], %s6407_s15, %s6407_s15, %s6408_s16  }
  0x28   : > { %s6275_s7 = scalar_lea.hbm %s7988_s2, 9216 }
  0x29   : > { %p6276_p2 = scmp.ne.s32.totalorder %s7988_s2, %s6275_s7  ;;  %p6282_p10 = scmp.lt.u32.totalorder %s6275_s7, %s7988_s2 }
  0x2b   : > { %p6278_p1 = pnand %p6276_p2, %p6249_p13 }
  0x2d   : > { %p6279_p6 = pneg %p6278_p1 }
  0x2f   : > { %p6284_p3 = pnand %p6282_p10, %p6279_p6 }
  0x31   : > { %6287 = shalt.err (!%p6284_p3)
}
  0x32   : > { %s6288_s28 = scalar_lea.vmem %s6501_s6, 9216  ;;  %p6296_p12 = scmp.lt.s32.totalorder %s6501_s6, %s6501_s6 }
  0x33   : > { %p6289_p5 = scmp.ne.s32.totalorder %s6501_s6, %s6288_s28  ;;  %p6297_p0 = scmp.lt.s32.totalorder %s6288_s28, %s6288_s28 }
  0x35   : > { %p6291_p7 = pnand %p6289_p5, %p6249_p13  ;;  %p6298_p2 = por %p6297_p0, %p6296_p12 }
  0x37   : > { %p6292_p9 = pneg %p6291_p7 }
  0x39   : > { %p6299_p1 = pnand %p6298_p2, %p6292_p9 }
  0x3b   : > { %6302 = shalt.err (!%p6299_p1)
}
  0x3c   : > { %6047 = dma.hbm_to_vmem [thread:$0]  (!%p6497_p11), %s7988_s2, 9216, %s6501_s6, [#allocation13], %s6407_s15, %s6407_s15, %s6408_s16  }
  0x3d   : > { %s6556_s14 = sadd.s32 1, %s6403_s21   ;;  %s29_s29 = sadd.s32 1, %s6399_s20 }
  0x3e   : > { %s26_s17 = ssub.s32 %s6403_s21, %s6556_s14  ;;  %p36_p13 = scmp.ne.s32.totalorder %s6399_s20, %s6395_s19 }
  0x3f   : > { %p27_p6 = scmp.eq.s32.totalorder %s26_s17, 0  ;;  %p37_p10 = scmp.eq.s32.totalorder %s6403_s21, 0 }
  0x40   : > { %p7999_p3 = scmp.eq.s32.totalorder %s6467_s22, 1  ;;  %p6058_p7 = scmp.lt.s32.totalorder %s6403_s21, 2 }
  0x41   : > { %s6572_s27 = scalar_select %p27_p6, %s6399_s20, %s29_s29  }
  0x42   : > { %p6566_p5 = por %p7999_p3, %p36_p13  ;;  %p38_p9 = por %p37_p10, %p36_p13 }
  0x43   : > { %s208_s30 = sand.u32 1, %s6399_s20   ;;  %s4987_s6 = sshll.u32 %s6403_s21, 12 }
  0x44   : > { %s8000_s23 = scalar_select %p6566_p5, 1, 0 }
  0x45   : > { %s4828_s7 = sshll.u32 %s208_s30, 8  ;;  %s6579_s8 = scalar_lea.hbm %s7986_s0, %s4987_s6 }
  0x46   : > { %s212_s9 = scalar_lea.vmem [#allocation9], %s4828_s7  ;;  %p6583_p11 = pnand %p6058_p7, %p38_p9 }
  0x47   : > { %s219_s10 = sshll.u32 %s212_s9, 4  ;;  %s6587_s28 = scalar_lea.sflag [#allocation10], %s208_s30  ;;  %s6581_s10 = int_to_ptr.vmem [resolvable:$true] %s219_s10 }
  0x48   : > { %s6303_s12 = scalar_lea.hbm %s6579_s8, 4096  ;;  %p6305_p0 = pneg %p6583_p11 }
  0x49   : > { %p6304_p12 = scmp.ne.s32.totalorder %s6579_s8, %s6303_s12  ;;  %s6308_s17 = scalar_lea.hbm %s7986_s0, 8192 }
  0x4a   : > { %p6309_p13 = scmp.lt.u32.totalorder %s6579_s8, %s7986_s0  ;;  %p6310_p6 = scmp.lt.u32.totalorder %s6308_s17, %s6303_s12 }
  0x4b   : > { %p6306_p2 = pnand %p6305_p0, %p6304_p12  ;;  %p6312_p3 = scmp.lt.u32.totalorder %s6303_s12, %s6579_s8 }
  0x4c   : > { %p6311_p10 = por %p6310_p6, %p6309_p13 }
  0x4d   : > { %p6307_p1 = pneg %p6306_p2 }
  0x4e   : > { %p6313_p7 = por %p6312_p3, %p6311_p10 }
  0x50   : > { %p6314_p9 = pnand %p6313_p7, %p6307_p1 }
  0x52   : > { %6317 = shalt.err (!%p6314_p9)
}
  0x53   : > { %s6318_s30 = scalar_lea.vmem %s6581_s10, 4096  ;;  %s6409_s15 = smov [#allocation9]  }
  0x54   : > { %p6319_p12 = scmp.ne.s32.totalorder %s6581_s10, %s6318_s30  ;;  %s6323_s16 = sshll.u32 %s6409_s15, 4  ;;  %s6324_s16 = int_to_ptr.vmem [resolvable:$false] %s6323_s16 }
  0x55   : > { %s6325_s9 = scalar_lea.vmem %s6324_s16, 8192  ;;  %p6326_p4 = scmp.lt.s32.totalorder %s6581_s10, %s6324_s16 }
  0x56   : > { %p6321_p2 = pnand %p6319_p12, %p6305_p0  ;;  %p6327_p13 = scmp.lt.s32.totalorder %s6325_s9, %s6318_s30 }
  0x58   : > { %p6322_p5 = pneg %p6321_p2  ;;  %p6328_p6 = por %p6327_p13, %p6326_p4 }
  0x5a   : > { %p6329_p10 = pnand %p6328_p6, %p6322_p5 }
  0x5c   : > { %6332 = shalt.err (!%p6329_p10)
}
  0x5d   : > { %s6410_s12 = smov 128   ;;  %s6411_s13 = smov 8  }
  0x5e   : > { %6051 = dma.hbm_to_vmem [thread:$0]  (!%p6583_p11), %s6579_s8, 4096, %s6581_s10, %s6587_s28, %s6410_s12, %s6410_s12, %s6411_s13  }
  0x5f   : > { %231 = sbr.rel (%p6486_p8) target bundleno = 1163 (0x48b), region = 40  ;;  %s6618_s29 = sand.u32 (!%p6486_p8), 1, %s6395_s19  }
  0x60   : > { %s4832_s17 = sshll.u32 (!%p6486_p8), %s6618_s29, 8  ;;  %s234_s7 = scalar_lea.sflag (!%p6486_p8), [#allocation10], %s6618_s29 }
  0x61   : > { %s6624_s6 = scalar_lea.vmem (!%p6486_p8), [#allocation9], %s4832_s17  ;;  %p8002_p4 = scmp.ne.s32.totalorder (!%p6486_p8), %s7995_s24, 0 }
  0x66   : > { %6378 = dma.done.wait (%p8002_p4), %s234_s7, 4096  }
  0x67   : > { %6380 = vsyncadd (%p8002_p4), %s234_s7, 4294963200  ;;  %p8003_p5 = scmp.eq.s32.totalorder %s6467_s22, 0 }
  0x69   : > { %6382 = dma.done.wait (%p8003_p5), [#allocation13], 18432   ;;  %p8004_p8 = pmov %p8003_p5 }
  0x6a   : > { %v6412_v0 = vmov 0   ;;  %v6103_v1 = vld [vmem:[#allocation12 + $0x40] sm:$0xff]   ;;  %v6107_v5 = vld [vmem:[#allocation12 + $0x48] sm:$0xff]   ;;  %v6111_v9 = vld [vmem:[#allocation12 + $0x50] sm:$0xff]   ;;  %vm485_vm0 = vsmask.f32 256 }
  0x6b   : > { %6384 = vsyncadd (%p8004_p8), [#allocation13], 4294948864  ;;  %1666 = vmatprep.mubr.bf16.mxu0 %v6412_v0  ;;  %v6104_v2 = vld [vmem:[#allocation12] sm:$0xff]   ;;  %4989 = vmatprep.subr.bf16.mxu0 %v6103_v1  ;;  %v6108_v6 = vld [vmem:[#allocation12 + $0x8] sm:$0xff]   ;;  %vm484_vm1 = vcmask 1040384   ;;  %vm568_vm4 = vcmask 1047552  }
  0x6c   : > { %v6105_v3 = vld [vmem:[#allocation12 + $0xc0] sm:$0xff]   ;;  %4990 = vmatpush3.bf16.msra.mxu0 %v6104_v2  ;;  %v6109_v7 = vld [vmem:[#allocation12 + $0xc8] sm:$0xff]   ;;  %v6112_v10 = vld [vmem:[#allocation12 + $0x10] sm:$0xff]   ;;  %vm569_vm3 = vsmask.f32 7424  ;;  %s7843_s11 = scalar_lea.vmem [#allocation15], %s4832_s17 }
  0x6d   : > { %v6106_v4 = vld [vmem:[#allocation12 + $0x80] sm:$0xff]   ;;  %5101 = vmatprep.subr.bf16.mxu1 %v6105_v3  ;;  %4991 = vmatprep.subr.bf16.mxu0 %v6107_v5  ;;  %v6110_v8 = vld [vmem:[#allocation12 + $0x88] sm:$0xff]   ;;  %v6113_v11 = vld [vmem:[#allocation12 + $0xd0] sm:$0xff]   ;;  %s4988_s28 = sshll.u32 %s6467_s22, 12  ;;  %s4719_s30 = sshll.u32 %s7843_s11, 4  ;;  %s7939_s30 = int_to_ptr.vmem [resolvable:$true] %s4719_s30 }
  0x6e   : > { %5102 = vmatpush3.bf16.msra.mxu1 %v6106_v4  ;;  %v6114_v12 = vld [vmem:[#allocation12 + $0x90] sm:$0xff]   ;;  %v6115_v13 = vld [vmem:[#allocation12 + $0x58] sm:$0xff]   ;;  %v6119_v17 = vld [vmem:[#allocation12 + $0x60] sm:$0xff]   ;;  %s7937_s9 = scalar_lea.hbm %s7991_s5, %s4988_s28  ;;  %s4706_s22 = scalar_lea.sflag [#allocation11], %s6618_s29 }
  0x6f   : > { %5103 = vmatprep.subr.bf16.mxu1 %v6109_v7  ;;  %v6116_v14 = vld [vmem:[#allocation12 + $0x18] sm:$0xff]   ;;  %v6120_v18 = vld [vmem:[#allocation12 + $0x20] sm:$0xff]   ;;  %v6123_v21 = vld [vmem:[#allocation12 + $0x68] sm:$0xff]   ;;  %s6333_s12 = scalar_lea.vmem %s7939_s30, 4096  ;;  %p8009_p0 = scmp.ne.s32.totalorder %s8000_s23, 0 }
  0x70   : > { %4992 = vmatpush3.bf16.msra.mxu0 %v6108_v6  ;;  %v6117_v15 = vld [vmem:[#allocation12 + $0xd8] sm:$0xff]   ;;  %v6121_v19 = vld [vmem:[#allocation12 + $0xe0] sm:$0xff]   ;;  %v6124_v22 = vld [vmem:[#allocation12 + $0x28] sm:$0xff]   ;;  %p6334_p11 = scmp.ne.s32.totalorder %s7939_s30, %s6333_s12  ;;  %s6413_s13 = smov [#allocation15]  }
  0x71   : > { %4993 = vmatprep.subr.bf16.mxu0 %v6111_v9  ;;  %v6118_v16 = vld [vmem:[#allocation12 + $0x98] sm:$0xff]   ;;  %v6122_v20 = vld [vmem:[#allocation12 + $0xa0] sm:$0xff]   ;;  %v6125_v23 = vld [vmem:[#allocation12 + $0xe8] sm:$0xff]   ;;  %s6337_s17 = sshll.u32 %s6413_s13, 4  ;;  %s6338_s17 = int_to_ptr.vmem [resolvable:$false] %s6337_s17 }
  0x72   : > { %5104 = vmatpush3.bf16.msra.mxu1 %v6110_v8  ;;  %v6126_v24 = vld [vmem:[#allocation12 + $0xa8] sm:$0xff]   ;;  %v6127_v25 = vld [vmem:[#allocation12 + $0x70] sm:$0xff]   ;;  %v6131_v29 = vld [vmem:[#allocation12 + $0x78] sm:$0xff]   ;;  %p6335_p1 = pnand %p6334_p11, %p8009_p0  ;;  %s6339_s7 = scalar_lea.vmem %s6338_s17, 8192 }
  0x73   : > { %5105 = vmatprep.subr.bf16.mxu1 %v6113_v11  ;;  %v6128_v26 = vld [vmem:[#allocation12 + $0x30] sm:$0xff]   ;;  %v6132_v30 = vld [vmem:[#allocation12 + $0x38] sm:$0xff]   ;;  %v6135_v33 = vld [vmem:[#allocation12 + $0x140] sm:$0xff]   ;;  %p6340_p7 = scmp.lt.s32.totalorder %s7939_s30, %s6338_s17  ;;  %p6341_p9 = scmp.lt.s32.totalorder %s6339_s7, %s6333_s12 }
  0x74   : > { %4994 = vmatpush3.bf16.msra.mxu0 %v6112_v10  ;;  %v6129_v27 = vld [vmem:[#allocation12 + $0xf0] sm:$0xff]   ;;  %v6133_v31 = vld [vmem:[#allocation12 + $0xf8] sm:$0xff]   ;;  %v291_v34 = vld [vmem:[%s6624_s6] sm:$0xff]  ;;  %p6336_p3 = pneg %p6335_p1 }
  0x75   : > { %4995 = vmatprep.subr.bf16.mxu0 %v6115_v13  ;;  %v6130_v28 = vld [vmem:[#allocation12 + $0xb0] sm:$0xff]   ;;  %v6134_v32 = vld [vmem:[#allocation12 + $0xb8] sm:$0xff]   ;;  %v292_v35 = vld [vmem:[%s6624_s6 + $0x8] sm:$0xff]  ;;  %p6342_p12 = por %p6341_p9, %p6340_p7 }
  0x76   : > { %5106 = vmatpush3.bf16.msra.mxu1 %v6114_v12  ;;  %v6638_v36 = vpack.c.bf16 %v292_v35, %v291_v34  ;;  %v6136_v37 = vld [vmem:[#allocation12 + $0x100] sm:$0xff]   ;;  %v293_v38 = vld [vmem:[%s6624_s6 + $0x10] sm:$0xff]  ;;  %v294_v39 = vld [vmem:[%s6624_s6 + $0x18] sm:$0xff] }
  0x77   : > { %5107 = vmatprep.subr.bf16.mxu1 %v6117_v15  ;;  %v6645_v42 = vpack.c.bf16 %v294_v39, %v293_v38  ;;  %v6137_v43 = vld [vmem:[#allocation12 + $0x148] sm:$0xff]   ;;  %v295_v44 = vld [vmem:[%s6624_s6 + $0x20] sm:$0xff]  ;;  %vm6652_vm2 = vmand %vm484_vm1, %vm485_vm0  ;;  %p6343_p2 = pnand %p6342_p12, %p6336_p3 }
  0x78   : > { %4996 = vmatpush3.bf16.msra.mxu0 %v6116_v14  ;;  %v357_v40 = vshrl.u32 %v6638_v36, 16  ;;  %v360_v41 = vshll.u32 %v6638_v36, 16  ;;  %v296_v45 = vld [vmem:[%s6624_s6 + $0x28] sm:$0xff]  ;;  %v297_v52 = vld [vmem:[%s6624_s6 + $0x30] sm:$0xff]  ;;  %v298_v54 = vld [vmem:[%s6624_s6 + $0x38] sm:$0xff] }
  0x79   : > { %4997 = vmatprep.subr.bf16.mxu0 %v6119_v17  ;;  %v6649_v46 = vpack.c.bf16 %v296_v45, %v295_v44  ;;  %v6138_v47 = vld [vmem:[#allocation12 + $0x108] sm:$0xff]   ;;  %v364_v50 = vshrl.u32 %v6645_v42, 16  ;;  %v367_v51 = vshll.u32 %v6645_v42, 16  ;;  %v6139_v57 = vld [vmem:[#allocation12 + $0x150] sm:$0xff]   ;;  %v6666_v63 = vpack.c.bf16 %v298_v54, %v297_v52  ;;  %v299_v1 = vld [vmem:[%s6624_s6 + $0x40] sm:$0xff] }
  0x7a   : > { %5108 = vmatpush3.bf16.msra.mxu1 %v6118_v16  ;;  %v359_v48 = vrot.slane %v357_v40, 7  ;;  %v520_v58 = vrot.slane %v360_v41, 1  ;;  %v6140_v2 = vld [vmem:[#allocation12 + $0x110] sm:$0xff]   ;;  %v300_v3 = vld [vmem:[%s6624_s6 + $0x48] sm:$0xff]  ;;  %v302_v6 = vld [vmem:[%s6624_s6 + $0x58] sm:$0xff] }
  0x7b   : > { %5109 = vmatprep.subr.bf16.mxu1 %v6121_v19  ;;  %v371_v53 = vshrl.u32 %v6649_v46, 16  ;;  %v366_v56 = vrot.slane %v364_v50, 7  ;;  %v374_v59 = vshll.u32 %v6649_v46, 16  ;;  %v301_v5 = vld [vmem:[%s6624_s6 + $0x50] sm:$0xff]  ;;  %v6141_v7 = vld [vmem:[#allocation12 + $0x158] sm:$0xff]   ;;  %vm6680_vm5 = vmand %vm568_vm4, %vm569_vm3  ;;  %v378_v12 = vshrl.u32 %v6666_v63, 16 }
  0x7c   : > { %4998 = vmatpush3.bf16.msra.mxu0 %v6120_v18  ;;  %v362_v55 = vor.u32 %v360_v41, %v359_v48  ;;  %v521_v8 = vor.u32 %v520_v58, %v357_v40  ;;  %v6142_v9 = vld [vmem:[#allocation12 + $0x118] sm:$0xff]   ;;  %v6685_v13 = vpack.c.bf16 %v300_v3, %v299_v1  ;;  %v6687_v14 = vpack.c.bf16 %v302_v6, %v301_v5  ;;  %v6143_v15 = vld [vmem:[#allocation12 + $0x160] sm:$0xff]   ;;  %v6146_v41 = vld [vmem:[#allocation12 + $0x128] sm:$0xff]  }
  0x7d   : > { %4999 = vmatprep.subr.bf16.mxu0 %v6123_v21  ;;  %v369_v61 = vor.u32 %v367_v51, %v366_v56  ;;  %v373_v62 = vrot.slane %v371_v53, 7  ;;  %v522_v16 = vrot.slane %v367_v51, 1  ;;  %v381_v18 = vshll.u32 %v6666_v63, 16  ;;  %v303_v19 = vld [vmem:[%s6624_s6 + $0x60] sm:$0xff]  ;;  %v306_v35 = vld [vmem:[%s6624_s6 + $0x78] sm:$0xff]  ;;  %v6147_v44 = vld [vmem:[#allocation12 + $0x170] sm:$0xff]  }
  0x7e   : > { %5110 = vmatpush3.bf16.msra.mxu1 %v6122_v20  ;;  %v487_v60 = vsel %vm6652_vm2, 0, %v362_v55  ;;  %v6691_v17 = vsel %vm6680_vm5, %v521_v8, 0  ;;  %v304_v20 = vld [vmem:[%s6624_s6 + $0x68] sm:$0xff]  ;;  %v395_v39 = vshll.u32 %v6687_v14, 16  ;;  %v307_v51 = vld [vmem:[%s6624_s6 + $0x80] sm:$0xff]  ;;  %v6148_v55 = vld [vmem:[#allocation12 + $0x130] sm:$0xff]  }
  0x7f   : > { %5111 = vmatprep.subr.bf16.mxu1 %v6125_v23  ;;  %1827 = vmatprep.mubr.bf16.mxu1 %v487_v60  ;;  %v6673_v4 = vsel %vm6652_vm2, 0, %v369_v61  ;;  %v376_v11 = vor.u32 %v374_v59, %v373_v62  ;;  %v385_v23 = vshrl.u32 %v6685_v13, 16  ;;  %v308_v52 = vld [vmem:[%s6624_s6 + $0x88] sm:$0xff]  ;;  %v6149_v6 = vld [vmem:[#allocation12 + $0x1c0] sm:$0xff]   ;;  %v6241_v49 = vld [vmem:[#allocation14 + $0x210] sm:$0xff]  }
  0x80   : > { %5000 = vmatpush3.bf16.msra.mxu0 %v6124_v22  ;;  %v380_v22 = vrot.slane %v378_v12, 7  ;;  %v530_v48 = vrot.slane %v395_v39, 1  ;;  %v6739_v1 = vpack.c.bf16 %v308_v52, %v307_v51 }
  0x81   : > { %5001 = vmatprep.subr.bf16.mxu0 %v6127_v25  ;;  %v6698_v21 = vsel %vm6652_vm2, 0, %v376_v11  ;;  %v524_v25 = vrot.slane %v374_v59, 1  ;;  %v387_v34 = vrot.slane %v385_v23, 7  ;;  %v309_v59 = vld [vmem:[%s6624_s6 + $0x90] sm:$0xff] }
  0x82   : > { %5112 = vmatpush3.bf16.msra.mxu1 %v6126_v24  ;;  %v6144_v24 = vld [vmem:[#allocation12 + $0x120] sm:$0xff]  }
  0x83   : > { %5113 = vmatprep.subr.bf16.mxu1 %v6129_v27  ;;  %v6145_v27 = vld [vmem:[#allocation12 + $0x168] sm:$0xff]  }
  0x84   : > { %5002 = vmatpush3.bf16.msra.mxu0 %v6128_v26  ;;  %v392_v26 = vshrl.u32 %v6687_v14, 16 }
  0x85   : > { %5003 = vmatprep.subr.bf16.mxu0 %v6131_v29  ;;  %v523_v29 = vor.u32 %v522_v16, %v364_v50 }
  0x86   : > { %5114 = vmatpush3.bf16.msra.mxu1 %v6130_v28  ;;  %v6705_v28 = vpack.c.bf16 %v304_v20, %v303_v19  ;;  %v394_v38 = vrot.slane %v392_v26, 7  ;;  %v531_v3 = vor.u32 %v530_v48, %v392_v26  ;;  %v413_v20 = vshrl.u32 %v6739_v1, 16  ;;  %v6155_v48 = vld [vmem:[#allocation12 + $0x1d8] sm:$0xff]  }
  0x87   : > { %5115 = vmatprep.subr.bf16.mxu1 %v6133_v31  ;;  %v526_v31 = vrot.slane %v381_v18, 1  ;;  %v6717_v45 = vsel %vm6680_vm5, %v523_v29, 0  ;;  %v314_v29 = vld [vmem:[%s6624_s6 + $0xb8] sm:$0xff] }
  0x88   : > { %5004 = vmatpush3.bf16.msra.mxu0 %v6132_v30  ;;  %v388_v30 = vshll.u32 %v6685_v13, 16  ;;  %v402_v62 = vshll.u32 %v6705_v28, 16 }
  0x89   : > { %5213 = vmatprep.subr.bf16.mxu0 %v6135_v33  ;;  %v383_v33 = vor.u32 %v381_v18, %v380_v22  ;;  %v6151_v22 = vld [vmem:[#allocation12 + $0x1c8] sm:$0xff]  }
  0x8a   : > { %5116 = vmatpush3.bf16.msra.mxu1 %v6134_v32  ;;  %v305_v32 = vld [vmem:[%s6624_s6 + $0x70] sm:$0xff]  ;;  %v528_v40 = vrot.slane %v388_v30, 1  ;;  %v390_v54 = vor.u32 %v388_v30, %v387_v34  ;;  %v6152_v30 = vld [vmem:[#allocation12 + $0x188] sm:$0xff]  }
  0x8b   : > { %1667 = vmatmul.mubr.bf16.vlgmr.msra.gmra.mrb[0].mxu0 %v6412_v0  ;;  %v6719_v50 = vpack.c.bf16 %v306_v35, %v305_v32  ;;  %5325 = vmatprep.subr.bf16.mxu1 %v6149_v6  ;;  %v6153_v34 = vld [vmem:[#allocation12 + $0x1d0] sm:$0xff]  }
  0x8c   : > { %5214 = vmatpush3.bf16.msra.mxu0 %v6136_v37  ;;  %1674 = vmatprep.mubr.bf16.mxu0 %v6638_v36  ;;  %v525_v37 = vor.u32 %v524_v25, %v371_v53  ;;  %v6725_v53 = vsel %vm6652_vm2, 0, %v383_v33  ;;  %v529_v58 = vor.u32 %v528_v40, %v385_v23  ;;  %v6749_v8 = vsel %vm6652_vm2, 0, %v390_v54 }
  0x8d   : > { %5215 = vmatprep.subr.bf16.mxu0 %v6137_v43  ;;  %1828 = vmatmul.mubr.bf16.vlgmr.msra.gmra.mrb[0].mxu1 %v6412_v0  ;;  %v399_v43 = vshrl.u32 %v6705_v28, 16  ;;  %v406_v5 = vshrl.u32 %v6719_v50, 16  ;;  %v6767_v23 = vsel %vm6680_vm5, %v531_v3, 0  ;;  %v532_v25 = vrot.slane %v402_v62, 1 }
  0x8e   : > { %1835 = vmatprep.mubr.bf16.mxu1 %v6673_v4  ;;  %v6730_v56 = vsel %vm6680_vm5, %v525_v37, 0  ;;  %v6762_v18 = vsel %vm6680_vm5, %v529_v58, 0  ;;  %v415_v37 = vrot.slane %v413_v20, 7  ;;  %v316_v58 = vld [vmem:[%s6624_s6 + $0xc8] sm:$0xff] }
  0x8f   : > { %v401_v61 = vrot.slane %v399_v43, 7 }
  0x90   : > { %5216 = vmatpush3.bf16.msra.mxu0 %v6138_v47  ;;  %v527_v47 = vor.u32 %v526_v31, %v378_v12  ;;  %v311_v12 = vld [vmem:[%s6624_s6 + $0xa0] sm:$0xff]  ;;  %v416_v31 = vshll.u32 %v6739_v1, 16 }
  0x91   : > { %5217 = vmatprep.subr.bf16.mxu0 %v6139_v57  ;;  %v397_v57 = vor.u32 %v395_v39, %v394_v38  ;;  %v404_v19 = vor.u32 %v402_v62, %v401_v61  ;;  %v6156_v62 = vld [vmem:[#allocation12 + $0x198] sm:$0xff]  }
  0x92   : > { %v418_v3 = vor.u32 %v416_v31, %v415_v37  ;;  %v6161_v37 = vld [vmem:[#allocation12 + $0x1e8] sm:$0xff]  }
  0x93   : > { %1675 = vmatmul.mubr.bf16.gmra.mrb[4].mxu0 %v487_v60  ;;  %v310_v60 = vld [vmem:[%s6624_s6 + $0x98] sm:$0xff]  ;;  %v6758_v16 = vsel %vm6652_vm2, 0, %v397_v57  ;;  %v6780_v35 = vsel %vm6652_vm2, 0, %v404_v19  ;;  %v315_v57 = vld [vmem:[%s6624_s6 + $0xc0] sm:$0xff] }
  0x94   : > { %1682 = vmatprep.mubr.bf16.mxu0 %v6645_v42  ;;  %5218 = vmatpush3.bf16.msra.mxu0 %v6140_v2  ;;  %v6744_v2 = vsel %vm6680_vm5, %v527_v47, 0  ;;  %v6752_v11 = vpack.c.bf16 %v310_v60, %v309_v59  ;;  %v536_v47 = vrot.slane %v416_v31, 1  ;;  %v6157_v59 = vld [vmem:[#allocation12 + $0x178] sm:$0xff]  }
  0x95   : > { %5219 = vmatprep.subr.bf16.mxu0 %v6141_v7  ;;  %1836 = vmatmul.mubr.bf16.gmra.mrb[4].mxu1 %v6691_v17  ;;  %v6150_v7 = vld [vmem:[#allocation12 + $0x180] sm:$0xff]  }
  0x96   : > { %1843 = vmatprep.mubr.bf16.mxu1 %v6698_v21  ;;  %5326 = vmatpush3.bf16.msra.mxu1 %v6150_v7  ;;  %v420_v33 = vshrl.u32 %v6752_v11, 16  ;;  %v423_v38 = vshll.u32 %v6752_v11, 16 }
  0x97   : > { %5327 = vmatprep.subr.bf16.mxu1 %v6151_v22 }
  0x98   : > { %5220 = vmatpush3.bf16.msra.mxu0 %v6142_v9  ;;  %v409_v9 = vshll.u32 %v6719_v50, 16  ;;  %v422_v52 = vrot.slane %v420_v33, 7 }
  0x99   : > { %5221 = vmatprep.subr.bf16.mxu0 %v6143_v15  ;;  %v312_v15 = vld [vmem:[%s6624_s6 + $0xa8] sm:$0xff] }
  0x9a   : > { %v6769_v26 = vpack.c.bf16 %v312_v15, %v311_v12  ;;  %v534_v32 = vrot.slane %v409_v9, 1  ;;  %5328 = vmatpush3.bf16.msra.mxu1 %v6152_v30  ;;  %v6159_v12 = vld [vmem:[#allocation12 + $0x1e0] sm:$0xff]   ;;  %v425_v15 = vor.u32 %v423_v38, %v422_v52 }
  0x9b   : > { %1683 = vmatmul.mubr.bf16.gmra.mrb[8].mxu0 %v6673_v4  ;;  %5329 = vmatprep.subr.bf16.mxu1 %v6153_v34 }
  0x9c   : > { %1690 = vmatprep.mubr.bf16.mxu0 %v6649_v46  ;;  %5222 = vmatpush3.bf16.msra.mxu0 %v6144_v24  ;;  %v408_v24 = vrot.slane %v406_v5, 7  ;;  %v427_v40 = vshrl.u32 %v6769_v26, 16  ;;  %v430_v54 = vshll.u32 %v6769_v26, 16  ;;  %v535_v60 = vor.u32 %v534_v32, %v406_v5  ;;  %v6160_v32 = vld [vmem:[#allocation12 + $0x1a0] sm:$0xff]  }
  0x9d   : > { %5223 = vmatprep.subr.bf16.mxu0 %v6145_v27  ;;  %1844 = vmatmul.mubr.bf16.gmra.mrb[8].mxu1 %v6717_v45  ;;  %v313_v27 = vld [vmem:[%s6624_s6 + $0xb0] sm:$0xff] }
  0x9e   : > { %1851 = vmatprep.mubr.bf16.mxu1 %v6725_v53  ;;  %v6783_v39 = vpack.c.bf16 %v314_v29, %v313_v27  ;;  %v411_v51 = vor.u32 %v409_v9, %v408_v24  ;;  %v429_v6 = vrot.slane %v427_v40, 7  ;;  %v537_v9 = vor.u32 %v536_v47, %v413_v20 }
  0x9f   : > { %v540_v22 = vrot.slane %v430_v54, 1  ;;  %v6807_v24 = vsel %vm6680_vm5, %v535_v60, 0  ;;  %v6814_v27 = vsel %vm6652_vm2, 0, %v418_v3  ;;  %v6843_v60 = vld [vmem:[#allocation12 + $0x200] sm:$0xff]  }
  0xa0   : > { %5224 = vmatpush3.bf16.msra.mxu0 %v6146_v41  ;;  %v6154_v41 = vld [vmem:[#allocation12 + $0x190] sm:$0xff]   ;;  %v434_v61 = vshrl.u32 %v6783_v39, 16  ;;  %v6800_v5 = vsel %vm6652_vm2, 0, %v411_v51  ;;  %v437_v19 = vshll.u32 %v6783_v39, 16  ;;  %v432_v29 = vor.u32 %v430_v54, %v429_v6 }
  0xa1   : > { %5225 = vmatprep.subr.bf16.mxu0 %v6147_v44  ;;  %v533_v44 = vor.u32 %v532_v25, %v399_v43  ;;  %5330 = vmatpush3.bf16.msra.mxu1 %v6154_v41  ;;  %v6158_v43 = vld [vmem:[#allocation12 + $0x138] sm:$0xff]   ;;  %v6809_v25 = vpack.c.bf16 %v316_v58, %v315_v57  ;;  %v6818_v34 = vsel %vm6680_vm5, %v537_v9, 0  ;;  %v541_v41 = vor.u32 %v540_v22, %v427_v40  ;;  %v6162_v57 = vld [vmem:[#allocation12 + $0x1a8] sm:$0xff]   ;;  %v6163_v58 = vld [vmem:[#allocation12 + $0x1f0] sm:$0xff]  }
  0xa2   : > { %5331 = vmatprep.subr.bf16.mxu1 %v6155_v48  ;;  %v436_v20 = vrot.slane %v434_v61, 7  ;;  %v542_v31 = vrot.slane %v437_v19, 1  ;;  %v6829_v51 = vsel %vm6652_vm2, 0, %v432_v29  ;;  %v6164_v6 = vld [vmem:[#allocation12 + $0x1b0] sm:$0xff]   ;;  %v6165_v9 = vld [vmem:[#allocation12 + $0x1f8] sm:$0xff]   ;;  %v319_v29 = vld [vmem:[%s6624_s6 + $0xe0] sm:$0xff] }
  0xa3   : > { %1691 = vmatmul.mubr.bf16.gmra.mrb[12].mxu0 %v6698_v21  ;;  %v6795_v7 = vsel %vm6680_vm5, %v533_v44, 0  ;;  %v317_v44 = vld [vmem:[%s6624_s6 + $0xd0] sm:$0xff]  ;;  %v441_v48 = vshrl.u32 %v6809_v25, 16  ;;  %v444_v54 = vshll.u32 %v6809_v25, 16  ;;  %v6839_v40 = vsel %vm6680_vm5, %v541_v41, 0 }
  0xa4   : > { %1698 = vmatprep.mubr.bf16.mxu0 %v6666_v63  ;;  %5226 = vmatpush3.bf16.msra.mxu0 %v6148_v55  ;;  %v538_v55 = vrot.slane %v423_v38, 1  ;;  %v6822_v38 = vsel %vm6652_vm2, 0, %v425_v15  ;;  %v439_v47 = vor.u32 %v437_v19, %v436_v20  ;;  %v6166_v15 = vld [vmem:[#allocation12 + $0x1b8] sm:$0xff]  }
  0xa5   : > { %1852 = vmatmul.mubr.bf16.gmra.mrb[12].mxu1 %v6730_v56  ;;  %5227 = vmatprep.subr.bf16.mxu0 %v6157_v59 }
  0xa6   : > { %1859 = vmatprep.mubr.bf16.mxu1 %v6749_v8  ;;  %v539_v30 = vor.u32 %v538_v55, %v420_v33  ;;  %5332 = vmatpush3.bf16.msra.mxu1 %v6156_v62  ;;  %v318_v33 = vld [vmem:[%s6624_s6 + $0xd8] sm:$0xff]  ;;  %v543_v55 = vor.u32 %v542_v31, %v434_v61  ;;  %v6849_v61 = vsel %vm6652_vm2, 0, %v439_v47  ;;  %v443_v62 = vrot.slane %v441_v48, 7  ;;  %v320_v31 = vld [vmem:[%s6624_s6 + $0xe8] sm:$0xff]  ;;  %v321_v47 = vld [vmem:[%s6624_s6 + $0xf0] sm:$0xff] }
  0xa7   : > { %5333 = vmatprep.subr.bf16.mxu1 %v6159_v12  ;;  %v6841_v59 = vpack.c.bf16 %v318_v33, %v317_v44  ;;  %v322_v33 = vld [vmem:[%s6624_s6 + $0xf8] sm:$0xff] }
  0xa8   : > { %5228 = vmatpush3.bf16.msra.mxu0 %v6158_v43  ;;  %v6833_v52 = vsel %vm6680_vm5, %v539_v30, 0  ;;  %v6856_v3 = vsel %vm6680_vm5, %v543_v55, 0  ;;  %v544_v43 = vrot.slane %v444_v54, 1  ;;  %v446_v19 = vor.u32 %v444_v54, %v443_v62 }
  0xa9   : > { %5933 = vmatprep.subr.bf16.mxu0 %v6843_v60  ;;  %v448_v12 = vshrl.u32 %v6841_v59, 16  ;;  %v451_v20 = vshll.u32 %v6841_v59, 16 }
  0xaa   : > { %5334 = vmatpush3.bf16.msra.mxu1 %v6160_v32  ;;  %v6869_v22 = vsel %vm6652_vm2, 0, %v446_v19 }
  0xab   : > { %1699 = vmatmul.mubr.bf16.gmra.mrb[16].mxu0 %v6725_v53  ;;  %5335 = vmatprep.subr.bf16.mxu1 %v6161_v37  ;;  %v450_v30 = vrot.slane %v448_v12, 7  ;;  %v6883_v37 = vpack.c.bf16 %v320_v31, %v319_v29 }
  0xac   : > { %1706 = vmatprep.mubr.bf16.mxu0 %v6685_v13 }
  0xad   : > { %1860 = vmatmul.mubr.bf16.gmra.mrb[16].mxu1 %v6744_v2  ;;  %v453_v32 = vor.u32 %v451_v20, %v450_v30  ;;  %v455_v44 = vshrl.u32 %v6883_v37, 16  ;;  %v458_v55 = vshll.u32 %v6883_v37, 16 }
  0xae   : > { %1867 = vmatprep.mubr.bf16.mxu1 %v6758_v16  ;;  %5336 = vmatpush3.bf16.msra.mxu1 %v6162_v57  ;;  %v6901_v57 = vpack.c.bf16 %v322_v33, %v321_v47  ;;  %v6168_v33 = vld [vmem:[#allocation12 + $0x208] sm:$0xff]  }
  0xaf   : > { %5337 = vmatprep.subr.bf16.mxu1 %v6163_v58  ;;  %v6890_v41 = vsel %vm6652_vm2, 0, %v453_v32  ;;  %v457_v54 = vrot.slane %v455_v44, 7  ;;  %v545_v58 = vor.u32 %v544_v43, %v441_v48  ;;  %v548_v31 = vrot.slane %v458_v55, 1 }
  0xb0   : > { %v465_v30 = vshll.u32 %v6901_v57, 16 }
  0xb1   : > { %v460_v62 = vor.u32 %v458_v55, %v457_v54  ;;  %v6169_v54 = vld [vmem:[#allocation12 + $0x210] sm:$0xff]  }
  0xb2   : > { %5338 = vmatpush3.bf16.msra.mxu1 %v6164_v6  ;;  %v462_v6 = vshrl.u32 %v6901_v57, 16 }
  0xb3   : > { %1707 = vmatmul.mubr.bf16.gmra.mrb[20].mxu0 %v6749_v8  ;;  %5339 = vmatprep.subr.bf16.mxu1 %v6165_v9  ;;  %v6912_v9 = vsel %vm6680_vm5, %v545_v58, 0  ;;  %v6916_v19 = vsel %vm6652_vm2, 0, %v460_v62  ;;  %v6175_v58 = vld [vmem:[#allocation14 + $0x40] sm:$0xff]  }
  0xb4   : > { %1714 = vmatprep.mubr.bf16.mxu0 %v6687_v14  ;;  %v464_v29 = vrot.slane %v462_v6, 7 }
  0xb5   : > { %1868 = vmatmul.mubr.bf16.gmra.mrb[20].mxu1 %v6762_v18 }
  0xb6   : > { %1875 = vmatprep.mubr.bf16.mxu1 %v6780_v35  ;;  %5340 = vmatpush3.bf16.msra.mxu1 %v6166_v15  ;;  %v546_v15 = vrot.slane %v451_v20, 1  ;;  %v467_v43 = vor.u32 %v465_v30, %v464_v29 }
  0xb7   : > { %5461 = vmatprep.subr.bf16.mxu1 %v6175_v58 }
  0xb8   : > { %v547_v48 = vor.u32 %v546_v15, %v448_v12  ;;  %v6933_v32 = vsel %vm6652_vm2, 0, %v467_v43  ;;  %v549_v12 = vor.u32 %v548_v31, %v455_v44  ;;  %v6176_v31 = vld [vmem:[#allocation14] sm:$0xff]  }
  0xba   : > { %v6929_v20 = vsel %vm6680_vm5, %v547_v48, 0  ;;  %v6941_v47 = vsel %vm6680_vm5, %v549_v12, 0 }
  0xbb   : > { %1715 = vmatmul.mubr.bf16.gmra.mrb[24].mxu0 %v6758_v16 }
  0xbc   : > { %1722 = vmatprep.mubr.bf16.mxu0 %v6705_v28 }
  0xbd   : > { %1876 = vmatmul.mubr.bf16.gmra.mrb[24].mxu1 %v6767_v23 }
  0xbe   : > { %1883 = vmatprep.mubr.bf16.mxu1 %v6800_v5 }
  0xc3   : > { %1723 = vmatmul.mubr.bf16.gmra.mrb[28].mxu0 %v6780_v35 }
  0xc4   : > { %1730 = vmatprep.mubr.bf16.mxu0 %v6719_v50 }
  0xc5   : > { %1884 = vmatmul.mubr.bf16.gmra.mrb[28].mxu1 %v6795_v7 }
  0xc6   : > { %1891 = vmatprep.mubr.bf16.mxu1 %v6814_v27 }
  0xcb   : > { %1731 = vmatmul.mubr.bf16.gmra.mrb[32].mxu0 %v6800_v5 }
  0xcc   : > { %1738 = vmatprep.mubr.bf16.mxu0 %v6739_v1 }
  0xcd   : > { %1892 = vmatmul.mubr.bf16.gmra.mrb[32].mxu1 %v6807_v24 }
  0xce   : > { %1899 = vmatprep.mubr.bf16.mxu1 %v6822_v38 }
  0xd3   : > { %1739 = vmatmul.mubr.bf16.gmra.mrb[36].mxu0 %v6814_v27 }
  0xd4   : > { %1746 = vmatprep.mubr.bf16.mxu0 %v6752_v11 }
  0xd5   : > { %1900 = vmatmul.mubr.bf16.gmra.mrb[36].mxu1 %v6818_v34 }
  0xd6   : > { %1907 = vmatprep.mubr.bf16.mxu1 %v6829_v51 }
  0xdb   : > { %1747 = vmatmul.mubr.bf16.gmra.mrb[40].mxu0 %v6822_v38 }
  0xdc   : > { %1754 = vmatprep.mubr.bf16.mxu0 %v6769_v26 }
  0xdd   : > { %1908 = vmatmul.mubr.bf16.gmra.mrb[40].mxu1 %v6833_v52 }
  0xde   : > { %1915 = vmatprep.mubr.bf16.mxu1 %v6849_v61 }
  0xe3   : > { %1755 = vmatmul.mubr.bf16.gmra.mrb[44].mxu0 %v6829_v51 }
  0xe4   : > { %1762 = vmatprep.mubr.bf16.mxu0 %v6783_v39 }
  0xe5   : > { %1916 = vmatmul.mubr.bf16.gmra.mrb[44].mxu1 %v6839_v40 }
  0xe6   : > { %1923 = vmatprep.mubr.bf16.mxu1 %v6869_v22 }
  0xeb   : > { %1763 = vmatmul.mubr.bf16.gmra.mrb[48].mxu0 %v6849_v61 }
  0xec   : > { %1770 = vmatprep.mubr.bf16.mxu0 %v6809_v25 }
  0xed   : > { %1924 = vmatmul.mubr.bf16.gmra.mrb[48].mxu1 %v6856_v3 }
  0xee   : > { %1931 = vmatprep.mubr.bf16.mxu1 %v6890_v41 }
  0xf3   : > { %1771 = vmatmul.mubr.bf16.gmra.mrb[52].mxu0 %v6869_v22 }
  0xf4   : > { %1778 = vmatprep.mubr.bf16.mxu0 %v6841_v59 }
  0xf5   : > { %1932 = vmatmul.mubr.bf16.gmra.mrb[52].mxu1 %v6912_v9 }
  0xf6   : > { %1939 = vmatprep.mubr.bf16.mxu1 %v6916_v19 }
  0xfb   : > { %1779 = vmatmul.mubr.bf16.gmra.mrb[56].mxu0 %v6890_v41 }
  0xfc   : > { %1786 = vmatprep.mubr.bf16.mxu0 %v6883_v37 }
  0xfd   : > { %1940 = vmatmul.mubr.bf16.gmra.mrb[56].mxu1 %v6929_v20 }
  0xfe   : > { %1947 = vmatprep.mubr.bf16.mxu1 %v6933_v32 }
 0x103   : > { %1787 = vmatmul.mubr.bf16.gmra.mrb[60].mxu0 %v6916_v19 }
 0x104   : > { %1988 = vmatprep.mubr.bf16.mxu0 %v6691_v17  ;;  %v6170_v17 = vld [vmem:[#allocation12 + $0x218] sm:$0xff]  }
 0x105   : > { %1948 = vmatmul.mubr.bf16.gmra.mrb[60].mxu1 %v6941_v47 }
 0x106   : > { %2149 = vmatprep.mubr.bf16.mxu1 %v6645_v42 }
 0x10b   : > { %1989 = vmatmul.mubr.bf16.vlgmr.msra.gmra.mrb[64].mxu0 %v6638_v36  ;;  %v6171_v36 = vld [vmem:[#allocation12 + $0x220] sm:$0xff]  }
 0x10c   : > { %5934 = vmatpush3.bf16.msra.mxu0 %v6843_v60  ;;  %1996 = vmatprep.mubr.bf16.mxu0 %v6717_v45  ;;  %v6172_v60 = vld [vmem:[#allocation12 + $0x228] sm:$0xff]  }
 0x10d   : > { %5935 = vmatprep.subr.bf16.mxu0 %v6168_v33  ;;  %2150 = vmatmul.mubr.bf16.vlgmr.msra.gmra.mrb[64].mxu1 %v6673_v4  ;;  %v6174_v4 = vld [vmem:[#allocation12 + $0x238] sm:$0xff]  }
 0x10e   : > { %2157 = vmatprep.mubr.bf16.mxu1 %v6649_v46  ;;  %5462 = vmatpush3.bf16.msra.mxu1 %v6176_v31 }
 0x110   : > { %5936 = vmatpush3.bf16.msra.mxu0 %v6168_v33 }
 0x111   : > { %5937 = vmatprep.subr.bf16.mxu0 %v6169_v54 }
 0x113   : > { %1997 = vmatmul.mubr.bf16.gmra.mrb[68].mxu0 %v6645_v42  ;;  %v6173_v42 = vld [vmem:[#allocation12 + $0x230] sm:$0xff]  }
 0x114   : > { %2004 = vmatprep.mubr.bf16.mxu0 %v6730_v56  ;;  %5938 = vmatpush3.bf16.msra.mxu0 %v6169_v54 }
 0x115   : > { %5939 = vmatprep.subr.bf16.mxu0 %v6170_v17  ;;  %2158 = vmatmul.mubr.bf16.gmra.mrb[68].mxu1 %v6698_v21 }
 0x116   : > { %2165 = vmatprep.mubr.bf16.mxu1 %v6666_v63 }
 0x118   : > { %5940 = vmatpush3.bf16.msra.mxu0 %v6170_v17 }
 0x119   : > { %5941 = vmatprep.subr.bf16.mxu0 %v6171_v36 }
 0x11b   : > { %2005 = vmatmul.mubr.bf16.gmra.mrb[72].mxu0 %v6649_v46 }
 0x11c   : > { %2012 = vmatprep.mubr.bf16.mxu0 %v6744_v2  ;;  %5942 = vmatpush3.bf16.msra.mxu0 %v6171_v36 }
 0x11d   : > { %5943 = vmatprep.subr.bf16.mxu0 %v6172_v60  ;;  %2166 = vmatmul.mubr.bf16.gmra.mrb[72].mxu1 %v6725_v53 }
 0x11e   : > { %2173 = vmatprep.mubr.bf16.mxu1 %v6685_v13 }
 0x120   : > { %5944 = vmatpush3.bf16.msra.mxu0 %v6172_v60  ;;  %v550_v60 = vrot.slane %v465_v30, 1 }
 0x121   : > { %5945 = vmatprep.subr.bf16.mxu0 %v6173_v42 }
 0x123   : > { %2013 = vmatmul.mubr.bf16.gmra.mrb[76].mxu0 %v6666_v63 }
 0x124   : > { %2020 = vmatprep.mubr.bf16.mxu0 %v6762_v18  ;;  %5946 = vmatpush3.bf16.msra.mxu0 %v6173_v42 }
 0x125   : > { %5947 = vmatprep.subr.bf16.mxu0 %v6174_v4  ;;  %2174 = vmatmul.mubr.bf16.gmra.mrb[76].mxu1 %v6749_v8 }
 0x126   : > { %2181 = vmatprep.mubr.bf16.mxu1 %v6687_v14 }
 0x128   : > { %5948 = vmatpush3.bf16.msra.mxu0 %v6174_v4 }
 0x12b   : > { %2021 = vmatmul.mubr.bf16.gmra.mrb[80].mxu0 %v6685_v13 }
 0x12c   : > { %2028 = vmatprep.mubr.bf16.mxu0 %v6767_v23 }
 0x12d   : > { %2182 = vmatmul.mubr.bf16.gmra.mrb[80].mxu1 %v6758_v16 }
 0x12e   : > { %2189 = vmatprep.mubr.bf16.mxu1 %v6705_v28 }
 0x133   : > { %2029 = vmatmul.mubr.bf16.gmra.mrb[84].mxu0 %v6687_v14 }
 0x134   : > { %2036 = vmatprep.mubr.bf16.mxu0 %v6795_v7 }
 0x135   : > { %2190 = vmatmul.mubr.bf16.gmra.mrb[84].mxu1 %v6780_v35 }
 0x136   : > { %2197 = vmatprep.mubr.bf16.mxu1 %v6719_v50 }
 0x13b   : > { %2037 = vmatmul.mubr.bf16.gmra.mrb[88].mxu0 %v6705_v28 }
 0x13c   : > { %2044 = vmatprep.mubr.bf16.mxu0 %v6807_v24 }
 0x13d   : > { %2198 = vmatmul.mubr.bf16.gmra.mrb[88].mxu1 %v6800_v5 }
 0x13e   : > { %2205 = vmatprep.mubr.bf16.mxu1 %v6739_v1 }
 0x143   : > { %2045 = vmatmul.mubr.bf16.gmra.mrb[92].mxu0 %v6719_v50  ;;  %v6993_v50 = vld [vmem:[%s7989_s3] ss:$0 sm:$0xff] }
 0x144   : > { %2052 = vmatprep.mubr.bf16.mxu0 %v6818_v34 }
 0x145   : > { %2206 = vmatmul.mubr.bf16.gmra.mrb[92].mxu1 %v6814_v27 }
 0x146   : > { %2213 = vmatprep.mubr.bf16.mxu1 %v6752_v11 }
 0x14b   : > { %2053 = vmatmul.mubr.bf16.gmra.mrb[96].mxu0 %v6739_v1 }
 0x14c   : > { %2060 = vmatprep.mubr.bf16.mxu0 %v6833_v52 }
 0x14d   : > { %2214 = vmatmul.mubr.bf16.gmra.mrb[96].mxu1 %v6822_v38 }
 0x14e   : > { %2221 = vmatprep.mubr.bf16.mxu1 %v6769_v26 }
 0x153   : > { %2061 = vmatmul.mubr.bf16.gmra.mrb[100].mxu0 %v6752_v11 }
 0x154   : > { %2068 = vmatprep.mubr.bf16.mxu0 %v6839_v40 }
 0x155   : > { %2222 = vmatmul.mubr.bf16.gmra.mrb[100].mxu1 %v6829_v51 }
 0x156   : > { %2229 = vmatprep.mubr.bf16.mxu1 %v6783_v39 }
 0x15b   : > { %2069 = vmatmul.mubr.bf16.gmra.mrb[104].mxu0 %v6769_v26 }
 0x15c   : > { %2076 = vmatprep.mubr.bf16.mxu0 %v6856_v3 }
 0x15d   : > { %2230 = vmatmul.mubr.bf16.gmra.mrb[104].mxu1 %v6849_v61 }
 0x15e   : > { %v5005_v46 = vpop.f32.mrb[0].mxu0  ;;  %2237 = vmatprep.mubr.bf16.mxu1 %v6809_v25 }
 0x15f   : > { %v5006_v63 = vpop.f32.mrb[1].mxu0 }
 0x160   : > { %v5007_v13 = vadd.f32 %v5006_v63, %v5005_v46  ;;  %v5008_v14 = vpop.f32.mrb[2].mxu0  ;;  %v5117_v8 = vpop.f32.mrb[0].mxu1 }
 0x161   : > { %v5009_v21 = vpop.f32.mrb[3].mxu0  ;;  %v5118_v16 = vpop.f32.mrb[1].mxu1 }
 0x162   : > { %v5010_v28 = vadd.f32 %v5009_v21, %v5008_v14  ;;  %v1669_v1 = vadd.f32 %v5007_v13, %v6993_v50  ;;  %v5119_v5 = vadd.f32 %v5118_v16, %v5117_v8  ;;  %v5120_v27 = vpop.f32.mrb[2].mxu1  ;;  %v551_v13 = vor.u32 %v550_v60, %v462_v6 }
 0x163   : > { %2077 = vmatmul.mubr.bf16.gmra.mrb[108].mxu0 %v6783_v39  ;;  %v5121_v51 = vpop.f32.mrb[3].mxu1 }
 0x164   : > { %2084 = vmatprep.mubr.bf16.mxu0 %v6912_v9  ;;  %v1672_v39 = vadd.f32 %v5010_v28, %v6993_v50  ;;  %v5122_v44 = vadd.f32 %v5121_v51, %v5120_v27  ;;  %v7000_v55 = vadd.f32 %v5119_v5, %v1669_v1 }
 0x165   : > { %2238 = vmatmul.mubr.bf16.gmra.mrb[108].mxu1 %v6869_v22 }
 0x166   : > { %v5011_v53 = vpop.f32.mrb[4].mxu0  ;;  %2245 = vmatprep.mubr.bf16.mxu1 %v6841_v59  ;;  %v7005_v62 = vadd.f32 %v5122_v44, %v1672_v39 }
 0x167   : > { %v5012_v11 = vpop.f32.mrb[5].mxu0 }
 0x168   : > { %v5013_v26 = vadd.f32 %v5012_v11, %v5011_v53  ;;  %v5014_v35 = vpop.f32.mrb[6].mxu0  ;;  %v5123_v48 = vpop.f32.mrb[4].mxu1 }
 0x169   : > { %v5015_v38 = vpop.f32.mrb[7].mxu0  ;;  %v5124_v12 = vpop.f32.mrb[5].mxu1 }
 0x16a   : > { %v5016_v61 = vadd.f32 %v5015_v38, %v5014_v35  ;;  %v1677_v29 = vadd.f32 %v5013_v26, %v6993_v50  ;;  %v5125_v17 = vadd.f32 %v5124_v12, %v5123_v48  ;;  %v5126_v22 = vpop.f32.mrb[6].mxu1  ;;  %v7025_v35 = vsel %vm6680_vm5, %v551_v13, 0  ;;  %v6177_v38 = vld [vmem:[#allocation14 + $0x48] sm:$0xff]  }
 0x16b   : > { %2085 = vmatmul.mubr.bf16.gmra.mrb[112].mxu0 %v6809_v25  ;;  %v5127_v42 = vpop.f32.mrb[7].mxu1  ;;  %5463 = vmatprep.subr.bf16.mxu1 %v6177_v38 }
 0x16c   : > { %2092 = vmatprep.mubr.bf16.mxu0 %v6929_v20  ;;  %v1680_v54 = vadd.f32 %v5016_v61, %v6993_v50  ;;  %v5128_v46 = vadd.f32 %v5127_v42, %v5126_v22  ;;  %v7012_v63 = vadd.f32 %v5125_v17, %v1677_v29  ;;  %v6178_v29 = vld [vmem:[#allocation14 + $0x8] sm:$0xff]  }
 0x16d   : > { %2246 = vmatmul.mubr.bf16.gmra.mrb[112].mxu1 %v6890_v41 }
 0x16e   : > { %v5017_v15 = vpop.f32.mrb[8].mxu0  ;;  %2253 = vmatprep.mubr.bf16.mxu1 %v6883_v37  ;;  %v7019_v14 = vadd.f32 %v5128_v46, %v1680_v54  ;;  %5464 = vmatpush3.bf16.msra.mxu1 %v6178_v29 }
 0x16f   : > { %v5018_v43 = vpop.f32.mrb[9].mxu0 }
 0x170   : > { %v5019_v25 = vadd.f32 %v5018_v43, %v5017_v15  ;;  %v5020_v33 = vpop.f32.mrb[10].mxu0  ;;  %v5129_v28 = vpop.f32.mrb[8].mxu1 }
 0x171   : > { %v5021_v36 = vpop.f32.mrb[11].mxu0  ;;  %v5130_v1 = vpop.f32.mrb[9].mxu1 }
 0x172   : > { %v5022_v4 = vadd.f32 %v5021_v36, %v5020_v33  ;;  %v1685_v21 = vadd.f32 %v5019_v25, %v6993_v50  ;;  %v5131_v41 = vadd.f32 %v5130_v1, %v5129_v28  ;;  %v5132_v16 = vpop.f32.mrb[10].mxu1 }
 0x173   : > { %2093 = vmatmul.mubr.bf16.gmra.mrb[116].mxu0 %v6841_v59  ;;  %v5133_v6 = vpop.f32.mrb[11].mxu1 }
 0x174   : > { %2100 = vmatprep.mubr.bf16.mxu0 %v6941_v47  ;;  %v1688_v11 = vadd.f32 %v5022_v4, %v6993_v50  ;;  %v5134_v5 = vadd.f32 %v5133_v6, %v5132_v16  ;;  %v7028_v27 = vadd.f32 %v5131_v41, %v1685_v21 }
 0x175   : > { %2254 = vmatmul.mubr.bf16.gmra.mrb[116].mxu1 %v6916_v19 }
 0x176   : > { %v5023_v30 = vpop.f32.mrb[12].mxu0  ;;  %2261 = vmatprep.mubr.bf16.mxu1 %v6901_v57  ;;  %v7033_v51 = vadd.f32 %v5134_v5, %v1688_v11  ;;  %v6179_v11 = vld [vmem:[#allocation14 + $0x50] sm:$0xff]  }
 0x177   : > { %v5024_v53 = vpop.f32.mrb[13].mxu0  ;;  %5465 = vmatprep.subr.bf16.mxu1 %v6179_v11  ;;  %v6180_v5 = vld [vmem:[#allocation14 + $0x10] sm:$0xff]  }
 0x178   : > { %v5025_v59 = vadd.f32 %v5024_v53, %v5023_v30  ;;  %v5026_v8 = vpop.f32.mrb[14].mxu0  ;;  %v5135_v58 = vpop.f32.mrb[12].mxu1  ;;  %5466 = vmatpush3.bf16.msra.mxu1 %v6180_v5 }
 0x179   : > { %v5027_v26 = vpop.f32.mrb[15].mxu0  ;;  %v5136_v48 = vpop.f32.mrb[13].mxu1 }
 0x17a   : > { %v5028_v39 = vadd.f32 %v5027_v26, %v5026_v8  ;;  %v1693_v44 = vadd.f32 %v5025_v59, %v6993_v50  ;;  %v5137_v12 = vadd.f32 %v5136_v48, %v5135_v58  ;;  %v5138_v19 = vpop.f32.mrb[14].mxu1 }
 0x17b   : > { %2101 = vmatmul.mubr.bf16.gmra.mrb[120].mxu0 %v6883_v37  ;;  %v5139_v33 = vpop.f32.mrb[15].mxu1 }
 0x17c   : > { %2108 = vmatprep.mubr.bf16.mxu0 %v7025_v35  ;;  %v1696_v31 = vadd.f32 %v5028_v39, %v6993_v50  ;;  %v5140_v17 = vadd.f32 %v5139_v33, %v5138_v19  ;;  %v7038_v22 = vadd.f32 %v5137_v12, %v1693_v44 }
 0x17d   : > { %2262 = vmatmul.mubr.bf16.gmra.mrb[120].mxu1 %v6933_v32 }
 0x17e   : > { %v5029_v61 = vpop.f32.mrb[16].mxu0  ;;  %2269 = vmatprep.mubr.bf16.mxu1 %v6412_v0  ;;  %v7043_v36 = vadd.f32 %v5140_v17, %v1696_v31 }
 0x17f   : > { %v5030_v15 = vpop.f32.mrb[17].mxu0 }
 0x180   : > { %v5031_v37 = vadd.f32 %v5030_v15, %v5029_v61  ;;  %v5032_v43 = vpop.f32.mrb[18].mxu0  ;;  %v5141_v4 = vpop.f32.mrb[16].mxu1 }
 0x181   : > { %v5033_v25 = vpop.f32.mrb[19].mxu0  ;;  %v5142_v13 = vpop.f32.mrb[17].mxu1 }
 0x182   : > { %v5034_v54 = vadd.f32 %v5033_v25, %v5032_v43  ;;  %v1701_v42 = vadd.f32 %v5031_v37, %v6993_v50  ;;  %v5143_v28 = vadd.f32 %v5142_v13, %v5141_v4  ;;  %v5144_v53 = vpop.f32.mrb[18].mxu1 }
 0x183   : > { %2109 = vmatmul.mubr.bf16.gmra.mrb[124].mxu0 %v6901_v57  ;;  %v5145_v32 = vpop.f32.mrb[19].mxu1 }
 0x184   : > { %5949 = vmatprep.mubr.bf16.mxu0 %v6717_v45  ;;  %v1704_v57 = vadd.f32 %v5034_v54, %v6993_v50  ;;  %v5146_v45 = vadd.f32 %v5145_v32, %v5144_v53  ;;  %v7048_v8 = vadd.f32 %v5143_v28, %v1701_v42 }
 0x185   : > { %2270 = vmatmul.mubr.bf16.gmra.mrb[124].mxu1 %v6412_v0 }
 0x186   : > { %v5035_v60 = vpop.f32.mrb[20].mxu0  ;;  %v7052_v41 = vadd.f32 %v5146_v45, %v1704_v57  ;;  %3801 = vmatprep.mubr.bf16.mxu1 %v6412_v0  ;;  %v6181_v57 = vld [vmem:[#allocation14 + $0x58] sm:$0xff]  }
 0x187   : > { %v5036_v46 = vpop.f32.mrb[21].mxu0  ;;  %5467 = vmatprep.subr.bf16.mxu1 %v6181_v57  ;;  %v6182_v45 = vld [vmem:[#allocation14 + $0x18] sm:$0xff]  }
 0x188   : > { %v5037_v30 = vadd.f32 %v5036_v46, %v5035_v60  ;;  %v5038_v21 = vpop.f32.mrb[22].mxu0  ;;  %v5147_v6 = vpop.f32.mrb[20].mxu1  ;;  %5468 = vmatpush3.bf16.msra.mxu1 %v6182_v45 }
 0x189   : > { %v5039_v1 = vpop.f32.mrb[23].mxu0  ;;  %v5148_v38 = vpop.f32.mrb[21].mxu1 }
 0x18a   : > { %v5040_v59 = vadd.f32 %v5039_v1, %v5038_v21  ;;  %v1709_v26 = vadd.f32 %v5037_v30, %v6993_v50  ;;  %v5149_v58 = vadd.f32 %v5148_v38, %v5147_v6  ;;  %v5150_v15 = vpop.f32.mrb[22].mxu1 }
 0x18b   : > { %5950 = vmatmul.mubr.bf16.vlgmr.msra.gmra.mrb[128].mxu0 %v6730_v56 }
 0x18c   : > { %5953 = vmatprep.mubr.bf16.mxu0 %v6744_v2  ;;  %v1712_v44 = vadd.f32 %v5040_v59, %v6993_v50  ;;  %v5151_v2 = vpop.f32.mrb[23].mxu1  ;;  %v7058_v43 = vadd.f32 %v5149_v58, %v1709_v26 }
 0x18d   : > { %v5152_v37 = vadd.f32 %v5151_v2, %v5150_v15 }
 0x18e   : > { %v5041_v16 = vpop.f32.mrb[24].mxu0 }
 0x18f   : > { %v5042_v39 = vpop.f32.mrb[25].mxu0  ;;  %v7061_v31 = vadd.f32 %v5152_v37, %v1712_v44 }
 0x190   : > { %v5043_v56 = vadd.f32 %v5042_v39, %v5041_v16  ;;  %v5044_v61 = vpop.f32.mrb[26].mxu0  ;;  %v5153_v25 = vpop.f32.mrb[24].mxu1 }
 0x191   : > { %v5045_v29 = vpop.f32.mrb[27].mxu0  ;;  %v5154_v54 = vpop.f32.mrb[25].mxu1 }
 0x192   : > { %v5046_v48 = vadd.f32 %v5045_v29, %v5044_v61  ;;  %v1717_v19 = vadd.f32 %v5043_v56, %v6993_v50  ;;  %v5155_v4 = vadd.f32 %v5154_v54, %v5153_v25  ;;  %v5156_v46 = vpop.f32.mrb[26].mxu1 }
 0x193   : > { %5954 = vmatmul.mubr.bf16.gmra.mrb[132].mxu0 %v6762_v18  ;;  %v5157_v18 = vpop.f32.mrb[27].mxu1 }
 0x194   : > { %5957 = vmatprep.mubr.bf16.mxu0 %v6767_v23  ;;  %v1720_v42 = vadd.f32 %v5046_v48, %v6993_v50  ;;  %v5158_v21 = vadd.f32 %v5157_v18, %v5156_v46  ;;  %v7066_v23 = vadd.f32 %v5155_v4, %v1717_v19 }
 0x196   : > { %v5047_v12 = vpop.f32.mrb[28].mxu0  ;;  %v7069_v28 = vadd.f32 %v5158_v21, %v1720_v42  ;;  %v6183_v42 = vld [vmem:[#allocation14 + $0x60] sm:$0xff]  }
 0x197   : > { %v5048_v33 = vpop.f32.mrb[29].mxu0  ;;  %5469 = vmatprep.subr.bf16.mxu1 %v6183_v42  ;;  %v6184_v21 = vld [vmem:[#allocation14 + $0x20] sm:$0xff]  }
 0x198   : > { %v5049_v17 = vadd.f32 %v5048_v33, %v5047_v12  ;;  %v5050_v60 = vpop.f32.mrb[30].mxu0  ;;  %v5159_v32 = vpop.f32.mrb[28].mxu1  ;;  %5470 = vmatpush3.bf16.msra.mxu1 %v6184_v21 }
 0x199   : > { %v5051_v13 = vpop.f32.mrb[31].mxu0  ;;  %v5160_v11 = vpop.f32.mrb[29].mxu1 }
 0x19a   : > { %v5052_v30 = vadd.f32 %v5051_v13, %v5050_v60  ;;  %v1725_v1 = vadd.f32 %v5049_v17, %v6993_v50  ;;  %v5162_v39 = vpop.f32.mrb[30].mxu1 }
 0x19b   : > { %5958 = vmatmul.mubr.bf16.gmra.mrb[136].mxu0 %v6795_v7  ;;  %v5161_v7 = vadd.f32 %v5160_v11, %v5159_v32  ;;  %v5163_v38 = vpop.f32.mrb[31].mxu1 }
 0x19c   : > { %5961 = vmatprep.mubr.bf16.mxu0 %v6807_v24  ;;  %v1728_v6 = vadd.f32 %v5052_v30, %v6993_v50  ;;  %v5164_v56 = vadd.f32 %v5163_v38, %v5162_v39 }
 0x19d   : > { %v7074_v61 = vadd.f32 %v5161_v7, %v1725_v1 }
 0x19e   : > { %v5053_v53 = vpop.f32.mrb[32].mxu0  ;;  %v7077_v44 = vadd.f32 %v5164_v56, %v1728_v6 }
 0x19f   : > { %v5054_v59 = vpop.f32.mrb[33].mxu0 }
 0x1a0   : > { %v5055_v16 = vadd.f32 %v5054_v59, %v5053_v53  ;;  %v5056_v26 = vpop.f32.mrb[34].mxu0  ;;  %v5165_v29 = vpop.f32.mrb[32].mxu1 }
 0x1a1   : > { %v5057_v5 = vpop.f32.mrb[35].mxu0  ;;  %v5166_v48 = vpop.f32.mrb[33].mxu1 }
 0x1a2   : > { %v5058_v24 = vadd.f32 %v5057_v5, %v5056_v26  ;;  %v1733_v15 = vadd.f32 %v5055_v16, %v6993_v50  ;;  %v5167_v25 = vadd.f32 %v5166_v48, %v5165_v29  ;;  %v5168_v33 = vpop.f32.mrb[34].mxu1 }
 0x1a3   : > { %5962 = vmatmul.mubr.bf16.gmra.mrb[140].mxu0 %v6818_v34  ;;  %v5169_v34 = vpop.f32.mrb[35].mxu1 }
 0x1a4   : > { %5965 = vmatprep.mubr.bf16.mxu0 %v6833_v52  ;;  %v1736_v19 = vadd.f32 %v5058_v24, %v6993_v50  ;;  %v7081_v60 = vadd.f32 %v5167_v25, %v1733_v15  ;;  %v5170_v52 = vadd.f32 %v5169_v34, %v5168_v33 }
 0x1a6   : > { %v5059_v58 = vpop.f32.mrb[36].mxu0  ;;  %v7085_v4 = vadd.f32 %v5170_v52, %v1736_v19  ;;  %v6185_v19 = vld [vmem:[#allocation14 + $0x68] sm:$0xff]  }
 0x1a7   : > { %v5060_v2 = vpop.f32.mrb[37].mxu0  ;;  %5471 = vmatprep.subr.bf16.mxu1 %v6185_v19  ;;  %v6186_v52 = vld [vmem:[#allocation14 + $0x28] sm:$0xff]  }
 0x1a8   : > { %v5061_v37 = vadd.f32 %v5060_v2, %v5059_v58  ;;  %v5062_v12 = vpop.f32.mrb[38].mxu0  ;;  %v5171_v18 = vpop.f32.mrb[36].mxu1  ;;  %5472 = vmatpush3.bf16.msra.mxu1 %v6186_v52 }
 0x1a9   : > { %v5063_v54 = vpop.f32.mrb[39].mxu0  ;;  %v5172_v57 = vpop.f32.mrb[37].mxu1 }
 0x1aa   : > { %v5064_v17 = vadd.f32 %v5063_v54, %v5062_v12  ;;  %v1741_v13 = vadd.f32 %v5061_v37, %v6993_v50  ;;  %v5173_v59 = vadd.f32 %v5172_v57, %v5171_v18  ;;  %v5174_v45 = vpop.f32.mrb[38].mxu1 }
 0x1ab   : > { %5966 = vmatmul.mubr.bf16.gmra.mrb[144].mxu0 %v6839_v40  ;;  %v5175_v11 = vpop.f32.mrb[39].mxu1 }
 0x1ac   : > { %5969 = vmatprep.mubr.bf16.mxu0 %v6856_v3  ;;  %v1744_v32 = vadd.f32 %v5064_v17, %v6993_v50  ;;  %v7089_v16 = vadd.f32 %v5173_v59, %v1741_v13  ;;  %v5176_v26 = vadd.f32 %v5175_v11, %v5174_v45 }
 0x1ae   : > { %v5065_v46 = vpop.f32.mrb[40].mxu0  ;;  %v7093_v6 = vadd.f32 %v5176_v26, %v1744_v32 }
 0x1af   : > { %v5066_v30 = vpop.f32.mrb[41].mxu0 }
 0x1b0   : > { %v5067_v53 = vadd.f32 %v5066_v30, %v5065_v46  ;;  %v5068_v1 = vpop.f32.mrb[42].mxu0  ;;  %v5177_v5 = vpop.f32.mrb[40].mxu1 }
 0x1b1   : > { %v5069_v40 = vpop.f32.mrb[43].mxu0  ;;  %v5178_v24 = vpop.f32.mrb[41].mxu1 }
 0x1b2   : > { %v5070_v3 = vadd.f32 %v5069_v40, %v5068_v1  ;;  %v1749_v39 = vadd.f32 %v5067_v53, %v6993_v50  ;;  %v5179_v29 = vadd.f32 %v5178_v24, %v5177_v5  ;;  %v5180_v2 = vpop.f32.mrb[42].mxu1 }
 0x1b3   : > { %5970 = vmatmul.mubr.bf16.gmra.mrb[148].mxu0 %v6912_v9  ;;  %v5181_v37 = vpop.f32.mrb[43].mxu1 }
 0x1b4   : > { %5973 = vmatprep.mubr.bf16.mxu0 %v6929_v20  ;;  %v1752_v15 = vadd.f32 %v5070_v3, %v6993_v50  ;;  %v7097_v9 = vadd.f32 %v5179_v29, %v1749_v39  ;;  %v5182_v20 = vadd.f32 %v5181_v37, %v5180_v2  ;;  %v6187_v2 = vld [vmem:[#allocation14 + $0x70] sm:$0xff]  }
 0x1b5   : > { %5473 = vmatprep.subr.bf16.mxu1 %v6187_v2  ;;  %v6192_v2 = vld [vmem:[#allocation14 + $0x88] sm:$0xff]  }
 0x1b6   : > { %v5071_v7 = vpop.f32.mrb[44].mxu0  ;;  %v7101_v25 = vadd.f32 %v5182_v20, %v1752_v15 }
 0x1b7   : > { %v5072_v38 = vpop.f32.mrb[45].mxu0 }
 0x1b8   : > { %v5073_v56 = vadd.f32 %v5072_v38, %v5071_v7  ;;  %v5074_v58 = vpop.f32.mrb[46].mxu0  ;;  %v5183_v34 = vpop.f32.mrb[44].mxu1 }
 0x1b9   : > { %v5075_v48 = vpop.f32.mrb[47].mxu0  ;;  %v5184_v42 = vpop.f32.mrb[45].mxu1 }
 0x1ba   : > { %v5076_v12 = vadd.f32 %v5075_v48, %v5074_v58  ;;  %v1757_v54 = vadd.f32 %v5073_v56, %v6993_v50  ;;  %v5185_v30 = vadd.f32 %v5184_v42, %v5183_v34  ;;  %v5186_v21 = vpop.f32.mrb[46].mxu1 }
 0x1bb   : > { %5974 = vmatmul.mubr.bf16.gmra.mrb[152].mxu0 %v6941_v47  ;;  %v5187_v57 = vpop.f32.mrb[47].mxu1 }
 0x1bc   : > { %5977 = vmatprep.mubr.bf16.mxu0 %v7025_v35  ;;  %v1760_v18 = vadd.f32 %v5076_v12, %v6993_v50  ;;  %v7105_v53 = vadd.f32 %v5185_v30, %v1757_v54  ;;  %v5188_v1 = vadd.f32 %v5187_v57, %v5186_v21 }
 0x1be   : > { %v5077_v33 = vpop.f32.mrb[48].mxu0  ;;  %v7108_v32 = vadd.f32 %v5188_v1, %v1760_v18 }
 0x1bf   : > { %v5078_v17 = vpop.f32.mrb[49].mxu0 }
 0x1c0   : > { %v5079_v46 = vadd.f32 %v5078_v17, %v5077_v33  ;;  %v5080_v13 = vpop.f32.mrb[50].mxu0  ;;  %v5189_v40 = vpop.f32.mrb[48].mxu1  ;;  %v6188_v33 = vld [vmem:[#allocation14 + $0x30] sm:$0xff]  }
 0x1c1   : > { %v5081_v47 = vpop.f32.mrb[51].mxu0  ;;  %v5190_v3 = vpop.f32.mrb[49].mxu1  ;;  %5474 = vmatpush3.bf16.msra.mxu1 %v6188_v33  ;;  %v6195_v33 = vld [vmem:[#allocation14 + $0xd0] sm:$0xff]  }
 0x1c2   : > { %v5082_v35 = vadd.f32 %v5081_v47, %v5080_v13  ;;  %v1765_v45 = vadd.f32 %v5079_v46, %v6993_v50  ;;  %v5191_v5 = vadd.f32 %v5190_v3, %v5189_v40  ;;  %v5192_v38 = vpop.f32.mrb[50].mxu1 }
 0x1c3   : > { %5978 = vmatmul.mubr.bf16.gmra.mrb[156].mxu0 %v6412_v0  ;;  %v5193_v56 = vpop.f32.mrb[51].mxu1 }
 0x1c4   : > { %v1768_v39 = vadd.f32 %v5082_v35, %v6993_v50  ;;  %v7112_v15 = vadd.f32 %v5191_v5, %v1765_v45  ;;  %v5194_v29 = vadd.f32 %v5193_v56, %v5192_v38  ;;  %v6189_v35 = vld [vmem:[#allocation14 + $0xc0] sm:$0xff]   ;;  %v6191_v56 = vld [vmem:[#allocation14 + $0xc8] sm:$0xff]  }
 0x1c5   : > { %5573 = vmatprep.subr.bf16.mxu0 %v6189_v35 }
 0x1c6   : > { %v5083_v59 = vpop.f32.mrb[52].mxu0  ;;  %v7114_v48 = vadd.f32 %v5194_v29, %v1768_v39 }
 0x1c7   : > { %v5084_v11 = vpop.f32.mrb[53].mxu0 }
 0x1c8   : > { %v5085_v26 = vadd.f32 %v5084_v11, %v5083_v59  ;;  %v5086_v7 = vpop.f32.mrb[54].mxu0  ;;  %v5195_v20 = vpop.f32.mrb[52].mxu1  ;;  %v6190_v59 = vld [vmem:[#allocation14 + $0x80] sm:$0xff]  }
 0x1c9   : > { %v5087_v24 = vpop.f32.mrb[55].mxu0  ;;  %v5196_v54 = vpop.f32.mrb[53].mxu1  ;;  %5574 = vmatpush3.bf16.msra.mxu0 %v6190_v59 }
 0x1ca   : > { %v5088_v58 = vadd.f32 %v5087_v24, %v5086_v7  ;;  %v1773_v12 = vadd.f32 %v5085_v26, %v6993_v50  ;;  %v5197_v42 = vadd.f32 %v5196_v54, %v5195_v20  ;;  %v5198_v46 = vpop.f32.mrb[54].mxu1  ;;  %5575 = vmatprep.subr.bf16.mxu0 %v6191_v56  ;;  %v6193_v20 = vld [vmem:[#allocation14 + $0x78] sm:$0xff]   ;;  %v6200_v56 = vld [vmem:[#allocation14 + $0xa0] sm:$0xff]  }
 0x1cb   : > { %v5199_v18 = vpop.f32.mrb[55].mxu1  ;;  %5475 = vmatprep.subr.bf16.mxu1 %v6193_v20 }
 0x1cc   : > { %v1776_v52 = vadd.f32 %v5088_v58, %v6993_v50  ;;  %v7118_v21 = vadd.f32 %v5197_v42, %v1773_v12  ;;  %v5200_v47 = vadd.f32 %v5199_v18, %v5198_v46  ;;  %v6194_v46 = vld [vmem:[#allocation14 + $0x38] sm:$0xff]  }
 0x1cd   : > { %5576 = vmatpush3.bf16.msra.mxu0 %v6192_v2  ;;  %5476 = vmatpush3.bf16.msra.mxu1 %v6194_v46  ;;  %v6203_v46 = vld [vmem:[#allocation14 + $0x140] sm:$0xff]  }
 0x1ce   : > { %v5089_v37 = vpop.f32.mrb[56].mxu0  ;;  %v7120_v57 = vadd.f32 %v5200_v47, %v1776_v52  ;;  %5577 = vmatprep.subr.bf16.mxu0 %v6195_v33  ;;  %v6202_v33 = vld [vmem:[#allocation14 + $0xa8] sm:$0xff]   ;;  %5685 = vmatprep.subr.bf16.mxu1 %v6203_v46 }
 0x1cf   : > { %v5090_v19 = vpop.f32.mrb[57].mxu0 }
 0x1d0   : > { %v5091_v34 = vadd.f32 %v5090_v19, %v5089_v37  ;;  %v5092_v17 = vpop.f32.mrb[58].mxu0  ;;  %v5201_v40 = vpop.f32.mrb[56].mxu1  ;;  %3802 = vmatmul.mubr.bf16.vlgmr.msra.gmra.mrb[128].mxu1 %v6412_v0 }
 0x1d1   : > { %v5093_v13 = vpop.f32.mrb[59].mxu0  ;;  %v5202_v3 = vpop.f32.mrb[57].mxu1 }
 0x1d2   : > { %v5094_v30 = vadd.f32 %v5093_v13, %v5092_v17  ;;  %v1781_v45 = vadd.f32 %v5091_v34, %v6993_v50  ;;  %v5203_v5 = vadd.f32 %v5202_v3, %v5201_v40  ;;  %v5204_v38 = vpop.f32.mrb[58].mxu1  ;;  %v6196_v34 = vld [vmem:[#allocation14 + $0x90] sm:$0xff]  }
 0x1d3   : > { %v5205_v58 = vpop.f32.mrb[59].mxu1  ;;  %5578 = vmatpush3.bf16.msra.mxu0 %v6196_v34 }
 0x1d4   : > { %v1784_v39 = vadd.f32 %v5094_v30, %v6993_v50  ;;  %v7124_v37 = vadd.f32 %v5203_v5, %v1781_v45  ;;  %v5206_v12 = vadd.f32 %v5205_v58, %v5204_v38  ;;  %v6197_v45 = vld [vmem:[#allocation14 + $0xd8] sm:$0xff]   ;;  %v6199_v38 = vld [vmem:[#allocation14 + $0xe0] sm:$0xff]   ;;  %v6201_v58 = vld [vmem:[#allocation14 + $0xe8] sm:$0xff]  }
 0x1d5   : > { %5579 = vmatprep.subr.bf16.mxu0 %v6197_v45  ;;  %v6206_v45 = vld [vmem:[#allocation14 + $0xb0] sm:$0xff]  }
 0x1d6   : > { %v5095_v1 = vpop.f32.mrb[60].mxu0  ;;  %v7126_v19 = vadd.f32 %v5206_v12, %v1784_v39 }
 0x1d7   : > { %v5096_v11 = vpop.f32.mrb[61].mxu0 }
 0x1d8   : > { %v5097_v26 = vadd.f32 %v5096_v11, %v5095_v1  ;;  %v5098_v7 = vpop.f32.mrb[62].mxu0  ;;  %v5207_v52 = vpop.f32.mrb[60].mxu1 }
 0x1d9   : > { %v5099_v24 = vpop.f32.mrb[63].mxu0  ;;  %v5208_v13 = vpop.f32.mrb[61].mxu1 }
 0x1da   : > { %v5100_v29 = vadd.f32 %v5099_v24, %v5098_v7  ;;  %v1789_v17 = vadd.f32 %v5097_v26, %v6993_v50  ;;  %v5209_v35 = vadd.f32 %v5208_v13, %v5207_v52  ;;  %v5210_v1 = vpop.f32.mrb[62].mxu1  ;;  %v6198_v26 = vld [vmem:[#allocation14 + $0x98] sm:$0xff]  }
 0x1db   : > { %v5211_v40 = vpop.f32.mrb[63].mxu1  ;;  %5580 = vmatpush3.bf16.msra.mxu0 %v6198_v26 }
 0x1dc   : > { %v1792_v47 = vadd.f32 %v5100_v29, %v6993_v50  ;;  %v7131_v7 = vadd.f32 %v5209_v35, %v1789_v17  ;;  %v5212_v39 = vadd.f32 %v5211_v40, %v5210_v1  ;;  %5581 = vmatprep.subr.bf16.mxu0 %v6199_v38  ;;  %v6204_v35 = vld [vmem:[#allocation14 + $0xf0] sm:$0xff]   ;;  %v6205_v1 = vld [vmem:[#allocation14 + $0x100] sm:$0xff]   ;;  %v6207_v40 = vld [vmem:[#allocation14 + $0xf8] sm:$0xff]  }
 0x1dd   : > { %5686 = vmatpush3.bf16.msra.mxu1 %v6205_v1 }
 0x1de   : > { %v5229_v54 = vpop.f32.mrb[64].mxu0  ;;  %v7135_v50 = vadd.f32 %v5212_v39, %v1792_v47 }
 0x1df   : > { %v5230_v42 = vpop.f32.mrb[65].mxu0  ;;  %5582 = vmatpush3.bf16.msra.mxu0 %v6200_v56 }
 0x1e0   : > { %v5231_v18 = vadd.f32 %v5230_v42, %v5229_v54  ;;  %v5232_v30 = vpop.f32.mrb[66].mxu0  ;;  %v5341_v29 = vpop.f32.mrb[64].mxu1  ;;  %5583 = vmatprep.subr.bf16.mxu0 %v6201_v58 }
 0x1e1   : > { %v5233_v59 = vpop.f32.mrb[67].mxu0 }
 0x1e2   : > { %v1991_v11 = vadd.f32 %v5231_v18, %v7000_v55  ;;  %v5234_v3 = vadd.f32 %v5233_v59, %v5232_v30  ;;  %v5342_v55 = vpop.f32.mrb[65].mxu1 }
 0x1e3   : > { %v5343_v54 = vadd.f32 %v5342_v55, %v5341_v29  ;;  %v5344_v34 = vpop.f32.mrb[66].mxu1  ;;  %5584 = vmatpush3.bf16.msra.mxu0 %v6202_v33 }
 0x1e4   : > { %v1994_v5 = vadd.f32 %v5234_v3, %v7005_v62  ;;  %v5345_v17 = vpop.f32.mrb[67].mxu1  ;;  %5585 = vmatprep.subr.bf16.mxu0 %v6204_v35 }
 0x1e5   : > { %v5346_v13 = vadd.f32 %v5345_v17, %v5344_v34  ;;  %v7138_v18 = vadd.f32 %v5343_v54, %v1991_v11  ;;  %v6208_v11 = vld [vmem:[#allocation14 + $0xb8] sm:$0xff]  }
 0x1e6   : > { %v5235_v24 = vpop.f32.mrb[68].mxu0 }
 0x1e7   : > { %v5236_v2 = vpop.f32.mrb[69].mxu0  ;;  %v7141_v47 = vadd.f32 %v5346_v13, %v1994_v5  ;;  %5586 = vmatpush3.bf16.msra.mxu0 %v6206_v45 }
 0x1e8   : > { %v5237_v12 = vadd.f32 %v5236_v2, %v5235_v24  ;;  %v5238_v20 = vpop.f32.mrb[70].mxu0  ;;  %v5347_v3 = vpop.f32.mrb[68].mxu1  ;;  %5587 = vmatprep.subr.bf16.mxu0 %v6207_v40 }
 0x1e9   : > { %v5239_v62 = vpop.f32.mrb[71].mxu0 }
 0x1ea   : > { %v1999_v52 = vadd.f32 %v5237_v12, %v7012_v63  ;;  %v5240_v42 = vadd.f32 %v5239_v62, %v5238_v20  ;;  %v5348_v63 = vpop.f32.mrb[69].mxu1 }
 0x1eb   : > { %v5349_v24 = vadd.f32 %v5348_v63, %v5347_v3  ;;  %5588 = vmatpush3.bf16.msra.mxu0 %v6208_v11  ;;  %v6210_v3 = vld [vmem:[#allocation14 + $0x108] sm:$0xff]  }
 0x1ec   : > { %v2002_v30 = vadd.f32 %v5240_v42, %v7019_v14  ;;  %v5350_v14 = vpop.f32.mrb[70].mxu1 }
 0x1ed   : > { %v5351_v5 = vpop.f32.mrb[71].mxu1  ;;  %v7144_v55 = vadd.f32 %v5349_v24, %v1999_v52  ;;  %v6209_v52 = vld [vmem:[#allocation14 + $0x148] sm:$0xff]  }
 0x1ee   : > { %v5241_v59 = vpop.f32.mrb[72].mxu0  ;;  %v5352_v2 = vadd.f32 %v5351_v5, %v5350_v14  ;;  %5687 = vmatprep.subr.bf16.mxu1 %v6209_v52 }
 0x1ef   : > { %v5242_v26 = vpop.f32.mrb[73].mxu0  ;;  %5688 = vmatpush3.bf16.msra.mxu1 %v6210_v3 }
 0x1f0   : > { %v5243_v39 = vadd.f32 %v5242_v26, %v5241_v59  ;;  %v5244_v38 = vpop.f32.mrb[74].mxu0  ;;  %v7147_v20 = vadd.f32 %v5352_v2, %v2002_v30  ;;  %v5353_v54 = vpop.f32.mrb[72].mxu1 }
 0x1f1   : > { %v5245_v56 = vpop.f32.mrb[75].mxu0  ;;  %v5354_v62 = vpop.f32.mrb[73].mxu1 }
 0x1f2   : > { %v2007_v58 = vadd.f32 %v5243_v39, %v7028_v27  ;;  %v5246_v29 = vadd.f32 %v5245_v56, %v5244_v38  ;;  %v5355_v46 = vadd.f32 %v5354_v62, %v5353_v54  ;;  %v5356_v13 = vpop.f32.mrb[74].mxu1 }
 0x1f3   : > { %v5357_v1 = vpop.f32.mrb[75].mxu1 }
 0x1f4   : > { %v2010_v12 = vadd.f32 %v5246_v29, %v7033_v51  ;;  %v5358_v45 = vadd.f32 %v5357_v1, %v5356_v13  ;;  %v7150_v40 = vadd.f32 %v5355_v46, %v2007_v58 }
 0x1f6   : > { %v5247_v33 = vpop.f32.mrb[76].mxu0  ;;  %v7153_v30 = vadd.f32 %v5358_v45, %v2010_v12  ;;  %v6211_v45 = vld [vmem:[#allocation14 + $0x150] sm:$0xff]  }
 0x1f7   : > { %v5248_v34 = vpop.f32.mrb[77].mxu0  ;;  %5689 = vmatprep.subr.bf16.mxu1 %v6211_v45 }
 0x1f8   : > { %v5249_v17 = vadd.f32 %v5248_v34, %v5247_v33  ;;  %v5250_v42 = vpop.f32.mrb[78].mxu0  ;;  %v5359_v63 = vpop.f32.mrb[76].mxu1 }
 0x1f9   : > { %v5251_v35 = vpop.f32.mrb[79].mxu0  ;;  %v5360_v38 = vpop.f32.mrb[77].mxu1 }
 0x1fa   : > { %v2015_v27 = vadd.f32 %v5249_v17, %v7038_v22  ;;  %v5252_v59 = vadd.f32 %v5251_v35, %v5250_v42  ;;  %v5361_v14 = vadd.f32 %v5360_v38, %v5359_v63  ;;  %v5362_v22 = vpop.f32.mrb[78].mxu1 }
 0x1fb   : > { %v5363_v5 = vpop.f32.mrb[79].mxu1 }
 0x1fc   : > { %v2018_v51 = vadd.f32 %v5252_v59, %v7043_v36  ;;  %v5364_v2 = vadd.f32 %v5363_v5, %v5362_v22  ;;  %v7156_v36 = vadd.f32 %v5361_v14, %v2015_v27 }
 0x1fe   : > { %v5253_v26 = vpop.f32.mrb[80].mxu0  ;;  %v7159_v33 = vadd.f32 %v5364_v2, %v2018_v51 }
 0x1ff   : > { %v5254_v39 = vpop.f32.mrb[81].mxu0 }
 0x200   : > { %v5255_v11 = vadd.f32 %v5254_v39, %v5253_v26  ;;  %v5256_v24 = vpop.f32.mrb[82].mxu0  ;;  %v5365_v34 = vpop.f32.mrb[80].mxu1  ;;  %v6212_v26 = vld [vmem:[#allocation14 + $0x110] sm:$0xff]  }
 0x201   : > { %v5257_v56 = vpop.f32.mrb[83].mxu0  ;;  %v5366_v17 = vpop.f32.mrb[81].mxu1  ;;  %5690 = vmatpush3.bf16.msra.mxu1 %v6212_v26 }
 0x202   : > { %v2023_v58 = vadd.f32 %v5255_v11, %v7048_v8  ;;  %v5258_v29 = vadd.f32 %v5257_v56, %v5256_v24  ;;  %v5367_v13 = vadd.f32 %v5366_v17, %v5365_v34  ;;  %v5368_v35 = vpop.f32.mrb[82].mxu1 }
 0x203   : > { %v5369_v59 = vpop.f32.mrb[83].mxu1 }
 0x204   : > { %v2026_v12 = vadd.f32 %v5258_v29, %v7052_v41  ;;  %v5370_v27 = vadd.f32 %v5369_v59, %v5368_v35  ;;  %v7162_v3 = vadd.f32 %v5367_v13, %v2023_v58 }
 0x206   : > { %v5259_v54 = vpop.f32.mrb[84].mxu0  ;;  %v7165_v51 = vadd.f32 %v5370_v27, %v2026_v12  ;;  %v6213_v27 = vld [vmem:[#allocation14 + $0x158] sm:$0xff]  }
 0x207   : > { %v5260_v62 = vpop.f32.mrb[85].mxu0  ;;  %5691 = vmatprep.subr.bf16.mxu1 %v6213_v27 }
 0x208   : > { %v5261_v42 = vadd.f32 %v5260_v62, %v5259_v54  ;;  %v5262_v46 = vpop.f32.mrb[86].mxu0  ;;  %v5371_v39 = vpop.f32.mrb[84].mxu1 }
 0x209   : > { %v5263_v1 = vpop.f32.mrb[87].mxu0  ;;  %v5372_v11 = vpop.f32.mrb[85].mxu1 }
 0x20a   : > { %v2031_v8 = vadd.f32 %v5261_v42, %v7058_v43  ;;  %v5264_v52 = vadd.f32 %v5263_v1, %v5262_v46  ;;  %v5373_v22 = vadd.f32 %v5372_v11, %v5371_v39  ;;  %v5374_v43 = vpop.f32.mrb[86].mxu1 }
 0x20b   : > { %v5375_v5 = vpop.f32.mrb[87].mxu1 }
 0x20c   : > { %v2034_v41 = vadd.f32 %v5264_v52, %v7061_v31  ;;  %v5376_v2 = vadd.f32 %v5375_v5, %v5374_v43  ;;  %v7168_v31 = vadd.f32 %v5373_v22, %v2031_v8  ;;  %v6215_v5 = vld [vmem:[#allocation14 + $0x1c0] sm:$0xff]  }
 0x20d   : > { %5797 = vmatprep.subr.bf16.mxu0 %v6215_v5 }
 0x20e   : > { %v5265_v63 = vpop.f32.mrb[88].mxu0  ;;  %v7171_v54 = vadd.f32 %v5376_v2, %v2034_v41 }
 0x20f   : > { %v5266_v38 = vpop.f32.mrb[89].mxu0 }
 0x210   : > { %v5267_v24 = vadd.f32 %v5266_v38, %v5265_v63  ;;  %v5268_v14 = vpop.f32.mrb[90].mxu0  ;;  %v5377_v62 = vpop.f32.mrb[88].mxu1  ;;  %v6214_v63 = vld [vmem:[#allocation14 + $0x118] sm:$0xff]  }
 0x211   : > { %v5269_v56 = vpop.f32.mrb[91].mxu0  ;;  %v5378_v42 = vpop.f32.mrb[89].mxu1  ;;  %5692 = vmatpush3.bf16.msra.mxu1 %v6214_v63 }
 0x212   : > { %v2039_v58 = vadd.f32 %v5267_v24, %v7066_v23  ;;  %v5270_v29 = vadd.f32 %v5269_v56, %v5268_v14  ;;  %v5379_v35 = vadd.f32 %v5378_v42, %v5377_v62  ;;  %v5380_v1 = vpop.f32.mrb[90].mxu1 }
 0x213   : > { %v5381_v52 = vpop.f32.mrb[91].mxu1 }
 0x214   : > { %v2042_v12 = vadd.f32 %v5270_v29, %v7069_v28  ;;  %v5382_v8 = vadd.f32 %v5381_v52, %v5380_v1  ;;  %v7174_v26 = vadd.f32 %v5379_v35, %v2039_v58  ;;  %v6218_v52 = vld [vmem:[#allocation14 + $0x120] sm:$0xff]  }
 0x216   : > { %v5271_v34 = vpop.f32.mrb[92].mxu0  ;;  %v7177_v41 = vadd.f32 %v5382_v8, %v2042_v12 }
 0x217   : > { %v5272_v17 = vpop.f32.mrb[93].mxu0 }
 0x218   : > { %v5273_v46 = vadd.f32 %v5272_v17, %v5271_v34  ;;  %v5274_v13 = vpop.f32.mrb[94].mxu0  ;;  %v5383_v38 = vpop.f32.mrb[92].mxu1 }
 0x219   : > { %v5275_v59 = vpop.f32.mrb[95].mxu0  ;;  %v5384_v24 = vpop.f32.mrb[93].mxu1 }
 0x21a   : > { %v2047_v23 = vadd.f32 %v5273_v46, %v7074_v61  ;;  %v5276_v45 = vadd.f32 %v5275_v59, %v5274_v13  ;;  %v5385_v43 = vadd.f32 %v5384_v24, %v5383_v38  ;;  %v5386_v61 = vpop.f32.mrb[94].mxu1  ;;  %v6217_v13 = vld [vmem:[#allocation14 + $0x160] sm:$0xff]  }
 0x21b   : > { %v5387_v29 = vpop.f32.mrb[95].mxu1  ;;  %5693 = vmatprep.subr.bf16.mxu1 %v6217_v13 }
 0x21c   : > { %v2050_v28 = vadd.f32 %v5276_v45, %v7077_v44  ;;  %v5388_v44 = vadd.f32 %v5387_v29, %v5386_v61  ;;  %v7180_v34 = vadd.f32 %v5385_v43, %v2047_v23  ;;  %5694 = vmatpush3.bf16.msra.mxu1 %v6218_v52 }
 0x21e   : > { %v5277_v39 = vpop.f32.mrb[96].mxu0  ;;  %v7183_v62 = vadd.f32 %v5388_v44, %v2050_v28 }
 0x21f   : > { %v5278_v11 = vpop.f32.mrb[97].mxu0 }
 0x220   : > { %v5279_v14 = vadd.f32 %v5278_v11, %v5277_v39  ;;  %v5280_v22 = vpop.f32.mrb[98].mxu0  ;;  %v5389_v42 = vpop.f32.mrb[96].mxu1 }
 0x221   : > { %v5281_v56 = vpop.f32.mrb[99].mxu0  ;;  %v5390_v35 = vpop.f32.mrb[97].mxu1 }
 0x222   : > { %v2055_v58 = vadd.f32 %v5279_v14, %v7081_v60  ;;  %v5282_v2 = vadd.f32 %v5281_v56, %v5280_v22  ;;  %v5391_v45 = vadd.f32 %v5390_v35, %v5389_v42  ;;  %v5392_v27 = vpop.f32.mrb[98].mxu1  ;;  %v6221_v35 = vld [vmem:[#allocation14 + $0x168] sm:$0xff]  }
 0x223   : > { %v5393_v8 = vpop.f32.mrb[99].mxu1  ;;  %5695 = vmatprep.subr.bf16.mxu1 %v6221_v35 }
 0x224   : > { %v2058_v12 = vadd.f32 %v5282_v2, %v7085_v4  ;;  %v5394_v4 = vadd.f32 %v5393_v8, %v5392_v27  ;;  %v7186_v28 = vadd.f32 %v5391_v45, %v2055_v58  ;;  %v6222_v45 = vld [vmem:[#allocation14 + $0x128] sm:$0xff]  }
 0x225   : > { %5696 = vmatpush3.bf16.msra.mxu1 %v6222_v45 }
 0x226   : > { %v5283_v17 = vpop.f32.mrb[100].mxu0  ;;  %v7189_v38 = vadd.f32 %v5394_v4, %v2058_v12 }
 0x227   : > { %v5284_v46 = vpop.f32.mrb[101].mxu0 }
 0x228   : > { %v5285_v1 = vadd.f32 %v5284_v46, %v5283_v17  ;;  %v5286_v59 = vpop.f32.mrb[102].mxu0  ;;  %v5395_v24 = vpop.f32.mrb[100].mxu1 }
 0x229   : > { %v5287_v60 = vpop.f32.mrb[103].mxu0  ;;  %v5396_v22 = vpop.f32.mrb[101].mxu1 }
 0x22a   : > { %v2063_v23 = vadd.f32 %v5285_v1, %v7089_v16  ;;  %v5288_v63 = vadd.f32 %v5287_v60, %v5286_v59  ;;  %v5397_v56 = vadd.f32 %v5396_v22, %v5395_v24  ;;  %v5398_v5 = vpop.f32.mrb[102].mxu1 }
 0x22b   : > { %v5399_v2 = vpop.f32.mrb[103].mxu1 }
 0x22c   : > { %v2066_v39 = vadd.f32 %v5288_v63, %v7093_v6  ;;  %v5400_v17 = vadd.f32 %v5399_v2, %v5398_v5  ;;  %v7192_v58 = vadd.f32 %v5397_v56, %v2063_v23 }
 0x22e   : > { %v5289_v11 = vpop.f32.mrb[104].mxu0  ;;  %v7195_v12 = vadd.f32 %v5400_v17, %v2066_v39 }
 0x22f   : > { %v5290_v14 = vpop.f32.mrb[105].mxu0 }
 0x230   : > { %v5291_v43 = vadd.f32 %v5290_v14, %v5289_v11  ;;  %v5292_v61 = vpop.f32.mrb[106].mxu0  ;;  %v5401_v46 = vpop.f32.mrb[104].mxu1 }
 0x231   : > { %v5293_v29 = vpop.f32.mrb[107].mxu0  ;;  %v5402_v1 = vpop.f32.mrb[105].mxu1 }
 0x232   : > { %v2071_v16 = vadd.f32 %v5291_v43, %v7097_v9  ;;  %v5294_v44 = vadd.f32 %v5293_v29, %v5292_v61  ;;  %v5403_v27 = vadd.f32 %v5402_v1, %v5401_v46  ;;  %v5404_v60 = vpop.f32.mrb[106].mxu1  ;;  %v6225_v1 = vld [vmem:[#allocation14 + $0x170] sm:$0xff]  }
 0x233   : > { %v5405_v9 = vpop.f32.mrb[107].mxu1  ;;  %5697 = vmatprep.subr.bf16.mxu1 %v6225_v1 }
 0x234   : > { %v2074_v6 = vadd.f32 %v5294_v44, %v7101_v25  ;;  %v5406_v25 = vadd.f32 %v5405_v9, %v5404_v60  ;;  %v7198_v4 = vadd.f32 %v5403_v27, %v2071_v16  ;;  %v6226_v27 = vld [vmem:[#allocation14 + $0x130] sm:$0xff]  }
 0x235   : > { %5698 = vmatpush3.bf16.msra.mxu1 %v6226_v27 }
 0x236   : > { %v5295_v42 = vpop.f32.mrb[108].mxu0  ;;  %v7201_v11 = vadd.f32 %v5406_v25, %v2074_v6 }
 0x237   : > { %v5296_v13 = vpop.f32.mrb[109].mxu0 }
 0x238   : > { %v5297_v59 = vadd.f32 %v5296_v13, %v5295_v42  ;;  %v5298_v52 = vpop.f32.mrb[110].mxu0  ;;  %v5407_v14 = vpop.f32.mrb[108].mxu1 }
 0x239   : > { %v5299_v8 = vpop.f32.mrb[111].mxu0  ;;  %v5408_v43 = vpop.f32.mrb[109].mxu1 }
 0x23a   : > { %v2079_v23 = vadd.f32 %v5297_v59, %v7105_v53  ;;  %v5300_v63 = vadd.f32 %v5299_v8, %v5298_v52  ;;  %v5409_v5 = vadd.f32 %v5408_v43, %v5407_v14  ;;  %v5410_v29 = vpop.f32.mrb[110].mxu1 }
 0x23b   : > { %v5411_v44 = vpop.f32.mrb[111].mxu1 }
 0x23c   : > { %v2082_v39 = vadd.f32 %v5300_v63, %v7108_v32  ;;  %v5412_v42 = vadd.f32 %v5411_v44, %v5410_v29  ;;  %v7204_v16 = vadd.f32 %v5409_v5, %v2079_v23 }
 0x23e   : > { %v5301_v24 = vpop.f32.mrb[112].mxu0  ;;  %v7207_v6 = vadd.f32 %v5412_v42, %v2082_v39 }
 0x23f   : > { %v5302_v22 = vpop.f32.mrb[113].mxu0 }
 0x240   : > { %v5303_v61 = vadd.f32 %v5302_v22, %v5301_v24  ;;  %v5304_v56 = vpop.f32.mrb[114].mxu0  ;;  %v5413_v13 = vpop.f32.mrb[112].mxu1 }
 0x241   : > { %v5305_v2 = vpop.f32.mrb[115].mxu0  ;;  %v5414_v59 = vpop.f32.mrb[113].mxu1 }
 0x242   : > { %v2087_v53 = vadd.f32 %v5303_v61, %v7112_v15  ;;  %v5306_v17 = vadd.f32 %v5305_v2, %v5304_v56  ;;  %v5415_v60 = vadd.f32 %v5414_v59, %v5413_v13  ;;  %v5416_v8 = vpop.f32.mrb[114].mxu1  ;;  %v6229_v59 = vld [vmem:[#allocation14 + $0x178] sm:$0xff]  }
 0x243   : > { %v5417_v15 = vpop.f32.mrb[115].mxu1  ;;  %5699 = vmatprep.subr.bf16.mxu1 %v6229_v59 }
 0x244   : > { %v2090_v32 = vadd.f32 %v5306_v17, %v7114_v48  ;;  %v5418_v48 = vadd.f32 %v5417_v15, %v5416_v8  ;;  %v7210_v25 = vadd.f32 %v5415_v60, %v2087_v53  ;;  %v6230_v60 = vld [vmem:[#allocation14 + $0x138] sm:$0xff]  }
 0x245   : > { %5700 = vmatpush3.bf16.msra.mxu1 %v6230_v60 }
 0x246   : > { %v5307_v46 = vpop.f32.mrb[116].mxu0  ;;  %v7213_v24 = vadd.f32 %v5418_v48, %v2090_v32 }
 0x247   : > { %v5308_v35 = vpop.f32.mrb[117].mxu0 }
 0x248   : > { %v5309_v52 = vadd.f32 %v5308_v35, %v5307_v46  ;;  %v5310_v45 = vpop.f32.mrb[118].mxu0  ;;  %v5419_v22 = vpop.f32.mrb[116].mxu1 }
 0x249   : > { %v5311_v9 = vpop.f32.mrb[119].mxu0  ;;  %v5420_v61 = vpop.f32.mrb[117].mxu1 }
 0x24a   : > { %v2095_v23 = vadd.f32 %v5309_v52, %v7118_v21  ;;  %v5312_v63 = vadd.f32 %v5311_v9, %v5310_v45  ;;  %v5421_v29 = vadd.f32 %v5420_v61, %v5419_v22  ;;  %v5422_v2 = vpop.f32.mrb[118].mxu1 }
 0x24b   : > { %v5423_v17 = vpop.f32.mrb[119].mxu1 }
 0x24c   : > { %v2098_v39 = vadd.f32 %v5312_v63, %v7120_v57  ;;  %v5424_v46 = vadd.f32 %v5423_v17, %v5422_v2  ;;  %v7216_v53 = vadd.f32 %v5421_v29, %v2095_v23 }
 0x24e   : > { %v5313_v14 = vpop.f32.mrb[120].mxu0  ;;  %v7219_v32 = vadd.f32 %v5424_v46, %v2098_v39 }
 0x24f   : > { %v5314_v43 = vpop.f32.mrb[121].mxu0 }
 0x250   : > { %v5315_v56 = vadd.f32 %v5314_v43, %v5313_v14  ;;  %v5316_v5 = vpop.f32.mrb[122].mxu0  ;;  %v5425_v35 = vpop.f32.mrb[120].mxu1 }
 0x251   : > { %v5317_v44 = vpop.f32.mrb[123].mxu0  ;;  %v5426_v52 = vpop.f32.mrb[121].mxu1 }
 0x252   : > { %v2103_v21 = vadd.f32 %v5315_v56, %v7124_v37  ;;  %v5318_v42 = vadd.f32 %v5317_v44, %v5316_v5  ;;  %v5427_v8 = vadd.f32 %v5426_v52, %v5425_v35  ;;  %v5428_v9 = vpop.f32.mrb[122].mxu1 }
 0x253   : > { %v5429_v37 = vpop.f32.mrb[123].mxu1 }
 0x254   : > { %v2106_v57 = vadd.f32 %v5318_v42, %v7126_v19  ;;  %v5430_v19 = vadd.f32 %v5429_v37, %v5428_v9  ;;  %v7222_v48 = vadd.f32 %v5427_v8, %v2103_v21 }
 0x256   : > { %v5319_v13 = vpop.f32.mrb[124].mxu0  ;;  %v7225_v14 = vadd.f32 %v5430_v19, %v2106_v57 }
 0x257   : > { %v5320_v1 = vpop.f32.mrb[125].mxu0 }
 0x258   : > { %v5321_v45 = vadd.f32 %v5320_v1, %v5319_v13  ;;  %v5322_v27 = vpop.f32.mrb[126].mxu0  ;;  %v5431_v43 = vpop.f32.mrb[124].mxu1 }
 0x259   : > { %v5323_v15 = vpop.f32.mrb[127].mxu0  ;;  %v5432_v5 = vpop.f32.mrb[125].mxu1 }
 0x25a   : > { %v2111_v23 = vadd.f32 %v5321_v45, %v7131_v7  ;;  %v5324_v63 = vadd.f32 %v5323_v15, %v5322_v27  ;;  %v5433_v44 = vadd.f32 %v5432_v5, %v5431_v43  ;;  %v5434_v7 = vpop.f32.mrb[126].mxu1 }
 0x25b   : > { %v5435_v21 = vpop.f32.mrb[127].mxu1 }
 0x25c   : > { %v2114_v39 = vadd.f32 %v5324_v63, %v7135_v50  ;;  %v5436_v50 = vadd.f32 %v5435_v21, %v5434_v7  ;;  %v7231_v35 = vadd.f32 %v5433_v44, %v2111_v23 }
 0x25e   : > { %v5951_v22 = vpop.f32.mrb[128].mxu0  ;;  %v7235_v52 = vadd.f32 %v5436_v50, %v2114_v39 }
 0x25f   : > { %v2321_v61 = vadd.f32 %v5951_v22, %v7144_v55  ;;  %v2312_v56 = vpop.f32.mrb[129].mxu0 }
 0x260   : > { %v2313_v29 = vadd.f32 %v2312_v56, %v7138_v18  ;;  %v5952_v2 = vpop.f32.mrb[130].mxu0 }
 0x261   : > { %v2324_v17 = vadd.f32 %v5952_v2, %v7147_v20  ;;  %v2315_v42 = vpop.f32.mrb[131].mxu0  ;;  %v2441_v57 = vmax.f32 %v2321_v61, 0.0  ;;  %v6216_v2 = vld [vmem:[#allocation14 + $0x180] sm:$0xff]  }
 0x262   : > { %v2316_v46 = vadd.f32 %v2315_v42, %v7141_v47  ;;  %v2439_v1 = vmax.f32 %v2313_v29, 0.0  ;;  %v7241_v47 = vld [vmem:[#allocation14 + $0x200] sm:$0xff]  }
 0x263   : > { %v2442_v13 = vmax.f32 %v2324_v17, 0.0  ;;  %5981 = vmatprep.subr.bf16.mxu1 %v7241_v47  ;;  %v6219_v17 = vld [vmem:[#allocation14 + $0x1c8] sm:$0xff]  }
 0x264   : > { %v2440_v55 = vmax.f32 %v2316_v46, 0.0 }
 0x265   : > { %v7233_v59 = vpack.c.bf16 %v2442_v13, %v2441_v57 }
 0x266   : > { %v7237_v18 = vpack.c.bf16 %v2440_v55, %v2439_v1  ;;  %v5955_v45 = vpop.f32.mrb[132].mxu0 }
 0x267   : > { %v2337_v20 = vadd.f32 %v5955_v45, %v7156_v36  ;;  %v2328_v27 = vpop.f32.mrb[133].mxu0  ;;  %v2513_v60 = vshrl.u32 %v7233_v59, 16  ;;  %v6220_v45 = vld [vmem:[#allocation14 + $0x188] sm:$0xff]  }
 0x268   : > { %v2329_v8 = vadd.f32 %v2328_v27, %v7150_v40  ;;  %v5956_v9 = vpop.f32.mrb[134].mxu0  ;;  %3809 = vmatprep.mubr.bf16.mxu1 %v7237_v18  ;;  %v2506_v15 = vshrl.u32 %v7237_v18, 16  ;;  %v2509_v39 = vshll.u32 %v7237_v18, 16  ;;  %v2516_v40 = vshll.u32 %v7233_v59, 16 }
 0x269   : > { %v2340_v37 = vadd.f32 %v5956_v9, %v7159_v33  ;;  %v2331_v23 = vpop.f32.mrb[135].mxu0  ;;  %v2515_v63 = vrot.slane %v2513_v60, 7  ;;  %v2445_v22 = vmax.f32 %v2337_v20, 0.0 }
 0x26a   : > { %v2332_v36 = vadd.f32 %v2331_v23, %v7153_v30  ;;  %v2508_v19 = vrot.slane %v2506_v15, 7  ;;  %v2443_v61 = vmax.f32 %v2329_v8, 0.0  ;;  %v2667_v46 = vrot.slane %v2509_v39, 1  ;;  %v6223_v8 = vld [vmem:[#allocation14 + $0x1d0] sm:$0xff]  }
 0x26b   : > { %v2446_v43 = vmax.f32 %v2340_v37, 0.0  ;;  %v2518_v29 = vor.u32 %v2516_v40, %v2515_v63 }
 0x26c   : > { %v2444_v56 = vmax.f32 %v2332_v36, 0.0  ;;  %v2511_v5 = vor.u32 %v2509_v39, %v2508_v19  ;;  %v2668_v23 = vor.u32 %v2667_v46, %v2506_v15  ;;  %v6231_v46 = vld [vmem:[#allocation14 + $0x1e0] sm:$0xff]  }
 0x26d   : > { %v7253_v33 = vpack.c.bf16 %v2446_v43, %v2445_v22  ;;  %v7265_v13 = vsel %vm6652_vm2, 0, %v2518_v29  ;;  %v6224_v22 = vld [vmem:[#allocation14 + $0x190] sm:$0xff]   ;;  %v2669_v29 = vrot.slane %v2516_v40, 1  ;;  %v6228_v40 = vld [vmem:[#allocation14 + $0x198] sm:$0xff]  }
 0x26e   : > { %v7255_v44 = vpack.c.bf16 %v2444_v56, %v2443_v61  ;;  %v5959_v7 = vpop.f32.mrb[136].mxu0  ;;  %v2633_v30 = vsel %vm6652_vm2, 0, %v2511_v5  ;;  %v6227_v61 = vld [vmem:[#allocation14 + $0x1d8] sm:$0xff]   ;;  %v7283_v15 = vsel %vm6680_vm5, %v2668_v23, 0 }
 0x26f   : > { %v2353_v42 = vadd.f32 %v5959_v7, %v7168_v31  ;;  %v2344_v21 = vpop.f32.mrb[137].mxu0  ;;  %3810 = vmatmul.mubr.bf16.gmra.mrb[132].mxu1 %v2633_v30  ;;  %3962 = vmatprep.mubr.bf16.mxu0 %v2633_v30  ;;  %v2527_v19 = vshrl.u32 %v7253_v33, 16 }
 0x270   : > { %v2345_v50 = vadd.f32 %v2344_v21, %v7162_v3  ;;  %v5960_v57 = vpop.f32.mrb[138].mxu0  ;;  %3817 = vmatprep.mubr.bf16.mxu1 %v7233_v59  ;;  %3963 = vmatmul.mubr.bf16.vlgmr.msra.gmra.mrb[160].mxu0 %v6412_v0  ;;  %v2520_v1 = vshrl.u32 %v7255_v44, 16  ;;  %v2523_v27 = vshll.u32 %v7255_v44, 16  ;;  %v2530_v21 = vshll.u32 %v7253_v33, 16 }
 0x271   : > { %v2356_v55 = vadd.f32 %v5960_v57, %v7171_v54  ;;  %v2347_v31 = vpop.f32.mrb[139].mxu0  ;;  %3970 = vmatprep.mubr.bf16.mxu0 %v7265_v13  ;;  %5798 = vmatpush3.bf16.msra.mxu0 %v6216_v2  ;;  %v2449_v9 = vmax.f32 %v2353_v42, 0.0 }
 0x272   : > { %v2348_v3 = vadd.f32 %v2347_v31, %v7165_v51  ;;  %v2522_v20 = vrot.slane %v2520_v1, 7  ;;  %5799 = vmatprep.subr.bf16.mxu0 %v6219_v17  ;;  %v2447_v63 = vmax.f32 %v2345_v50, 0.0 }
 0x273   : > { %v2450_v37 = vmax.f32 %v2356_v55, 0.0  ;;  %v2670_v55 = vor.u32 %v2669_v29, %v2513_v60  ;;  %v6236_v29 = vld [vmem:[#allocation14 + $0x1f0] sm:$0xff]  }
 0x274   : > { %v2448_v36 = vmax.f32 %v2348_v3, 0.0  ;;  %v2525_v54 = vor.u32 %v2523_v27, %v2522_v20 }
 0x275   : > { %v7275_v39 = vpack.c.bf16 %v2450_v37, %v2449_v9  ;;  %5800 = vmatpush3.bf16.msra.mxu0 %v6220_v45  ;;  %v6233_v37 = vld [vmem:[#allocation14 + $0x1e8] sm:$0xff]   ;;  %v7309_v60 = vsel %vm6680_vm5, %v2670_v55, 0 }
 0x276   : > { %v7277_v51 = vpack.c.bf16 %v2448_v36, %v2447_v63  ;;  %v5963_v43 = vpop.f32.mrb[140].mxu0  ;;  %5801 = vmatprep.subr.bf16.mxu0 %v6223_v8  ;;  %v7290_v30 = vsel %vm6652_vm2, 0, %v2525_v54  ;;  %v6232_v8 = vld [vmem:[#allocation14 + $0x1a0] sm:$0xff]   ;;  %v2671_v36 = vrot.slane %v2523_v27, 1  ;;  %v6234_v27 = vld [vmem:[#allocation14 + $0x1a8] sm:$0xff]  }
 0x277   : > { %v2369_v56 = vadd.f32 %v5963_v43, %v7180_v34  ;;  %v2360_v5 = vpop.f32.mrb[141].mxu0  ;;  %3818 = vmatmul.mubr.bf16.gmra.mrb[136].mxu1 %v7265_v13  ;;  %v2529_v34 = vrot.slane %v2527_v19, 7 }
 0x278   : > { %v2361_v2 = vadd.f32 %v2360_v5, %v7174_v26  ;;  %v5964_v7 = vpop.f32.mrb[142].mxu0  ;;  %3825 = vmatprep.mubr.bf16.mxu1 %v7255_v44  ;;  %3971 = vmatmul.mubr.bf16.gmra.mrb[164].mxu0 %v7283_v15  ;;  %v2537_v5 = vshll.u32 %v7277_v51, 16 }
 0x279   : > { %v2372_v17 = vadd.f32 %v5964_v7, %v7183_v62  ;;  %v2363_v42 = vpop.f32.mrb[143].mxu0  ;;  %3978 = vmatprep.mubr.bf16.mxu0 %v7290_v30  ;;  %5802 = vmatpush3.bf16.msra.mxu0 %v6224_v22  ;;  %v2453_v50 = vmax.f32 %v2369_v56, 0.0  ;;  %v2532_v3 = vor.u32 %v2530_v21, %v2529_v34  ;;  %v2534_v62 = vshrl.u32 %v7277_v51, 16 }
 0x27a   : > { %v2364_v26 = vadd.f32 %v2363_v42, %v7177_v41  ;;  %5803 = vmatprep.subr.bf16.mxu0 %v6227_v61  ;;  %v2451_v31 = vmax.f32 %v2361_v2, 0.0  ;;  %v2672_v34 = vor.u32 %v2671_v36, %v2520_v1 }
 0x27b   : > { %v2454_v57 = vmax.f32 %v2372_v17, 0.0  ;;  %v7316_v43 = vsel %vm6652_vm2, 0, %v2532_v3 }
 0x27c   : > { %v2452_v45 = vmax.f32 %v2364_v26, 0.0  ;;  %v7335_v1 = vsel %vm6680_vm5, %v2672_v34, 0 }
 0x27d   : > { %v7301_v20 = vpack.c.bf16 %v2454_v57, %v2453_v50  ;;  %5804 = vmatpush3.bf16.msra.mxu0 %v6228_v40  ;;  %v6238_v57 = vld [vmem:[#allocation14 + $0x1f8] sm:$0xff]  }
 0x27e   : > { %v7303_v9 = vpack.c.bf16 %v2452_v45, %v2451_v31  ;;  %v5967_v41 = vpop.f32.mrb[144].mxu0  ;;  %5805 = vmatprep.subr.bf16.mxu0 %v6231_v46  ;;  %v6237_v46 = vld [vmem:[#allocation14 + $0x1b0] sm:$0xff]   ;;  %v2673_v45 = vrot.slane %v2530_v21, 1  ;;  %v6239_v21 = vld [vmem:[#allocation14 + $0x1b8] sm:$0xff]  }
 0x27f   : > { %v2385_v23 = vadd.f32 %v5967_v41, %v7192_v58  ;;  %v2376_v63 = vpop.f32.mrb[145].mxu0  ;;  %3826 = vmatmul.mubr.bf16.gmra.mrb[140].mxu1 %v7290_v30  ;;  %v2536_v58 = vrot.slane %v2534_v62, 7 }
 0x280   : > { %v2377_v54 = vadd.f32 %v2376_v63, %v7186_v28  ;;  %v5968_v22 = vpop.f32.mrb[146].mxu0  ;;  %3833 = vmatprep.mubr.bf16.mxu1 %v7253_v33  ;;  %3979 = vmatmul.mubr.bf16.gmra.mrb[168].mxu0 %v7309_v60  ;;  %v2544_v63 = vshll.u32 %v7275_v39, 16 }
 0x281   : > { %v2388_v61 = vadd.f32 %v5968_v22, %v7195_v12  ;;  %v2379_v56 = vpop.f32.mrb[147].mxu0  ;;  %3986 = vmatprep.mubr.bf16.mxu0 %v7316_v43  ;;  %5806 = vmatpush3.bf16.msra.mxu0 %v6232_v8  ;;  %v2457_v2 = vmax.f32 %v2385_v23, 0.0  ;;  %v2539_v40 = vor.u32 %v2537_v5, %v2536_v58  ;;  %v2541_v12 = vshrl.u32 %v7275_v39, 16 }
 0x282   : > { %v2380_v28 = vadd.f32 %v2379_v56, %v7189_v38  ;;  %5807 = vmatprep.subr.bf16.mxu0 %v6233_v37  ;;  %v2455_v17 = vmax.f32 %v2377_v54, 0.0  ;;  %v2674_v22 = vor.u32 %v2673_v45, %v2527_v19  ;;  %v2675_v19 = vrot.slane %v2537_v5, 1 }
 0x283   : > { %v2458_v7 = vmax.f32 %v2388_v61, 0.0  ;;  %v7342_v41 = vsel %vm6652_vm2, 0, %v2539_v40 }
 0x284   : > { %v2456_v42 = vmax.f32 %v2380_v28, 0.0 }
 0x285   : > { %v7327_v26 = vpack.c.bf16 %v2458_v7, %v2457_v2  ;;  %5808 = vmatpush3.bf16.msra.mxu0 %v6234_v27  ;;  %v7361_v7 = vsel %vm6680_vm5, %v2674_v22, 0 }
 0x286   : > { %v7329_v50 = vpack.c.bf16 %v2456_v42, %v2455_v17  ;;  %v5971_v38 = vpop.f32.mrb[148].mxu0  ;;  %5809 = vmatprep.subr.bf16.mxu0 %v6236_v29 }
 0x287   : > { %v2401_v55 = vadd.f32 %v5971_v38, %v7204_v16  ;;  %v2392_v31 = vpop.f32.mrb[149].mxu0  ;;  %3834 = vmatmul.mubr.bf16.gmra.mrb[144].mxu1 %v7316_v43  ;;  %v2543_v16 = vrot.slane %v2541_v12, 7 }
 0x288   : > { %v2393_v3 = vadd.f32 %v2392_v31, %v7198_v4  ;;  %v5972_v8 = vpop.f32.mrb[150].mxu0  ;;  %3841 = vmatprep.mubr.bf16.mxu1 %v7277_v51  ;;  %3987 = vmatmul.mubr.bf16.gmra.mrb[172].mxu0 %v7335_v1 }
 0x289   : > { %v2404_v37 = vadd.f32 %v5972_v8, %v7207_v6  ;;  %v2395_v23 = vpop.f32.mrb[151].mxu0  ;;  %3994 = vmatprep.mubr.bf16.mxu0 %v7342_v41  ;;  %5810 = vmatpush3.bf16.msra.mxu0 %v6237_v46  ;;  %v2461_v36 = vmax.f32 %v2401_v55, 0.0  ;;  %v2546_v56 = vor.u32 %v2544_v63, %v2543_v16  ;;  %v2548_v6 = vshrl.u32 %v7303_v9, 16 }
 0x28a   : > { %v2396_v4 = vadd.f32 %v2395_v23, %v7201_v11  ;;  %5811 = vmatprep.subr.bf16.mxu0 %v6238_v57  ;;  %v2459_v58 = vmax.f32 %v2393_v3, 0.0  ;;  %v2676_v55 = vor.u32 %v2675_v19, %v2534_v62  ;;  %v2555_v8 = vshrl.u32 %v7301_v20, 16 }
 0x28b   : > { %v2462_v54 = vmax.f32 %v2404_v37, 0.0  ;;  %v7368_v42 = vsel %vm6652_vm2, 0, %v2546_v56  ;;  %v2677_v62 = vrot.slane %v2544_v63, 1  ;;  %v2558_v63 = vshll.u32 %v7301_v20, 16 }
 0x28c   : > { %v2460_v61 = vmax.f32 %v2396_v4, 0.0 }
 0x28d   : > { %v7353_v27 = vpack.c.bf16 %v2462_v54, %v2461_v36  ;;  %5812 = vmatpush3.bf16.msra.mxu0 %v6239_v21  ;;  %v7387_v21 = vsel %vm6680_vm5, %v2676_v55, 0 }
 0x28e   : > { %v7355_v28 = vpack.c.bf16 %v2460_v61, %v2459_v58  ;;  %v5975_v29 = vpop.f32.mrb[152].mxu0 }
 0x28f   : > { %v2417_v11 = vadd.f32 %v5975_v29, %v7216_v53  ;;  %v2408_v2 = vpop.f32.mrb[153].mxu0  ;;  %3842 = vmatmul.mubr.bf16.gmra.mrb[148].mxu1 %v7342_v41  ;;  %v2550_v53 = vrot.slane %v2548_v6, 7  ;;  %v2678_v29 = vor.u32 %v2677_v62, %v2541_v12 }
 0x290   : > { %v2409_v34 = vadd.f32 %v2408_v2, %v7210_v25  ;;  %v5976_v17 = vpop.f32.mrb[154].mxu0  ;;  %3849 = vmatprep.mubr.bf16.mxu1 %v7275_v39  ;;  %3995 = vmatmul.mubr.bf16.gmra.mrb[176].mxu0 %v7361_v7  ;;  %v2551_v25 = vshll.u32 %v7303_v9, 16 }
 0x291   : > { %v2420_v40 = vadd.f32 %v5976_v17, %v7219_v32  ;;  %v2411_v46 = vpop.f32.mrb[155].mxu0  ;;  %4002 = vmatprep.mubr.bf16.mxu0 %v7368_v42  ;;  %v2465_v38 = vmax.f32 %v2417_v11, 0.0 }
 0x292   : > { %v2412_v5 = vadd.f32 %v2411_v46, %v7213_v24  ;;  %v2463_v31 = vmax.f32 %v2409_v34, 0.0  ;;  %v2553_v3 = vor.u32 %v2551_v25, %v2550_v53  ;;  %v2562_v34 = vshrl.u32 %v7329_v50, 16 }
 0x293   : > { %v2466_v57 = vmax.f32 %v2420_v40, 0.0  ;;  %v2679_v53 = vrot.slane %v2551_v25, 1  ;;  %v2565_v25 = vshll.u32 %v7329_v50, 16 }
 0x294   : > { %v2464_v45 = vmax.f32 %v2412_v5, 0.0  ;;  %v7394_v54 = vsel %vm6652_vm2, 0, %v2553_v3  ;;  %v2564_v46 = vrot.slane %v2562_v34, 7 }
 0x295   : > { %v7379_v16 = vpack.c.bf16 %v2466_v57, %v2465_v38  ;;  %v2680_v57 = vor.u32 %v2679_v53, %v2548_v6 }
 0x296   : > { %v7381_v32 = vpack.c.bf16 %v2464_v45, %v2463_v31  ;;  %v5979_v37 = vpop.f32.mrb[156].mxu0  ;;  %v2567_v31 = vor.u32 %v2565_v25, %v2564_v46  ;;  %v2569_v45 = vshrl.u32 %v7327_v26, 16 }
 0x297   : > { %v2433_v23 = vadd.f32 %v5979_v37, %v7231_v35  ;;  %v2424_v24 = vpop.f32.mrb[157].mxu0  ;;  %3850 = vmatmul.mubr.bf16.gmra.mrb[152].mxu1 %v7368_v42  ;;  %v2557_v35 = vrot.slane %v2555_v8, 7  ;;  %v7434_v3 = vsel %vm6680_vm5, %v2680_v57, 0  ;;  %v2681_v37 = vrot.slane %v2558_v63, 1 }
 0x298   : > { %v2425_v4 = vadd.f32 %v2424_v24, %v7222_v48  ;;  %v5980_v36 = vpop.f32.mrb[158].mxu0  ;;  %3857 = vmatprep.mubr.bf16.mxu1 %v7303_v9  ;;  %4003 = vmatmul.mubr.bf16.gmra.mrb[180].mxu0 %v7387_v21  ;;  %v7440_v6 = vsel %vm6652_vm2, 0, %v2567_v31  ;;  %v2572_v24 = vshll.u32 %v7327_v26, 16 }
 0x299   : > { %v2436_v22 = vadd.f32 %v5980_v36, %v7235_v52  ;;  %v2427_v58 = vpop.f32.mrb[159].mxu0  ;;  %4010 = vmatprep.mubr.bf16.mxu0 %v7394_v54  ;;  %v2469_v48 = vmax.f32 %v2433_v23, 0.0  ;;  %v2560_v19 = vor.u32 %v2558_v63, %v2557_v35  ;;  %v2571_v23 = vrot.slane %v2569_v45, 7 }
 0x29a   : > { %v2428_v61 = vadd.f32 %v2427_v58, %v7225_v14  ;;  %v2467_v11 = vmax.f32 %v2425_v4, 0.0  ;;  %v7410_v14 = vsel %vm6680_vm5, %v2678_v29, 0  ;;  %v2682_v62 = vor.u32 %v2681_v37, %v2555_v8 }
 0x29b   : > { %v2470_v56 = vmax.f32 %v2436_v22, 0.0  ;;  %v7417_v12 = vsel %vm6652_vm2, 0, %v2560_v19  ;;  %v2574_v4 = vor.u32 %v2572_v24, %v2571_v23  ;;  %v2576_v36 = vshrl.u32 %v7355_v28, 16 }
 0x29c   : > { %v2468_v2 = vmax.f32 %v2428_v61, 0.0  ;;  %v7448_v35 = vsel %vm6680_vm5, %v2682_v62, 0  ;;  %v2683_v22 = vrot.slane %v2565_v25, 1  ;;  %v2579_v8 = vshll.u32 %v7355_v28, 16 }
 0x29d   : > { %v7403_v17 = vpack.c.bf16 %v2470_v56, %v2469_v48  ;;  %v7454_v58 = vsel %vm6652_vm2, 0, %v2574_v4  ;;  %v2578_v61 = vrot.slane %v2576_v36, 7  ;;  %v2583_v56 = vshrl.u32 %v7353_v27, 16 }
 0x29e   : > { %v7405_v52 = vpack.c.bf16 %v2468_v2, %v2467_v11  ;;  %v2684_v63 = vor.u32 %v2683_v22, %v2562_v34  ;;  %v2685_v11 = vrot.slane %v2572_v24, 1  ;;  %v2586_v25 = vshll.u32 %v7353_v27, 16 }
 0x29f   : > { %3858 = vmatmul.mubr.bf16.gmra.mrb[156].mxu1 %v7394_v54  ;;  %v2614_v40 = vshll.u32 %v7403_v17, 16  ;;  %v2611_v5 = vshrl.u32 %v7403_v17, 16  ;;  %v2581_v48 = vor.u32 %v2579_v8, %v2578_v61  ;;  %v2585_v34 = vrot.slane %v2583_v56, 7 }
 0x2a0   : > { %3865 = vmatprep.mubr.bf16.mxu1 %v7301_v20  ;;  %4011 = vmatmul.mubr.bf16.gmra.mrb[184].mxu0 %v7410_v14  ;;  %v7462_v29 = vsel %vm6680_vm5, %v2684_v63, 0  ;;  %v2686_v31 = vor.u32 %v2685_v11, %v2569_v45  ;;  %v2590_v24 = vshrl.u32 %v7381_v32, 16  ;;  %v2687_v4 = vrot.slane %v2579_v8, 1 }
 0x2a1   : > { %4018 = vmatprep.mubr.bf16.mxu0 %v7417_v12  ;;  %v2697_v38 = vrot.slane %v2614_v40, 1  ;;  %v7468_v19 = vsel %vm6652_vm2, 0, %v2581_v48  ;;  %v2588_v23 = vor.u32 %v2586_v25, %v2585_v34  ;;  %v2593_v61 = vshll.u32 %v7381_v32, 16 }
 0x2a2   : > { %v7480_v62 = vsel %vm6680_vm5, %v2686_v31, 0  ;;  %v2592_v45 = vrot.slane %v2590_v24, 7  ;;  %v2688_v63 = vor.u32 %v2687_v4, %v2576_v36  ;;  %v2597_v11 = vshrl.u32 %v7379_v16, 16 }
 0x2a3   : > { %v7428_v55 = vor.u32 %v2697_v38, %v2611_v5  ;;  %v5477_v2 = vpop.f32.mrb[128].mxu1  ;;  %v7486_v22 = vsel %vm6652_vm2, 0, %v2588_v23  ;;  %v2600_v36 = vshll.u32 %v7379_v16, 16  ;;  %v2604_v31 = vshrl.u32 %v7405_v52, 16 }
 0x2a4   : > { %v5478_v53 = vpop.f32.mrb[129].mxu1  ;;  %v2595_v48 = vor.u32 %v2593_v61, %v2592_v45  ;;  %v7494_v8 = vsel %vm6680_vm5, %v2688_v63, 0  ;;  %v2691_v23 = vrot.slane %v2593_v61, 1 }
 0x2a5   : > { %v7471_v46 = vadd.f32 %v5478_v53, %v5477_v2  ;;  %v5480_v38 = vpop.f32.mrb[130].mxu1  ;;  %v2689_v2 = vrot.slane %v2586_v25, 1  ;;  %v2599_v53 = vrot.slane %v2597_v11, 7  ;;  %v2606_v45 = vrot.slane %v2604_v31, 7 }
 0x2a6   : > { %v5481_v57 = vpop.f32.mrb[131].mxu1  ;;  %v7500_v34 = vsel %vm6652_vm2, 0, %v2595_v48  ;;  %v2692_v63 = vor.u32 %v2691_v23, %v2590_v24 }
 0x2a7   : > { %3866 = vmatmul.mubr.bf16.gmra.mrb[160].mxu1 %v7417_v12  ;;  %v7474_v37 = vadd.f32 %v5481_v57, %v5480_v38  ;;  %v2690_v38 = vor.u32 %v2689_v2, %v2583_v56  ;;  %v2602_v57 = vor.u32 %v2600_v36, %v2599_v53  ;;  %v2607_v56 = vshll.u32 %v7405_v52, 16 }
 0x2a8   : > { %3873 = vmatprep.mubr.bf16.mxu1 %v7329_v50  ;;  %4019 = vmatmul.mubr.bf16.gmra.mrb[188].mxu0 %v7434_v3  ;;  %v7521_v61 = vsel %vm6680_vm5, %v2692_v63, 0  ;;  %v2693_v2 = vrot.slane %v2600_v36, 1 }
 0x2a9   : > { %4026 = vmatprep.mubr.bf16.mxu0 %v7440_v6  ;;  %v7508_v25 = vsel %vm6680_vm5, %v2690_v38, 0  ;;  %v7514_v4 = vsel %vm6652_vm2, 0, %v2602_v57  ;;  %v2609_v48 = vor.u32 %v2607_v56, %v2606_v45  ;;  %v2613_v38 = vrot.slane %v2611_v5, 7  ;;  %v6240_v45 = vld [vmem:[#allocation14 + $0x208] sm:$0xff]  }
 0x2aa   : > { %v2694_v24 = vor.u32 %v2693_v2, %v2597_v11  ;;  %v2695_v23 = vrot.slane %v2607_v56, 1 }
 0x2ab   : > { %v7527_v53 = vsel %vm6652_vm2, 0, %v2609_v48  ;;  %v2616_v57 = vor.u32 %v2614_v40, %v2613_v38 }
 0x2ac   : > { %v7537_v36 = vsel %vm6680_vm5, %v2694_v24, 0  ;;  %v2696_v11 = vor.u32 %v2695_v23, %v2604_v31 }
 0x2ad   : > { %v7543_v5 = vsel %vm6652_vm2, 0, %v2616_v57 }
 0x2ae   : > { %v7549_v40 = vsel %vm6680_vm5, %v2696_v11, 0 }
 0x2af   : > { %3874 = vmatmul.mubr.bf16.gmra.mrb[164].mxu1 %v7440_v6 }
 0x2b0   : > { %3881 = vmatprep.mubr.bf16.mxu1 %v7327_v26  ;;  %4027 = vmatmul.mubr.bf16.gmra.mrb[192].mxu0 %v7448_v35 }
 0x2b1   : > { %4034 = vmatprep.mubr.bf16.mxu0 %v7454_v58 }
 0x2b7   : > { %3882 = vmatmul.mubr.bf16.gmra.mrb[168].mxu1 %v7454_v58 }
 0x2b8   : > { %3889 = vmatprep.mubr.bf16.mxu1 %v7355_v28  ;;  %4035 = vmatmul.mubr.bf16.gmra.mrb[196].mxu0 %v7462_v29 }
 0x2b9   : > { %4042 = vmatprep.mubr.bf16.mxu0 %v7468_v19 }
 0x2bf   : > { %3890 = vmatmul.mubr.bf16.gmra.mrb[172].mxu1 %v7468_v19 }
 0x2c0   : > { %3897 = vmatprep.mubr.bf16.mxu1 %v7353_v27  ;;  %4043 = vmatmul.mubr.bf16.gmra.mrb[200].mxu0 %v7480_v62 }
 0x2c1   : > { %4050 = vmatprep.mubr.bf16.mxu0 %v7486_v22 }
 0x2c7   : > { %3898 = vmatmul.mubr.bf16.gmra.mrb[176].mxu1 %v7486_v22 }
 0x2c8   : > { %3905 = vmatprep.mubr.bf16.mxu1 %v7381_v32  ;;  %4051 = vmatmul.mubr.bf16.gmra.mrb[204].mxu0 %v7494_v8 }
 0x2c9   : > { %4058 = vmatprep.mubr.bf16.mxu0 %v7500_v34 }
 0x2cf   : > { %3906 = vmatmul.mubr.bf16.gmra.mrb[180].mxu1 %v7500_v34 }
 0x2d0   : > { %3913 = vmatprep.mubr.bf16.mxu1 %v7379_v16  ;;  %4059 = vmatmul.mubr.bf16.gmra.mrb[208].mxu0 %v7508_v25 }
 0x2d1   : > { %4066 = vmatprep.mubr.bf16.mxu0 %v7514_v4 }
 0x2d7   : > { %3914 = vmatmul.mubr.bf16.gmra.mrb[184].mxu1 %v7514_v4 }
 0x2d8   : > { %3921 = vmatprep.mubr.bf16.mxu1 %v7405_v52  ;;  %4067 = vmatmul.mubr.bf16.gmra.mrb[212].mxu0 %v7521_v61 }
 0x2d9   : > { %4074 = vmatprep.mubr.bf16.mxu0 %v7527_v53 }
 0x2df   : > { %3922 = vmatmul.mubr.bf16.gmra.mrb[188].mxu1 %v7527_v53 }
 0x2e0   : > { %4075 = vmatmul.mubr.bf16.gmra.mrb[216].mxu0 %v7537_v36  ;;  %4123 = vmatprep.mubr.bf16.mxu1 %v7283_v15  ;;  %v6242_v15 = vld [vmem:[#allocation14 + $0x218] sm:$0xff]  }
 0x2e1   : > { %4082 = vmatprep.mubr.bf16.mxu0 %v7543_v5 }
 0x2e7   : > { %4124 = vmatmul.mubr.bf16.vlgmr.msra.gmra.mrb[192].mxu1 %v7237_v18  ;;  %v6243_v18 = vld [vmem:[#allocation14 + $0x220] sm:$0xff]  }
 0x2e8   : > { %4083 = vmatmul.mubr.bf16.gmra.mrb[220].mxu0 %v7549_v40  ;;  %4131 = vmatprep.mubr.bf16.mxu1 %v7309_v60 }
 0x2e9   : > { %5982 = vmatpush3.bf16.msra.mxu1 %v7241_v47  ;;  %4284 = vmatprep.mubr.bf16.mxu0 %v7233_v59  ;;  %v6244_v47 = vld [vmem:[#allocation14 + $0x228] sm:$0xff]  }
 0x2ea   : > { %5983 = vmatprep.subr.bf16.mxu1 %v6240_v45 }
 0x2ed   : > { %5984 = vmatpush3.bf16.msra.mxu1 %v6240_v45 }
 0x2ee   : > { %5985 = vmatprep.subr.bf16.mxu1 %v6241_v49 }
 0x2ef   : > { %4132 = vmatmul.mubr.bf16.gmra.mrb[196].mxu1 %v7233_v59  ;;  %v6245_v59 = vld [vmem:[#allocation14 + $0x230] sm:$0xff]  }
 0x2f0   : > { %4139 = vmatprep.mubr.bf16.mxu1 %v7335_v1  ;;  %4285 = vmatmul.mubr.bf16.vlgmr.msra.gmra.mrb[224].mxu0 %v7265_v13  ;;  %v6246_v13 = vld [vmem:[#allocation14 + $0x238] sm:$0xff]  }
 0x2f1   : > { %4292 = vmatprep.mubr.bf16.mxu0 %v7255_v44  ;;  %5986 = vmatpush3.bf16.msra.mxu1 %v6241_v49 }
 0x2f2   : > { %5987 = vmatprep.subr.bf16.mxu1 %v6242_v15 }
 0x2f5   : > { %5988 = vmatpush3.bf16.msra.mxu1 %v6242_v15 }
 0x2f6   : > { %5989 = vmatprep.subr.bf16.mxu1 %v6243_v18 }
 0x2f7   : > { %4140 = vmatmul.mubr.bf16.gmra.mrb[200].mxu1 %v7255_v44 }
 0x2f8   : > { %4147 = vmatprep.mubr.bf16.mxu1 %v7361_v7  ;;  %4293 = vmatmul.mubr.bf16.gmra.mrb[228].mxu0 %v7290_v30 }
 0x2f9   : > { %4300 = vmatprep.mubr.bf16.mxu0 %v7253_v33  ;;  %5990 = vmatpush3.bf16.msra.mxu1 %v6243_v18 }
 0x2fa   : > { %5991 = vmatprep.subr.bf16.mxu1 %v6244_v47 }
 0x2fd   : > { %5992 = vmatpush3.bf16.msra.mxu1 %v6244_v47 }
 0x2fe   : > { %5993 = vmatprep.subr.bf16.mxu1 %v6245_v59 }
 0x2ff   : > { %4148 = vmatmul.mubr.bf16.gmra.mrb[204].mxu1 %v7253_v33  ;;  %v7602_v33 = vld [vmem:[%s7990_s4] ss:$0 sm:$0xff] }
 0x300   : > { %4155 = vmatprep.mubr.bf16.mxu1 %v7387_v21  ;;  %4301 = vmatmul.mubr.bf16.gmra.mrb[232].mxu0 %v7316_v43  ;;  %v3804_v43 = vadd.f32 %v7471_v46, %v7602_v33 }
 0x301   : > { %4308 = vmatprep.mubr.bf16.mxu0 %v7277_v51  ;;  %5994 = vmatpush3.bf16.msra.mxu1 %v6245_v59 }
 0x302   : > { %5995 = vmatprep.subr.bf16.mxu1 %v6246_v13 }
 0x305   : > { %5996 = vmatpush3.bf16.msra.mxu1 %v6246_v13 }
 0x307   : > { %4156 = vmatmul.mubr.bf16.gmra.mrb[208].mxu1 %v7277_v51 }
 0x308   : > { %4163 = vmatprep.mubr.bf16.mxu1 %v7410_v14  ;;  %4309 = vmatmul.mubr.bf16.gmra.mrb[236].mxu0 %v7342_v41 }
 0x309   : > { %4316 = vmatprep.mubr.bf16.mxu0 %v7275_v39 }
 0x30f   : > { %4164 = vmatmul.mubr.bf16.gmra.mrb[212].mxu1 %v7275_v39 }
 0x310   : > { %4171 = vmatprep.mubr.bf16.mxu1 %v7434_v3  ;;  %4317 = vmatmul.mubr.bf16.gmra.mrb[240].mxu0 %v7368_v42  ;;  %v3807_v42 = vadd.f32 %v7474_v37, %v7602_v33 }
 0x311   : > { %4324 = vmatprep.mubr.bf16.mxu0 %v7303_v9 }
 0x317   : > { %4172 = vmatmul.mubr.bf16.gmra.mrb[216].mxu1 %v7303_v9 }
 0x318   : > { %4179 = vmatprep.mubr.bf16.mxu1 %v7448_v35  ;;  %4325 = vmatmul.mubr.bf16.gmra.mrb[244].mxu0 %v7394_v54 }
 0x319   : > { %4332 = vmatprep.mubr.bf16.mxu0 %v7301_v20 }
 0x31f   : > { %4180 = vmatmul.mubr.bf16.gmra.mrb[220].mxu1 %v7301_v20 }
 0x320   : > { %4187 = vmatprep.mubr.bf16.mxu1 %v7462_v29  ;;  %4333 = vmatmul.mubr.bf16.gmra.mrb[248].mxu0 %v7417_v12 }
 0x321   : > { %4340 = vmatprep.mubr.bf16.mxu0 %v7329_v50 }
 0x327   : > { %4188 = vmatmul.mubr.bf16.gmra.mrb[224].mxu1 %v7329_v50 }
 0x328   : > { %4195 = vmatprep.mubr.bf16.mxu1 %v7480_v62  ;;  %4341 = vmatmul.mubr.bf16.gmra.mrb[252].mxu0 %v7440_v6 }
 0x329   : > { %4348 = vmatprep.mubr.bf16.mxu0 %v7327_v26 }
 0x32f   : > { %4196 = vmatmul.mubr.bf16.gmra.mrb[228].mxu1 %v7327_v26 }
 0x330   : > { %4203 = vmatprep.mubr.bf16.mxu1 %v7494_v8  ;;  %4349 = vmatmul.mubr.bf16.gmra.mrb[0].mxu0 %v7454_v58 }
 0x331   : > { %4356 = vmatprep.mubr.bf16.mxu0 %v7355_v28 }
 0x337   : > { %4204 = vmatmul.mubr.bf16.gmra.mrb[232].mxu1 %v7355_v28 }
 0x338   : > { %4211 = vmatprep.mubr.bf16.mxu1 %v7508_v25  ;;  %4357 = vmatmul.mubr.bf16.gmra.mrb[4].mxu0 %v7468_v19 }
 0x339   : > { %4364 = vmatprep.mubr.bf16.mxu0 %v7353_v27 }
 0x33f   : > { %4212 = vmatmul.mubr.bf16.gmra.mrb[236].mxu1 %v7353_v27 }
 0x340   : > { %4219 = vmatprep.mubr.bf16.mxu1 %v7521_v61  ;;  %4365 = vmatmul.mubr.bf16.gmra.mrb[8].mxu0 %v7486_v22 }
 0x341   : > { %4372 = vmatprep.mubr.bf16.mxu0 %v7381_v32 }
 0x342   : > { %v5483_v44 = vpop.f32.mrb[132].mxu1 }
 0x343   : > { %v5484_v39 = vpop.f32.mrb[133].mxu1  ;;  %v5589_v51 = vpop.f32.mrb[160].mxu0 }
 0x344   : > { %v5485_v30 = vadd.f32 %v5484_v39, %v5483_v44  ;;  %v5486_v20 = vpop.f32.mrb[134].mxu1  ;;  %v5590_v9 = vpop.f32.mrb[161].mxu0 }
 0x345   : > { %v5591_v26 = vadd.f32 %v5590_v9, %v5589_v51  ;;  %v5487_v50 = vpop.f32.mrb[135].mxu1  ;;  %v5592_v41 = vpop.f32.mrb[162].mxu0  ;;  %v7634_v9 = vsel %vm6680_vm5, %v7428_v55, 0 }
 0x346   : > { %v5488_v27 = vadd.f32 %v5487_v50, %v5486_v20  ;;  %v5593_v28 = vpop.f32.mrb[163].mxu0  ;;  %v3812_v37 = vadd.f32 %v5485_v30, %v7602_v33 }
 0x347   : > { %v7608_v54 = vadd.f32 %v5591_v26, %v3804_v43  ;;  %v5594_v12 = vadd.f32 %v5593_v28, %v5592_v41  ;;  %4220 = vmatmul.mubr.bf16.gmra.mrb[240].mxu1 %v7381_v32 }
 0x348   : > { %4227 = vmatprep.mubr.bf16.mxu1 %v7537_v36  ;;  %4373 = vmatmul.mubr.bf16.gmra.mrb[12].mxu0 %v7500_v34  ;;  %v3815_v24 = vadd.f32 %v5488_v27, %v7602_v33 }
 0x349   : > { %v7613_v6 = vadd.f32 %v5594_v12, %v3807_v42  ;;  %4380 = vmatprep.mubr.bf16.mxu0 %v7379_v16 }
 0x34a   : > { %v5489_v58 = vpop.f32.mrb[136].mxu1 }
 0x34b   : > { %v5490_v19 = vpop.f32.mrb[137].mxu1  ;;  %v5595_v46 = vpop.f32.mrb[164].mxu0 }
 0x34c   : > { %v5491_v22 = vadd.f32 %v5490_v19, %v5489_v58  ;;  %v5492_v31 = vpop.f32.mrb[138].mxu1  ;;  %v5596_v56 = vpop.f32.mrb[165].mxu0 }
 0x34d   : > { %v5597_v63 = vadd.f32 %v5596_v56, %v5595_v46  ;;  %v5493_v48 = vpop.f32.mrb[139].mxu1  ;;  %v5598_v2 = vpop.f32.mrb[166].mxu0 }
 0x34e   : > { %v5494_v32 = vadd.f32 %v5493_v48, %v5492_v31  ;;  %v5599_v38 = vpop.f32.mrb[167].mxu0  ;;  %v3820_v59 = vadd.f32 %v5491_v22, %v7602_v33 }
 0x34f   : > { %v7618_v34 = vadd.f32 %v5597_v63, %v3812_v37  ;;  %v5600_v57 = vadd.f32 %v5599_v38, %v5598_v2  ;;  %4228 = vmatmul.mubr.bf16.gmra.mrb[244].mxu1 %v7379_v16 }
 0x350   : > { %4235 = vmatprep.mubr.bf16.mxu1 %v7549_v40  ;;  %4381 = vmatmul.mubr.bf16.gmra.mrb[16].mxu0 %v7514_v4  ;;  %v3823_v30 = vadd.f32 %v5494_v32, %v7602_v33 }
 0x351   : > { %v7623_v23 = vadd.f32 %v5600_v57, %v3815_v24  ;;  %4388 = vmatprep.mubr.bf16.mxu0 %v7405_v52 }
 0x352   : > { %v5495_v11 = vpop.f32.mrb[140].mxu1 }
 0x353   : > { %v5496_v45 = vpop.f32.mrb[141].mxu1  ;;  %v5601_v49 = vpop.f32.mrb[168].mxu0 }
 0x354   : > { %v5497_v15 = vadd.f32 %v5496_v45, %v5495_v11  ;;  %v5498_v18 = vpop.f32.mrb[142].mxu1  ;;  %v5602_v47 = vpop.f32.mrb[169].mxu0 }
 0x355   : > { %v5603_v13 = vadd.f32 %v5602_v47, %v5601_v49  ;;  %v5499_v44 = vpop.f32.mrb[143].mxu1  ;;  %v5604_v39 = vpop.f32.mrb[170].mxu0 }
 0x356   : > { %v5500_v16 = vadd.f32 %v5499_v44, %v5498_v18  ;;  %v5605_v51 = vpop.f32.mrb[171].mxu0 }
 0x357   : > { %v7628_v4 = vadd.f32 %v5603_v13, %v3820_v59  ;;  %v5606_v20 = vadd.f32 %v5605_v51, %v5604_v39  ;;  %4236 = vmatmul.mubr.bf16.gmra.mrb[248].mxu1 %v7405_v52  ;;  %v3828_v52 = vadd.f32 %v5497_v15, %v7602_v33 }
 0x358   : > { %4243 = vmatprep.mubr.bf16.mxu1 %v7634_v9  ;;  %4389 = vmatmul.mubr.bf16.gmra.mrb[20].mxu0 %v7527_v53  ;;  %v3831_v46 = vadd.f32 %v5500_v16, %v7602_v33 }
 0x359   : > { %v7638_v43 = vadd.f32 %v5606_v20, %v3823_v30  ;;  %4396 = vmatprep.mubr.bf16.mxu0 %v7403_v17 }
 0x35a   : > { %v5501_v26 = vpop.f32.mrb[144].mxu1 }
 0x35b   : > { %v5502_v50 = vpop.f32.mrb[145].mxu1  ;;  %v5607_v41 = vpop.f32.mrb[172].mxu0 }
 0x35c   : > { %v5503_v27 = vadd.f32 %v5502_v50, %v5501_v26  ;;  %v5504_v28 = vpop.f32.mrb[146].mxu1  ;;  %v5608_v42 = vpop.f32.mrb[173].mxu0 }
 0x35d   : > { %v5609_v12 = vadd.f32 %v5608_v42, %v5607_v41  ;;  %v5505_v10 = vpop.f32.mrb[147].mxu1  ;;  %v5610_v55 = vpop.f32.mrb[174].mxu0 }
 0x35e   : > { %v5506_v58 = vadd.f32 %v5505_v10, %v5504_v28  ;;  %v5611_v19 = vpop.f32.mrb[175].mxu0  ;;  %v3836_v38 = vadd.f32 %v5503_v27, %v7602_v33 }
 0x35f   : > { %v7643_v53 = vadd.f32 %v5609_v12, %v3828_v52  ;;  %v5612_v22 = vadd.f32 %v5611_v19, %v5610_v55  ;;  %4244 = vmatmul.mubr.bf16.gmra.mrb[252].mxu1 %v7403_v17 }
 0x360   : > { %4397 = vmatmul.mubr.bf16.gmra.mrb[24].mxu0 %v7543_v5  ;;  %5997 = vmatprep.mubr.bf16.mxu1 %v7309_v60  ;;  %v3839_v5 = vadd.f32 %v5506_v58, %v7602_v33 }
 0x361   : > { %v7648_v31 = vadd.f32 %v5612_v22, %v3831_v46  ;;  %4404 = vmatprep.mubr.bf16.mxu0 %v6412_v0 }
 0x362   : > { %v5507_v56 = vpop.f32.mrb[148].mxu1 }
 0x363   : > { %v5508_v37 = vpop.f32.mrb[149].mxu1  ;;  %v5613_v63 = vpop.f32.mrb[176].mxu0 }
 0x364   : > { %v5509_v48 = vadd.f32 %v5508_v37, %v5507_v56  ;;  %v5510_v2 = vpop.f32.mrb[150].mxu1  ;;  %v5614_v32 = vpop.f32.mrb[177].mxu0 }
 0x365   : > { %v5615_v24 = vadd.f32 %v5614_v32, %v5613_v63  ;;  %v5511_v57 = vpop.f32.mrb[151].mxu1  ;;  %v5616_v11 = vpop.f32.mrb[178].mxu0 }
 0x366   : > { %v5512_v17 = vadd.f32 %v5511_v57, %v5510_v2  ;;  %v5617_v45 = vpop.f32.mrb[179].mxu0  ;;  %v3844_v16 = vadd.f32 %v5509_v48, %v7602_v33 }
 0x367   : > { %v7653_v60 = vadd.f32 %v5615_v24, %v3836_v38  ;;  %v5618_v49 = vadd.f32 %v5617_v45, %v5616_v11  ;;  %5998 = vmatmul.mubr.bf16.vlgmr.msra.gmra.mrb[0].mxu1 %v7335_v1 }
 0x368   : > { %4405 = vmatmul.mubr.bf16.gmra.mrb[28].mxu0 %v6412_v0  ;;  %6001 = vmatprep.mubr.bf16.mxu1 %v7361_v7  ;;  %v3847_v1 = vadd.f32 %v5512_v17, %v7602_v33 }
 0x369   : > { %v7658_v15 = vadd.f32 %v5618_v49, %v3839_v5 }
 0x36a   : > { %v5513_v18 = vpop.f32.mrb[152].mxu1 }
 0x36b   : > { %v5514_v47 = vpop.f32.mrb[153].mxu1  ;;  %v5619_v59 = vpop.f32.mrb[180].mxu0 }
 0x36c   : > { %v5515_v13 = vadd.f32 %v5514_v47, %v5513_v18  ;;  %v5516_v44 = vpop.f32.mrb[154].mxu1  ;;  %v5620_v39 = vpop.f32.mrb[181].mxu0 }
 0x36d   : > { %v5621_v51 = vadd.f32 %v5620_v39, %v5619_v59  ;;  %v5517_v30 = vpop.f32.mrb[155].mxu1  ;;  %v5622_v20 = vpop.f32.mrb[182].mxu0 }
 0x36e   : > { %v5518_v26 = vadd.f32 %v5517_v30, %v5516_v44  ;;  %v5623_v50 = vpop.f32.mrb[183].mxu0  ;;  %v3852_v58 = vadd.f32 %v5515_v13, %v7602_v33 }
 0x36f   : > { %v7662_v41 = vadd.f32 %v5621_v51, %v3844_v16  ;;  %v5624_v7 = vadd.f32 %v5623_v50, %v5622_v20  ;;  %6002 = vmatmul.mubr.bf16.gmra.mrb[4].mxu1 %v7387_v21 }
 0x370   : > { %6005 = vmatprep.mubr.bf16.mxu1 %v7410_v14  ;;  %v3855_v63 = vadd.f32 %v5518_v26, %v7602_v33 }
 0x371   : > { %v7666_v27 = vadd.f32 %v5624_v7, %v3847_v1 }
 0x372   : > { %v5519_v28 = vpop.f32.mrb[156].mxu1 }
 0x373   : > { %v5520_v42 = vpop.f32.mrb[157].mxu1  ;;  %v5625_v52 = vpop.f32.mrb[184].mxu0 }
 0x374   : > { %v5521_v12 = vadd.f32 %v5520_v42, %v5519_v28  ;;  %v5522_v10 = vpop.f32.mrb[158].mxu1  ;;  %v5626_v55 = vpop.f32.mrb[185].mxu0 }
 0x375   : > { %v5627_v19 = vadd.f32 %v5626_v55, %v5625_v52  ;;  %v5523_v46 = vpop.f32.mrb[159].mxu1  ;;  %v5628_v22 = vpop.f32.mrb[186].mxu0 }
 0x376   : > { %v5524_v56 = vadd.f32 %v5523_v46, %v5522_v10  ;;  %v5629_v37 = vpop.f32.mrb[187].mxu0  ;;  %v3860_v17 = vadd.f32 %v5521_v12, %v7602_v33 }
 0x377   : > { %v7670_v21 = vadd.f32 %v5627_v19, %v3852_v58  ;;  %v5630_v14 = vadd.f32 %v5629_v37, %v5628_v22  ;;  %6006 = vmatmul.mubr.bf16.gmra.mrb[8].mxu1 %v7434_v3 }
 0x378   : > { %6009 = vmatprep.mubr.bf16.mxu1 %v7448_v35  ;;  %v3863_v59 = vadd.f32 %v5524_v56, %v7602_v33 }
 0x379   : > { %v7674_v48 = vadd.f32 %v5630_v14, %v3855_v63 }
 0x37a   : > { %v5525_v2 = vpop.f32.mrb[160].mxu1 }
 0x37b   : > { %v5526_v32 = vpop.f32.mrb[161].mxu1  ;;  %v5631_v38 = vpop.f32.mrb[188].mxu0 }
 0x37c   : > { %v5527_v24 = vadd.f32 %v5526_v32, %v5525_v2  ;;  %v5528_v57 = vpop.f32.mrb[162].mxu1  ;;  %v5632_v11 = vpop.f32.mrb[189].mxu0 }
 0x37d   : > { %v5633_v45 = vadd.f32 %v5632_v11, %v5631_v38  ;;  %v5529_v5 = vpop.f32.mrb[163].mxu1  ;;  %v5634_v49 = vpop.f32.mrb[190].mxu0 }
 0x37e   : > { %v5530_v18 = vadd.f32 %v5529_v5, %v5528_v57  ;;  %v5635_v47 = vpop.f32.mrb[191].mxu0  ;;  %v3868_v26 = vadd.f32 %v5527_v24, %v7602_v33 }
 0x37f   : > { %v7678_v3 = vadd.f32 %v5633_v45, %v3860_v17  ;;  %v5636_v35 = vadd.f32 %v5635_v47, %v5634_v49  ;;  %6010 = vmatmul.mubr.bf16.gmra.mrb[12].mxu1 %v7462_v29 }
 0x380   : > { %6013 = vmatprep.mubr.bf16.mxu1 %v7480_v62  ;;  %v3871_v52 = vadd.f32 %v5530_v18, %v7602_v33 }
 0x381   : > { %v7682_v13 = vadd.f32 %v5636_v35, %v3863_v59 }
 0x382   : > { %v5531_v44 = vpop.f32.mrb[164].mxu1 }
 0x383   : > { %v5532_v39 = vpop.f32.mrb[165].mxu1  ;;  %v5637_v16 = vpop.f32.mrb[192].mxu0 }
 0x384   : > { %v5533_v51 = vadd.f32 %v5532_v39, %v5531_v44  ;;  %v5534_v30 = vpop.f32.mrb[166].mxu1  ;;  %v5638_v20 = vpop.f32.mrb[193].mxu0 }
 0x385   : > { %v5639_v50 = vadd.f32 %v5638_v20, %v5637_v16  ;;  %v5535_v1 = vpop.f32.mrb[167].mxu1  ;;  %v5640_v7 = vpop.f32.mrb[194].mxu0 }
 0x386   : > { %v5536_v28 = vadd.f32 %v5535_v1, %v5534_v30  ;;  %v5641_v42 = vpop.f32.mrb[195].mxu0  ;;  %v3876_v56 = vadd.f32 %v5533_v51, %v7602_v33 }
 0x387   : > { %v7686_v29 = vadd.f32 %v5639_v50, %v3868_v26  ;;  %v5642_v62 = vadd.f32 %v5641_v42, %v5640_v7  ;;  %6014 = vmatmul.mubr.bf16.gmra.mrb[16].mxu1 %v7494_v8 }
 0x388   : > { %6017 = vmatprep.mubr.bf16.mxu1 %v7508_v25  ;;  %v3879_v38 = vadd.f32 %v5536_v28, %v7602_v33 }
 0x389   : > { %v7690_v12 = vadd.f32 %v5642_v62, %v3871_v52 }
 0x38a   : > { %v5537_v10 = vpop.f32.mrb[168].mxu1 }
 0x38b   : > { %v5538_v55 = vpop.f32.mrb[169].mxu1  ;;  %v5643_v58 = vpop.f32.mrb[196].mxu0 }
 0x38c   : > { %v5539_v19 = vadd.f32 %v5538_v55, %v5537_v10  ;;  %v5540_v46 = vpop.f32.mrb[170].mxu1  ;;  %v5644_v22 = vpop.f32.mrb[197].mxu0 }
 0x38d   : > { %v5645_v37 = vadd.f32 %v5644_v22, %v5643_v58  ;;  %v5541_v63 = vpop.f32.mrb[171].mxu1  ;;  %v5646_v14 = vpop.f32.mrb[198].mxu0 }
 0x38e   : > { %v5542_v2 = vadd.f32 %v5541_v63, %v5540_v46  ;;  %v5647_v32 = vpop.f32.mrb[199].mxu0  ;;  %v3884_v18 = vadd.f32 %v5539_v19, %v7602_v33 }
 0x38f   : > { %v7694_v8 = vadd.f32 %v5645_v37, %v3876_v56  ;;  %v5648_v25 = vadd.f32 %v5647_v32, %v5646_v14  ;;  %6018 = vmatmul.mubr.bf16.gmra.mrb[20].mxu1 %v7521_v61 }
 0x390   : > { %6021 = vmatprep.mubr.bf16.mxu1 %v7537_v36  ;;  %v3887_v16 = vadd.f32 %v5542_v2, %v7602_v33 }
 0x391   : > { %v7698_v24 = vadd.f32 %v5648_v25, %v3879_v38 }
 0x392   : > { %v5543_v57 = vpop.f32.mrb[172].mxu1 }
 0x393   : > { %v5544_v11 = vpop.f32.mrb[173].mxu1  ;;  %v5649_v17 = vpop.f32.mrb[200].mxu0 }
 0x394   : > { %v5545_v45 = vadd.f32 %v5544_v11, %v5543_v57  ;;  %v5546_v5 = vpop.f32.mrb[174].mxu1  ;;  %v5650_v49 = vpop.f32.mrb[201].mxu0 }
 0x395   : > { %v5651_v47 = vadd.f32 %v5650_v49, %v5649_v17  ;;  %v5547_v59 = vpop.f32.mrb[175].mxu1  ;;  %v5652_v35 = vpop.f32.mrb[202].mxu0 }
 0x396   : > { %v5548_v44 = vadd.f32 %v5547_v59, %v5546_v5  ;;  %v5653_v39 = vpop.f32.mrb[203].mxu0  ;;  %v3892_v28 = vadd.f32 %v5545_v45, %v7602_v33 }
 0x397   : > { %v7702_v61 = vadd.f32 %v5651_v47, %v3884_v18  ;;  %v5654_v36 = vadd.f32 %v5653_v39, %v5652_v35  ;;  %6022 = vmatmul.mubr.bf16.gmra.mrb[24].mxu1 %v7549_v40 }
 0x398   : > { %6025 = vmatprep.mubr.bf16.mxu1 %v7634_v9  ;;  %v3895_v58 = vadd.f32 %v5548_v44, %v7602_v33 }
 0x399   : > { %v7706_v51 = vadd.f32 %v5654_v36, %v3887_v16 }
 0x39a   : > { %v5549_v30 = vpop.f32.mrb[176].mxu1 }
 0x39b   : > { %v5550_v20 = vpop.f32.mrb[177].mxu1  ;;  %v5655_v26 = vpop.f32.mrb[204].mxu0 }
 0x39c   : > { %v5551_v50 = vadd.f32 %v5550_v20, %v5549_v30  ;;  %v5552_v1 = vpop.f32.mrb[178].mxu1  ;;  %v5656_v7 = vpop.f32.mrb[205].mxu0 }
 0x39d   : > { %v5657_v42 = vadd.f32 %v5656_v7, %v5655_v26  ;;  %v5553_v52 = vpop.f32.mrb[179].mxu1  ;;  %v5658_v62 = vpop.f32.mrb[206].mxu0 }
 0x39e   : > { %v5554_v10 = vadd.f32 %v5553_v52, %v5552_v1  ;;  %v5659_v55 = vpop.f32.mrb[207].mxu0  ;;  %v3900_v2 = vadd.f32 %v5551_v50, %v7602_v33 }
 0x39f   : > { %v7710_v40 = vadd.f32 %v5657_v42, %v3892_v28  ;;  %v5660_v9 = vadd.f32 %v5659_v55, %v5658_v62  ;;  %6026 = vmatmul.mubr.bf16.gmra.mrb[28].mxu1 %v6412_v0 }
 0x3a0   : > { %v3903_v17 = vadd.f32 %v5554_v10, %v7602_v33 }
 0x3a1   : > { %v7713_v19 = vadd.f32 %v5660_v9, %v3895_v58 }
 0x3a2   : > { %v5555_v46 = vpop.f32.mrb[180].mxu1 }
 0x3a3   : > { %v5556_v22 = vpop.f32.mrb[181].mxu1  ;;  %v5661_v56 = vpop.f32.mrb[208].mxu0 }
 0x3a4   : > { %v5557_v37 = vadd.f32 %v5556_v22, %v5555_v46  ;;  %v5558_v63 = vpop.f32.mrb[182].mxu1  ;;  %v5662_v14 = vpop.f32.mrb[209].mxu0 }
 0x3a5   : > { %v5663_v32 = vadd.f32 %v5662_v14, %v5661_v56  ;;  %v5559_v38 = vpop.f32.mrb[183].mxu1  ;;  %v5664_v25 = vpop.f32.mrb[210].mxu0 }
 0x3a6   : > { %v5560_v57 = vadd.f32 %v5559_v38, %v5558_v63  ;;  %v5665_v11 = vpop.f32.mrb[211].mxu0  ;;  %v3908_v39 = vadd.f32 %v5557_v37, %v7602_v33 }
 0x3a7   : > { %v7717_v45 = vadd.f32 %v5663_v32, %v3900_v2  ;;  %v5666_v0 = vadd.f32 %v5665_v11, %v5664_v25 }
 0x3a8   : > { %v3911_v50 = vadd.f32 %v5560_v57, %v7602_v33 }
 0x3a9   : > { %v7719_v5 = vadd.f32 %v5666_v0, %v3903_v17 }
 0x3aa   : > { %v5561_v49 = vpop.f32.mrb[184].mxu1 }
 0x3ab   : > { %v5562_v18 = vpop.f32.mrb[185].mxu1  ;;  %v5667_v47 = vpop.f32.mrb[212].mxu0 }
 0x3ac   : > { %v5563_v59 = vadd.f32 %v5562_v18, %v5561_v49  ;;  %v5564_v35 = vpop.f32.mrb[186].mxu1  ;;  %v5668_v44 = vpop.f32.mrb[213].mxu0 }
 0x3ad   : > { %v5669_v16 = vadd.f32 %v5668_v44, %v5667_v47  ;;  %v5565_v36 = vpop.f32.mrb[187].mxu1  ;;  %v5670_v30 = vpop.f32.mrb[214].mxu0 }
 0x3ae   : > { %v5566_v20 = vadd.f32 %v5565_v36, %v5564_v35  ;;  %v5671_v26 = vpop.f32.mrb[215].mxu0  ;;  %v3916_v9 = vadd.f32 %v5563_v59, %v7602_v33 }
 0x3af   : > { %v7723_v1 = vadd.f32 %v5669_v16, %v3908_v39  ;;  %v5672_v7 = vadd.f32 %v5671_v26, %v5670_v30 }
 0x3b0   : > { %v3919_v14 = vadd.f32 %v5566_v20, %v7602_v33 }
 0x3b1   : > { %v7725_v28 = vadd.f32 %v5672_v7, %v3911_v50 }
 0x3b2   : > { %v5567_v42 = vpop.f32.mrb[188].mxu1 }
 0x3b3   : > { %v5568_v52 = vpop.f32.mrb[189].mxu1  ;;  %v5673_v62 = vpop.f32.mrb[216].mxu0 }
 0x3b4   : > { %v5569_v10 = vadd.f32 %v5568_v52, %v5567_v42  ;;  %v5570_v55 = vpop.f32.mrb[190].mxu1  ;;  %v5674_v58 = vpop.f32.mrb[217].mxu0 }
 0x3b5   : > { %v5675_v46 = vadd.f32 %v5674_v58, %v5673_v62  ;;  %v5571_v22 = vpop.f32.mrb[191].mxu1  ;;  %v5676_v56 = vpop.f32.mrb[218].mxu0 }
 0x3b6   : > { %v5572_v37 = vadd.f32 %v5571_v22, %v5570_v55  ;;  %v5677_v63 = vpop.f32.mrb[219].mxu0  ;;  %v3924_v18 = vadd.f32 %v5569_v10, %v7602_v33 }
 0x3b7   : > { %v7729_v2 = vadd.f32 %v5675_v46, %v3916_v9  ;;  %v5678_v32 = vadd.f32 %v5677_v63, %v5676_v56 }
 0x3b8   : > { %v3927_v36 = vadd.f32 %v5572_v37, %v7602_v33 }
 0x3b9   : > { %v7731_v38 = vadd.f32 %v5678_v32, %v3919_v14 }
 0x3ba   : > { %v5701_v25 = vpop.f32.mrb[192].mxu1 }
 0x3bb   : > { %v5679_v57 = vpop.f32.mrb[220].mxu0  ;;  %v5702_v11 = vpop.f32.mrb[193].mxu1 }
 0x3bc   : > { %v5703_v17 = vadd.f32 %v5702_v11, %v5701_v25  ;;  %v5680_v0 = vpop.f32.mrb[221].mxu0  ;;  %v5704_v49 = vpop.f32.mrb[194].mxu1 }
 0x3bd   : > { %v5681_v47 = vadd.f32 %v5680_v0, %v5679_v57  ;;  %v5682_v59 = vpop.f32.mrb[222].mxu0  ;;  %v5705_v35 = vpop.f32.mrb[195].mxu1 }
 0x3be   : > { %v4126_v44 = vadd.f32 %v5703_v17, %v7608_v54  ;;  %v5706_v39 = vadd.f32 %v5705_v35, %v5704_v49  ;;  %v5683_v16 = vpop.f32.mrb[223].mxu0 }
 0x3bf   : > { %v7736_v30 = vadd.f32 %v5681_v47, %v3924_v18  ;;  %v5684_v20 = vadd.f32 %v5683_v16, %v5682_v59 }
 0x3c0   : > { %v4129_v26 = vadd.f32 %v5706_v39, %v7613_v6 }
 0x3c1   : > { %v7739_v50 = vadd.f32 %v5684_v20, %v3927_v36 }
 0x3c2   : > { %v5707_v7 = vpop.f32.mrb[196].mxu1 }
 0x3c3   : > { %v5708_v42 = vpop.f32.mrb[197].mxu1  ;;  %v5813_v52 = vpop.f32.mrb[224].mxu0 }
 0x3c4   : > { %v5709_v62 = vadd.f32 %v5708_v42, %v5707_v7  ;;  %v5710_v10 = vpop.f32.mrb[198].mxu1  ;;  %v5814_v55 = vpop.f32.mrb[225].mxu0 }
 0x3c5   : > { %v5815_v58 = vadd.f32 %v5814_v55, %v5813_v52  ;;  %v5711_v9 = vpop.f32.mrb[199].mxu1  ;;  %v5816_v54 = vpop.f32.mrb[226].mxu0 }
 0x3c6   : > { %v4134_v46 = vadd.f32 %v5709_v62, %v7618_v34  ;;  %v5712_v22 = vadd.f32 %v5711_v9, %v5710_v10  ;;  %v5817_v33 = vpop.f32.mrb[227].mxu0 }
 0x3c7   : > { %v5818_v56 = vadd.f32 %v5817_v33, %v5816_v54  ;;  %v7742_v37 = vadd.f32 %v5815_v58, %v4126_v44 }
 0x3c8   : > { %v4137_v6 = vadd.f32 %v5712_v22, %v7623_v23 }
 0x3c9   : > { %v7745_v63 = vadd.f32 %v5818_v56, %v4129_v26 }
 0x3ca   : > { %v5713_v14 = vpop.f32.mrb[200].mxu1 }
 0x3cb   : > { %v5714_v32 = vpop.f32.mrb[201].mxu1  ;;  %v5819_v25 = vpop.f32.mrb[228].mxu0 }
 0x3cc   : > { %v5715_v57 = vadd.f32 %v5714_v32, %v5713_v14  ;;  %v5716_v11 = vpop.f32.mrb[202].mxu1  ;;  %v5820_v17 = vpop.f32.mrb[229].mxu0 }
 0x3cd   : > { %v5821_v0 = vadd.f32 %v5820_v17, %v5819_v25  ;;  %v5717_v49 = vpop.f32.mrb[203].mxu1  ;;  %v5822_v18 = vpop.f32.mrb[230].mxu0 }
 0x3ce   : > { %v4142_v34 = vadd.f32 %v5715_v57, %v7628_v4  ;;  %v5718_v47 = vadd.f32 %v5717_v49, %v5716_v11  ;;  %v5823_v59 = vpop.f32.mrb[231].mxu0 }
 0x3cf   : > { %v5824_v35 = vadd.f32 %v5823_v59, %v5822_v18  ;;  %v7748_v44 = vadd.f32 %v5821_v0, %v4134_v46 }
 0x3d0   : > { %v4145_v23 = vadd.f32 %v5718_v47, %v7638_v43 }
 0x3d1   : > { %v7751_v39 = vadd.f32 %v5824_v35, %v4137_v6 }
 0x3d2   : > { %v5719_v16 = vpop.f32.mrb[204].mxu1 }
 0x3d3   : > { %v5720_v36 = vpop.f32.mrb[205].mxu1  ;;  %v5825_v20 = vpop.f32.mrb[232].mxu0 }
 0x3d4   : > { %v5721_v26 = vadd.f32 %v5720_v36, %v5719_v16  ;;  %v5722_v7 = vpop.f32.mrb[206].mxu1  ;;  %v5826_v42 = vpop.f32.mrb[233].mxu0 }
 0x3d5   : > { %v5827_v52 = vadd.f32 %v5826_v42, %v5825_v20  ;;  %v5723_v62 = vpop.f32.mrb[207].mxu1  ;;  %v5828_v10 = vpop.f32.mrb[234].mxu0 }
 0x3d6   : > { %v4150_v4 = vadd.f32 %v5721_v26, %v7643_v53  ;;  %v5724_v55 = vadd.f32 %v5723_v62, %v5722_v7  ;;  %v5829_v58 = vpop.f32.mrb[235].mxu0 }
 0x3d7   : > { %v5830_v9 = vadd.f32 %v5829_v58, %v5828_v10  ;;  %v7754_v54 = vadd.f32 %v5827_v52, %v4142_v34 }
 0x3d8   : > { %v4153_v43 = vadd.f32 %v5724_v55, %v7648_v31 }
 0x3d9   : > { %v7757_v46 = vadd.f32 %v5830_v9, %v4145_v23 }
 0x3da   : > { %v5725_v22 = vpop.f32.mrb[208].mxu1 }
 0x3db   : > { %v5726_v33 = vpop.f32.mrb[209].mxu1  ;;  %v5831_v56 = vpop.f32.mrb[236].mxu0 }
 0x3dc   : > { %v5727_v6 = vadd.f32 %v5726_v33, %v5725_v22  ;;  %v5728_v14 = vpop.f32.mrb[210].mxu1  ;;  %v5832_v32 = vpop.f32.mrb[237].mxu0 }
 0x3dd   : > { %v5833_v25 = vadd.f32 %v5832_v32, %v5831_v56  ;;  %v5729_v57 = vpop.f32.mrb[211].mxu1  ;;  %v5834_v11 = vpop.f32.mrb[238].mxu0 }
 0x3de   : > { %v4158_v53 = vadd.f32 %v5727_v6, %v7653_v60  ;;  %v5730_v17 = vadd.f32 %v5729_v57, %v5728_v14  ;;  %v5835_v0 = vpop.f32.mrb[239].mxu0 }
 0x3df   : > { %v5836_v49 = vadd.f32 %v5835_v0, %v5834_v11  ;;  %v7760_v18 = vadd.f32 %v5833_v25, %v4150_v4 }
 0x3e0   : > { %v4161_v31 = vadd.f32 %v5730_v17, %v7658_v15 }
 0x3e1   : > { %v7763_v34 = vadd.f32 %v5836_v49, %v4153_v43 }
 0x3e2   : > { %v5731_v47 = vpop.f32.mrb[212].mxu1 }
 0x3e3   : > { %v5732_v59 = vpop.f32.mrb[213].mxu1  ;;  %v5837_v35 = vpop.f32.mrb[240].mxu0 }
 0x3e4   : > { %v5733_v23 = vadd.f32 %v5732_v59, %v5731_v47  ;;  %v5734_v16 = vpop.f32.mrb[214].mxu1  ;;  %v5838_v36 = vpop.f32.mrb[241].mxu0 }
 0x3e5   : > { %v5839_v20 = vadd.f32 %v5838_v36, %v5837_v35  ;;  %v5735_v26 = vpop.f32.mrb[215].mxu1  ;;  %v5840_v7 = vpop.f32.mrb[242].mxu0 }
 0x3e6   : > { %v4166_v60 = vadd.f32 %v5733_v23, %v7662_v41  ;;  %v5736_v42 = vadd.f32 %v5735_v26, %v5734_v16  ;;  %v5841_v52 = vpop.f32.mrb[243].mxu0 }
 0x3e7   : > { %v5842_v62 = vadd.f32 %v5841_v52, %v5840_v7  ;;  %v7766_v10 = vadd.f32 %v5839_v20, %v4158_v53 }
 0x3e8   : > { %v4169_v15 = vadd.f32 %v5736_v42, %v7666_v27 }
 0x3e9   : > { %v7769_v4 = vadd.f32 %v5842_v62, %v4161_v31 }
 0x3ea   : > { %v5737_v55 = vpop.f32.mrb[216].mxu1 }
 0x3eb   : > { %v5738_v58 = vpop.f32.mrb[217].mxu1  ;;  %v5843_v9 = vpop.f32.mrb[244].mxu0 }
 0x3ec   : > { %v5739_v43 = vadd.f32 %v5738_v58, %v5737_v55  ;;  %v5740_v22 = vpop.f32.mrb[218].mxu1  ;;  %v5844_v33 = vpop.f32.mrb[245].mxu0 }
 0x3ed   : > { %v5845_v56 = vadd.f32 %v5844_v33, %v5843_v9  ;;  %v5741_v6 = vpop.f32.mrb[219].mxu1  ;;  %v5846_v14 = vpop.f32.mrb[246].mxu0 }
 0x3ee   : > { %v4174_v41 = vadd.f32 %v5739_v43, %v7670_v21  ;;  %v5742_v32 = vadd.f32 %v5741_v6, %v5740_v22  ;;  %v5847_v25 = vpop.f32.mrb[247].mxu0 }
 0x3ef   : > { %v5848_v57 = vadd.f32 %v5847_v25, %v5846_v14  ;;  %v7772_v11 = vadd.f32 %v5845_v56, %v4166_v60 }
 0x3f0   : > { %v4177_v27 = vadd.f32 %v5742_v32, %v7674_v48 }
 0x3f1   : > { %v7775_v53 = vadd.f32 %v5848_v57, %v4169_v15 }
 0x3f2   : > { %v5743_v17 = vpop.f32.mrb[220].mxu1 }
 0x3f3   : > { %v5744_v0 = vpop.f32.mrb[221].mxu1  ;;  %v5849_v49 = vpop.f32.mrb[248].mxu0 }
 0x3f4   : > { %v5745_v31 = vadd.f32 %v5744_v0, %v5743_v17  ;;  %v5746_v47 = vpop.f32.mrb[222].mxu1  ;;  %v5850_v59 = vpop.f32.mrb[249].mxu0 }
 0x3f5   : > { %v5851_v35 = vadd.f32 %v5850_v59, %v5849_v49  ;;  %v5747_v23 = vpop.f32.mrb[223].mxu1  ;;  %v5852_v16 = vpop.f32.mrb[250].mxu0 }
 0x3f6   : > { %v4182_v21 = vadd.f32 %v5745_v31, %v7678_v3  ;;  %v5748_v36 = vadd.f32 %v5747_v23, %v5746_v47  ;;  %v5853_v20 = vpop.f32.mrb[251].mxu0 }
 0x3f7   : > { %v5854_v26 = vadd.f32 %v5853_v20, %v5852_v16  ;;  %v7778_v7 = vadd.f32 %v5851_v35, %v4174_v41 }
 0x3f8   : > { %v4185_v48 = vadd.f32 %v5748_v36, %v7682_v13 }
 0x3f9   : > { %v7781_v60 = vadd.f32 %v5854_v26, %v4177_v27 }
 0x3fa   : > { %v5749_v42 = vpop.f32.mrb[224].mxu1 }
 0x3fb   : > { %v5750_v52 = vpop.f32.mrb[225].mxu1  ;;  %v5855_v62 = vpop.f32.mrb[252].mxu0 }
 0x3fc   : > { %v5751_v15 = vadd.f32 %v5750_v52, %v5749_v42  ;;  %v5752_v55 = vpop.f32.mrb[226].mxu1  ;;  %v5856_v58 = vpop.f32.mrb[253].mxu0 }
 0x3fd   : > { %v5857_v9 = vadd.f32 %v5856_v58, %v5855_v62  ;;  %v5753_v43 = vpop.f32.mrb[227].mxu1  ;;  %v5858_v22 = vpop.f32.mrb[254].mxu0 }
 0x3fe   : > { %v4190_v3 = vadd.f32 %v5751_v15, %v7686_v29  ;;  %v5754_v33 = vadd.f32 %v5753_v43, %v5752_v55  ;;  %v5859_v56 = vpop.f32.mrb[255].mxu0 }
 0x3ff   : > { %v5860_v6 = vadd.f32 %v5859_v56, %v5858_v22  ;;  %v7784_v14 = vadd.f32 %v5857_v9, %v4182_v21 }
 0x400   : > { %v4193_v13 = vadd.f32 %v5754_v33, %v7690_v12 }
 0x401   : > { %v7787_v41 = vadd.f32 %v5860_v6, %v4185_v48 }
 0x402   : > { %v5755_v32 = vpop.f32.mrb[228].mxu1 }
 0x403   : > { %v5756_v25 = vpop.f32.mrb[229].mxu1  ;;  %v5861_v57 = vpop.f32.mrb[0].mxu0 }
 0x404   : > { %v5757_v27 = vadd.f32 %v5756_v25, %v5755_v32  ;;  %v5758_v17 = vpop.f32.mrb[230].mxu1  ;;  %v5862_v0 = vpop.f32.mrb[1].mxu0 }
 0x405   : > { %v5863_v49 = vadd.f32 %v5862_v0, %v5861_v57  ;;  %v5759_v31 = vpop.f32.mrb[231].mxu1  ;;  %v5864_v47 = vpop.f32.mrb[2].mxu0 }
 0x406   : > { %v4198_v29 = vadd.f32 %v5757_v27, %v7694_v8  ;;  %v5760_v59 = vadd.f32 %v5759_v31, %v5758_v17  ;;  %v5865_v35 = vpop.f32.mrb[3].mxu0 }
 0x407   : > { %v5866_v23 = vadd.f32 %v5865_v35, %v5864_v47  ;;  %v7790_v16 = vadd.f32 %v5863_v49, %v4190_v3 }
 0x408   : > { %v4201_v12 = vadd.f32 %v5760_v59, %v7698_v24 }
 0x409   : > { %v7793_v21 = vadd.f32 %v5866_v23, %v4193_v13 }
 0x40a   : > { %v5761_v36 = vpop.f32.mrb[232].mxu1 }
 0x40b   : > { %v5762_v20 = vpop.f32.mrb[233].mxu1  ;;  %v5867_v26 = vpop.f32.mrb[4].mxu0 }
 0x40c   : > { %v5763_v48 = vadd.f32 %v5762_v20, %v5761_v36  ;;  %v5764_v42 = vpop.f32.mrb[234].mxu1  ;;  %v5868_v52 = vpop.f32.mrb[5].mxu0 }
 0x40d   : > { %v5869_v62 = vadd.f32 %v5868_v52, %v5867_v26  ;;  %v5765_v15 = vpop.f32.mrb[235].mxu1  ;;  %v5870_v55 = vpop.f32.mrb[6].mxu0 }
 0x40e   : > { %v4206_v8 = vadd.f32 %v5763_v48, %v7702_v61  ;;  %v5766_v58 = vadd.f32 %v5765_v15, %v5764_v42  ;;  %v5871_v9 = vpop.f32.mrb[7].mxu0 }
 0x40f   : > { %v5872_v43 = vadd.f32 %v5871_v9, %v5870_v55  ;;  %v7796_v22 = vadd.f32 %v5869_v62, %v4198_v29 }
 0x410   : > { %v4209_v24 = vadd.f32 %v5766_v58, %v7706_v51 }
 0x411   : > { %v7799_v3 = vadd.f32 %v5872_v43, %v4201_v12 }
 0x412   : > { %v5767_v33 = vpop.f32.mrb[236].mxu1 }
 0x413   : > { %v5768_v56 = vpop.f32.mrb[237].mxu1  ;;  %v5873_v6 = vpop.f32.mrb[8].mxu0 }
 0x414   : > { %v5769_v13 = vadd.f32 %v5768_v56, %v5767_v33  ;;  %v5770_v32 = vpop.f32.mrb[238].mxu1  ;;  %v5874_v25 = vpop.f32.mrb[9].mxu0 }
 0x415   : > { %v5875_v57 = vadd.f32 %v5874_v25, %v5873_v6  ;;  %v5771_v27 = vpop.f32.mrb[239].mxu1  ;;  %v5876_v17 = vpop.f32.mrb[10].mxu0 }
 0x416   : > { %v4214_v61 = vadd.f32 %v5769_v13, %v7710_v40  ;;  %v5772_v0 = vadd.f32 %v5771_v27, %v5770_v32  ;;  %v5877_v49 = vpop.f32.mrb[11].mxu0 }
 0x417   : > { %v5878_v31 = vadd.f32 %v5877_v49, %v5876_v17  ;;  %v7802_v47 = vadd.f32 %v5875_v57, %v4206_v8 }
 0x418   : > { %v4217_v51 = vadd.f32 %v5772_v0, %v7713_v19 }
 0x419   : > { %v7805_v29 = vadd.f32 %v5878_v31, %v4209_v24 }
 0x41a   : > { %v5773_v59 = vpop.f32.mrb[240].mxu1 }
 0x41b   : > { %v5774_v35 = vpop.f32.mrb[241].mxu1  ;;  %v5879_v23 = vpop.f32.mrb[12].mxu0 }
 0x41c   : > { %v5775_v12 = vadd.f32 %v5774_v35, %v5773_v59  ;;  %v5776_v36 = vpop.f32.mrb[242].mxu1  ;;  %v5880_v20 = vpop.f32.mrb[13].mxu0 }
 0x41d   : > { %v5881_v26 = vadd.f32 %v5880_v20, %v5879_v23  ;;  %v5777_v48 = vpop.f32.mrb[243].mxu1  ;;  %v5882_v42 = vpop.f32.mrb[14].mxu0 }
 0x41e   : > { %v4222_v40 = vadd.f32 %v5775_v12, %v7717_v45  ;;  %v5778_v52 = vadd.f32 %v5777_v48, %v5776_v36  ;;  %v5883_v62 = vpop.f32.mrb[15].mxu0 }
 0x41f   : > { %v5884_v15 = vadd.f32 %v5883_v62, %v5882_v42  ;;  %v7808_v55 = vadd.f32 %v5881_v26, %v4214_v61 }
 0x420   : > { %v4225_v19 = vadd.f32 %v5778_v52, %v7719_v5 }
 0x421   : > { %v7811_v8 = vadd.f32 %v5884_v15, %v4217_v51 }
 0x422   : > { %v5779_v58 = vpop.f32.mrb[244].mxu1 }
 0x423   : > { %v5780_v9 = vpop.f32.mrb[245].mxu1  ;;  %v5885_v43 = vpop.f32.mrb[16].mxu0 }
 0x424   : > { %v5781_v24 = vadd.f32 %v5780_v9, %v5779_v58  ;;  %v5782_v33 = vpop.f32.mrb[246].mxu1  ;;  %v5886_v56 = vpop.f32.mrb[17].mxu0 }
 0x425   : > { %v5887_v6 = vadd.f32 %v5886_v56, %v5885_v43  ;;  %v5783_v13 = vpop.f32.mrb[247].mxu1  ;;  %v5888_v32 = vpop.f32.mrb[18].mxu0 }
 0x426   : > { %v4230_v45 = vadd.f32 %v5781_v24, %v7723_v1  ;;  %v5784_v25 = vadd.f32 %v5783_v13, %v5782_v33  ;;  %v5889_v57 = vpop.f32.mrb[19].mxu0 }
 0x427   : > { %v5890_v27 = vadd.f32 %v5889_v57, %v5888_v32  ;;  %v7814_v17 = vadd.f32 %v5887_v6, %v4222_v40  ;;  %v4578_v57 = vld [vmem:[%s6624_s6 + $0x10] sm:$0xff] }
 0x428   : > { %v4233_v5 = vadd.f32 %v5784_v25, %v7725_v28 }
 0x429   : > { %v7817_v61 = vadd.f32 %v5890_v27, %v4225_v19 }
 0x42a   : > { %v5785_v0 = vpop.f32.mrb[248].mxu1 }
 0x42b   : > { %v5786_v49 = vpop.f32.mrb[249].mxu1  ;;  %v5891_v31 = vpop.f32.mrb[20].mxu0 }
 0x42c   : > { %v5787_v51 = vadd.f32 %v5786_v49, %v5785_v0  ;;  %v5788_v59 = vpop.f32.mrb[250].mxu1  ;;  %v5892_v35 = vpop.f32.mrb[21].mxu0  ;;  %v4576_v49 = vld [vmem:[%s6624_s6] sm:$0xff] }
 0x42d   : > { %v5893_v23 = vadd.f32 %v5892_v35, %v5891_v31  ;;  %v5789_v12 = vpop.f32.mrb[251].mxu1  ;;  %v5894_v36 = vpop.f32.mrb[22].mxu0 }
 0x42e   : > { %v4238_v1 = vadd.f32 %v5787_v51, %v7729_v2  ;;  %v5790_v20 = vadd.f32 %v5789_v12, %v5788_v59  ;;  %v5895_v26 = vpop.f32.mrb[23].mxu0  ;;  %v4579_v59 = vld [vmem:[%s6624_s6 + $0x18] sm:$0xff] }
 0x42f   : > { %v5896_v48 = vadd.f32 %v5895_v26, %v5894_v36  ;;  %v7820_v42 = vadd.f32 %v5893_v23, %v4230_v45 }
 0x430   : > { %v4241_v28 = vadd.f32 %v5790_v20, %v7731_v38 }
 0x431   : > { %v7823_v40 = vadd.f32 %v5896_v48, %v4233_v5 }
 0x432   : > { %v5791_v52 = vpop.f32.mrb[252].mxu1 }
 0x433   : > { %v5792_v62 = vpop.f32.mrb[253].mxu1  ;;  %v5897_v15 = vpop.f32.mrb[24].mxu0 }
 0x434   : > { %v5793_v19 = vadd.f32 %v5792_v62, %v5791_v52  ;;  %v5794_v58 = vpop.f32.mrb[254].mxu1  ;;  %v5898_v9 = vpop.f32.mrb[25].mxu0 }
 0x435   : > { %v5899_v43 = vadd.f32 %v5898_v9, %v5897_v15  ;;  %v5795_v24 = vpop.f32.mrb[255].mxu1  ;;  %v5900_v2 = vpop.f32.mrb[26].mxu0  ;;  %v4582_v9 = vld [vmem:[%s6624_s6 + $0x30] sm:$0xff] }
 0x436   : > { %v4246_v33 = vadd.f32 %v5793_v19, %v7736_v30  ;;  %v5796_v56 = vadd.f32 %v5795_v24, %v5794_v58  ;;  %v5901_v6 = vpop.f32.mrb[27].mxu0 }
 0x437   : > { %v5902_v13 = vadd.f32 %v5901_v6, %v5900_v2  ;;  %v7826_v38 = vadd.f32 %v5899_v43, %v4238_v1  ;;  %v4577_v1 = vld [vmem:[%s6624_s6 + $0x8] sm:$0xff]  ;;  %v4580_v2 = vld [vmem:[%s6624_s6 + $0x20] sm:$0xff]  ;;  %v4583_v6 = vld [vmem:[%s6624_s6 + $0x38] sm:$0xff] }
 0x438   : > { %v4249_v32 = vadd.f32 %v5796_v56, %v7739_v50 }
 0x439   : > { %v7829_v45 = vadd.f32 %v5902_v13, %v4241_v28 }
 0x43a   : > { %v5999_v25 = vpop.f32.mrb[0].mxu1 }
 0x43b   : > { %v4456_v27 = vadd.f32 %v5999_v25, %v7748_v44  ;;  %v5903_v5 = vpop.f32.mrb[28].mxu0  ;;  %v4447_v0 = vpop.f32.mrb[1].mxu1 }
 0x43c   : > { %v4448_v30 = vadd.f32 %v4447_v0, %v7742_v37  ;;  %v5904_v31 = vpop.f32.mrb[29].mxu0  ;;  %v6000_v51 = vpop.f32.mrb[2].mxu1 }
 0x43d   : > { %v4610_v35 = vadd.f32 %v4578_v57, %v4456_v27  ;;  %v5905_v23 = vadd.f32 %v5904_v31, %v5903_v5  ;;  %v4459_v50 = vadd.f32 %v6000_v51, %v7751_v39  ;;  %v5906_v12 = vpop.f32.mrb[30].mxu0  ;;  %v4450_v36 = vpop.f32.mrb[3].mxu1  ;;  %v4581_v57 = vld [vmem:[%s6624_s6 + $0x28] sm:$0xff] }
 0x43e   : > { %v4608_v20 = vadd.f32 %v4576_v49, %v4448_v30  ;;  %v4451_v44 = vadd.f32 %v4450_v36, %v7745_v63  ;;  %v5907_v26 = vpop.f32.mrb[31].mxu0 }
 0x43f   : > { %v4642_v48 = vmax.f32 %v4610_v35, 0.0  ;;  %v4611_v28 = vadd.f32 %v4579_v59, %v4459_v50  ;;  %v5908_v37 = vadd.f32 %v5907_v26, %v5906_v12  ;;  %v7839_v52 = vadd.f32 %v5905_v23, %v4246_v33  ;;  %v4586_v59 = vld [vmem:[%s6624_s6 + $0x50] sm:$0xff]  ;;  %v4584_v23 = vld [vmem:[%s6624_s6 + $0x40] sm:$0xff]  ;;  %v4587_v12 = vld [vmem:[%s6624_s6 + $0x58] sm:$0xff] }
 0x440   : > { %v4640_v62 = vmax.f32 %v4608_v20, 0.0  ;;  %v4609_v15 = vadd.f32 %v4577_v1, %v4451_v44  ;;  %v4585_v44 = vld [vmem:[%s6624_s6 + $0x48] sm:$0xff] }
 0x441   : > { %4675 = vst [vmem:[%s7843_s11 + $0x10] sm:$0xff] %v4642_v48  ;;  %v4643_v39 = vmax.f32 %v4611_v28, 0.0  ;;  %v7846_v63 = vadd.f32 %v5908_v37, %v4249_v32 }
 0x442   : > { %4673 = vst [vmem:[%s7843_s11] sm:$0xff] %v4640_v62  ;;  %v4641_v19 = vmax.f32 %v4609_v15, 0.0  ;;  %v6003_v58 = vpop.f32.mrb[4].mxu1 }
 0x443   : > { %4676 = vst [vmem:[%s7843_s11 + $0x18] sm:$0xff] %v4643_v39  ;;  %v4472_v43 = vadd.f32 %v6003_v58, %v7760_v18  ;;  %v4463_v24 = vpop.f32.mrb[5].mxu1 }
 0x444   : > { %4674 = vst [vmem:[%s7843_s11 + $0x8] sm:$0xff] %v4641_v19  ;;  %v4464_v33 = vadd.f32 %v4463_v24, %v7754_v54  ;;  %v6004_v56 = vpop.f32.mrb[6].mxu1  ;;  %v4590_v19 = vld [vmem:[%s6624_s6 + $0x70] sm:$0xff]  ;;  %v4591_v24 = vld [vmem:[%s6624_s6 + $0x78] sm:$0xff] }
 0x445   : > { %v4614_v13 = vadd.f32 %v4582_v9, %v4472_v43  ;;  %v4475_v32 = vadd.f32 %v6004_v56, %v7763_v34  ;;  %v4466_v25 = vpop.f32.mrb[7].mxu1  ;;  %v4588_v9 = vld [vmem:[%s6624_s6 + $0x60] sm:$0xff] }
 0x446   : > { %v4612_v27 = vadd.f32 %v4580_v2, %v4464_v33  ;;  %v4467_v18 = vadd.f32 %v4466_v25, %v7757_v46 }
 0x447   : > { %v4646_v5 = vmax.f32 %v4614_v13, 0.0  ;;  %v4615_v0 = vadd.f32 %v4583_v6, %v4475_v32  ;;  %v4589_v6 = vld [vmem:[%s6624_s6 + $0x68] sm:$0xff] }
 0x448   : > { %v4644_v49 = vmax.f32 %v4612_v27, 0.0  ;;  %v4613_v30 = vadd.f32 %v4581_v57, %v4467_v18 }
 0x449   : > { %4679 = vst [vmem:[%s7843_s11 + $0x30] sm:$0xff] %v4646_v5  ;;  %v4647_v54 = vmax.f32 %v4615_v0, 0.0  ;;  %v4594_v0 = vld [vmem:[%s6624_s6 + $0x90] sm:$0xff] }
 0x44a   : > { %4677 = vst [vmem:[%s7843_s11 + $0x20] sm:$0xff] %v4644_v49  ;;  %v4645_v31 = vmax.f32 %v4613_v30, 0.0  ;;  %v6007_v51 = vpop.f32.mrb[8].mxu1  ;;  %v4592_v30 = vld [vmem:[%s6624_s6 + $0x80] sm:$0xff] }
 0x44b   : > { %4680 = vst [vmem:[%s7843_s11 + $0x38] sm:$0xff] %v4647_v54  ;;  %v4488_v34 = vadd.f32 %v6007_v51, %v7772_v11  ;;  %v4479_v35 = vpop.f32.mrb[9].mxu1 }
 0x44c   : > { %4678 = vst [vmem:[%s7843_s11 + $0x28] sm:$0xff] %v4645_v31  ;;  %v4480_v46 = vadd.f32 %v4479_v35, %v7766_v10  ;;  %v6008_v50 = vpop.f32.mrb[10].mxu1  ;;  %v4595_v31 = vld [vmem:[%s6624_s6 + $0x98] sm:$0xff]  ;;  %v4593_v35 = vld [vmem:[%s6624_s6 + $0x88] sm:$0xff] }
 0x44d   : > { %v4618_v36 = vadd.f32 %v4586_v59, %v4488_v34  ;;  %v4491_v1 = vadd.f32 %v6008_v50, %v7775_v53  ;;  %v4482_v20 = vpop.f32.mrb[11].mxu1 }
 0x44e   : > { %v4616_v26 = vadd.f32 %v4584_v23, %v4480_v46  ;;  %v4483_v11 = vadd.f32 %v4482_v20, %v7769_v4 }
 0x44f   : > { %v4650_v48 = vmax.f32 %v4618_v36, 0.0  ;;  %v4619_v28 = vadd.f32 %v4587_v12, %v4491_v1 }
 0x450   : > { %v4648_v37 = vmax.f32 %v4616_v26, 0.0  ;;  %v4617_v62 = vadd.f32 %v4585_v44, %v4483_v11  ;;  %v4598_v44 = vld [vmem:[%s6624_s6 + $0xb0] sm:$0xff]  ;;  %v4596_v11 = vld [vmem:[%s6624_s6 + $0xa0] sm:$0xff] }
 0x451   : > { %4683 = vst [vmem:[%s7843_s11 + $0x50] sm:$0xff] %v4650_v48  ;;  %v4651_v10 = vmax.f32 %v4619_v28, 0.0  ;;  %v4599_v28 = vld [vmem:[%s6624_s6 + $0xb8] sm:$0xff] }
 0x452   : > { %4681 = vst [vmem:[%s7843_s11 + $0x40] sm:$0xff] %v4648_v37  ;;  %v4649_v15 = vmax.f32 %v4617_v62, 0.0  ;;  %v6011_v39 = vpop.f32.mrb[12].mxu1 }
 0x453   : > { %4684 = vst [vmem:[%s7843_s11 + $0x58] sm:$0xff] %v4651_v10  ;;  %v4504_v53 = vadd.f32 %v6011_v39, %v7784_v14  ;;  %v4495_v58 = vpop.f32.mrb[13].mxu1 }
 0x454   : > { %4682 = vst [vmem:[%s7843_s11 + $0x48] sm:$0xff] %v4649_v15  ;;  %v4496_v4 = vadd.f32 %v4495_v58, %v7778_v7  ;;  %v6012_v43 = vpop.f32.mrb[14].mxu1  ;;  %v4597_v15 = vld [vmem:[%s6624_s6 + $0xa8] sm:$0xff] }
 0x455   : > { %v4622_v2 = vadd.f32 %v4590_v19, %v4504_v53  ;;  %v4507_v33 = vadd.f32 %v6012_v43, %v7787_v41  ;;  %v4498_v56 = vpop.f32.mrb[15].mxu1 }
 0x456   : > { %v4620_v13 = vadd.f32 %v4588_v9, %v4496_v4  ;;  %v4499_v14 = vadd.f32 %v4498_v56, %v7781_v60 }
 0x457   : > { %v4654_v32 = vmax.f32 %v4622_v2, 0.0  ;;  %v4623_v25 = vadd.f32 %v4591_v24, %v4507_v33  ;;  %v4602_v24 = vld [vmem:[%s6624_s6 + $0xd0] sm:$0xff]  ;;  %v4600_v33 = vld [vmem:[%s6624_s6 + $0xc0] sm:$0xff] }
 0x458   : > { %v4652_v57 = vmax.f32 %v4620_v13, 0.0  ;;  %v4621_v27 = vadd.f32 %v4589_v6, %v4499_v14  ;;  %v4603_v6 = vld [vmem:[%s6624_s6 + $0xd8] sm:$0xff] }
 0x459   : > { %4687 = vst [vmem:[%s7843_s11 + $0x70] sm:$0xff] %v4654_v32  ;;  %v4655_v7 = vmax.f32 %v4623_v25, 0.0  ;;  %v4601_v25 = vld [vmem:[%s6624_s6 + $0xc8] sm:$0xff] }
 0x45a   : > { %4685 = vst [vmem:[%s7843_s11 + $0x60] sm:$0xff] %v4652_v57  ;;  %v4653_v18 = vmax.f32 %v4621_v27, 0.0  ;;  %v6015_v5 = vpop.f32.mrb[16].mxu1 }
 0x45b   : > { %4688 = vst [vmem:[%s7843_s11 + $0x78] sm:$0xff] %v4655_v7  ;;  %v4520_v41 = vadd.f32 %v6015_v5, %v7796_v22  ;;  %v4511_v49 = vpop.f32.mrb[17].mxu1 }
 0x45c   : > { %4686 = vst [vmem:[%s7843_s11 + $0x68] sm:$0xff] %v4653_v18  ;;  %v4512_v60 = vadd.f32 %v4511_v49, %v7790_v16  ;;  %v6016_v54 = vpop.f32.mrb[18].mxu1 }
 0x45d   : > { %v4626_v51 = vadd.f32 %v4594_v0, %v4520_v41  ;;  %v4523_v59 = vadd.f32 %v6016_v54, %v7799_v3  ;;  %v4514_v34 = vpop.f32.mrb[19].mxu1 }
 0x45e   : > { %v4624_v23 = vadd.f32 %v4592_v30, %v4512_v60  ;;  %v4515_v22 = vadd.f32 %v4514_v34, %v7793_v21  ;;  %v4604_v60 = vld [vmem:[%s6624_s6 + $0xe0] sm:$0xff] }
 0x45f   : > { %v4658_v46 = vmax.f32 %v4626_v51, 0.0  ;;  %v4627_v50 = vadd.f32 %v4595_v31, %v4523_v59  ;;  %v4607_v31 = vld [vmem:[%s6624_s6 + $0xf8] sm:$0xff] }
 0x460   : > { %v4656_v12 = vmax.f32 %v4624_v23, 0.0  ;;  %v4625_v36 = vadd.f32 %v4593_v35, %v4515_v22  ;;  %v4605_v35 = vld [vmem:[%s6624_s6 + $0xe8] sm:$0xff] }
 0x461   : > { %4691 = vst [vmem:[%s7843_s11 + $0x90] sm:$0xff] %v4658_v46  ;;  %v4659_v16 = vmax.f32 %v4627_v50, 0.0 }
 0x462   : > { %4689 = vst [vmem:[%s7843_s11 + $0x80] sm:$0xff] %v4656_v12  ;;  %v4657_v1 = vmax.f32 %v4625_v36, 0.0  ;;  %v6019_v20 = vpop.f32.mrb[20].mxu1 }
 0x463   : > { %4692 = vst [vmem:[%s7843_s11 + $0x98] sm:$0xff] %v4659_v16  ;;  %v4536_v3 = vadd.f32 %v6019_v20, %v7808_v55  ;;  %v4527_v26 = vpop.f32.mrb[21].mxu1 }
 0x464   : > { %4690 = vst [vmem:[%s7843_s11 + $0x88] sm:$0xff] %v4657_v1  ;;  %v4528_v21 = vadd.f32 %v4527_v26, %v7802_v47  ;;  %v6020_v48 = vpop.f32.mrb[22].mxu1 }
 0x465   : > { %v4630_v37 = vadd.f32 %v4598_v44, %v4536_v3  ;;  %v4539_v62 = vadd.f32 %v6020_v48, %v7811_v8  ;;  %v4530_v10 = vpop.f32.mrb[23].mxu1 }
 0x466   : > { %v4628_v39 = vadd.f32 %v4596_v11, %v4528_v21  ;;  %v4531_v55 = vadd.f32 %v4530_v10, %v7805_v29 }
 0x467   : > { %v4662_v19 = vmax.f32 %v4630_v37, 0.0  ;;  %v4631_v53 = vadd.f32 %v4599_v28, %v4539_v62 }
 0x468   : > { %v4660_v58 = vmax.f32 %v4628_v39, 0.0  ;;  %v4629_v9 = vadd.f32 %v4597_v15, %v4531_v55 }
 0x469   : > { %4695 = vst [vmem:[%s7843_s11 + $0xb0] sm:$0xff] %v4662_v19  ;;  %v4663_v47 = vmax.f32 %v4631_v53, 0.0 }
 0x46a   : > { %4693 = vst [vmem:[%s7843_s11 + $0xa0] sm:$0xff] %v4660_v58  ;;  %v4661_v4 = vmax.f32 %v4629_v9, 0.0  ;;  %v6023_v43 = vpop.f32.mrb[24].mxu1 }
 0x46b   : > { %4696 = vst [vmem:[%s7843_s11 + $0xb8] sm:$0xff] %v4663_v47  ;;  %v4552_v8 = vadd.f32 %v6023_v43, %v7820_v42  ;;  %v4543_v2 = vpop.f32.mrb[25].mxu1 }
 0x46c   : > { %4694 = vst [vmem:[%s7843_s11 + $0xa8] sm:$0xff] %v4661_v4  ;;  %v4544_v29 = vadd.f32 %v4543_v2, %v7814_v17  ;;  %v6024_v56 = vpop.f32.mrb[26].mxu1 }
 0x46d   : > { %v4634_v13 = vadd.f32 %v4602_v24, %v4552_v8  ;;  %v4555_v14 = vadd.f32 %v6024_v56, %v7823_v40  ;;  %v4546_v32 = vpop.f32.mrb[27].mxu1  ;;  %v4606_v40 = vld [vmem:[%s6624_s6 + $0xf0] sm:$0xff] }
 0x46e   : > { %v4632_v57 = vadd.f32 %v4600_v33, %v4544_v29  ;;  %v4547_v42 = vadd.f32 %v4546_v32, %v7817_v61 }
 0x46f   : > { %v4666_v27 = vmax.f32 %v4634_v13, 0.0  ;;  %v4635_v7 = vadd.f32 %v4603_v6, %v4555_v14 }
 0x470   : > { %v4664_v18 = vmax.f32 %v4632_v57, 0.0  ;;  %v4633_v5 = vadd.f32 %v4601_v25, %v4547_v42 }
 0x471   : > { %4699 = vst [vmem:[%s7843_s11 + $0xd0] sm:$0xff] %v4666_v27  ;;  %v4667_v17 = vmax.f32 %v4635_v7, 0.0 }
 0x472   : > { %4697 = vst [vmem:[%s7843_s11 + $0xc0] sm:$0xff] %v4664_v18  ;;  %v4665_v0 = vmax.f32 %v4633_v5, 0.0  ;;  %v6027_v41 = vpop.f32.mrb[28].mxu1 }
 0x473   : > { %4700 = vst [vmem:[%s7843_s11 + $0xd8] sm:$0xff] %v4667_v17  ;;  %v4568_v49 = vadd.f32 %v6027_v41, %v7839_v52  ;;  %v4559_v30 = vpop.f32.mrb[29].mxu1 }
 0x474   : > { %4698 = vst [vmem:[%s7843_s11 + $0xc8] sm:$0xff] %v4665_v0  ;;  %v4560_v61 = vadd.f32 %v4559_v30, %v7826_v38  ;;  %v6028_v54 = vpop.f32.mrb[30].mxu1 }
 0x475   : > { %v4638_v51 = vadd.f32 %v4606_v40, %v4568_v49  ;;  %v4571_v59 = vadd.f32 %v6028_v54, %v7846_v63  ;;  %v4562_v34 = vpop.f32.mrb[31].mxu1 }
 0x476   : > { %v4636_v23 = vadd.f32 %v4604_v60, %v4560_v61  ;;  %v4563_v52 = vadd.f32 %v4562_v34, %v7829_v45 }
 0x477   : > { %v4670_v22 = vmax.f32 %v4638_v51, 0.0  ;;  %v4639_v46 = vadd.f32 %v4607_v31, %v4571_v59 }
 0x478   : > { %v4668_v38 = vmax.f32 %v4636_v23, 0.0  ;;  %v4637_v50 = vadd.f32 %v4605_v35, %v4563_v52 }
 0x479   : > { %4703 = vst [vmem:[%s7843_s11 + $0xf0] sm:$0xff] %v4670_v22  ;;  %v4671_v12 = vmax.f32 %v4639_v46, 0.0 }
 0x47a   : > { %4701 = vst [vmem:[%s7843_s11 + $0xe0] sm:$0xff] %v4668_v38  ;;  %v4669_v45 = vmax.f32 %v4637_v50, 0.0 }
 0x47b   : > { %4704 = vst [vmem:[%s7843_s11 + $0xf8] sm:$0xff] %v4671_v12 }
 0x47c   : > { %4702 = vst [vmem:[%s7843_s11 + $0xe8] sm:$0xff] %v4669_v45 }
 0x47d   : > { %6346 = shalt.err (!%p6343_p2)
}
 0x47e   : > { %s6347_s6 = scalar_lea.hbm %s7937_s9, 4096  ;;  %s6351_s8 = scalar_lea.hbm %s7991_s5, 8192 }
 0x47f   : > { %p6348_p13 = scmp.ne.s32.totalorder %s7937_s9, %s6347_s6  ;;  %p6352_p4 = scmp.lt.u32.totalorder %s7937_s9, %s7991_s5 }
 0x480   : > { %p6353_p5 = scmp.lt.u32.totalorder %s6351_s8, %s6347_s6  ;;  %p6355_p11 = scmp.lt.u32.totalorder %s6347_s6, %s7937_s9 }
 0x481   : > { %p6349_p6 = pnand %p6348_p13, %p8009_p0 }
 0x482   : > { %p6354_p8 = por %p6353_p5, %p6352_p4 }
 0x483   : > { %p6350_p10 = pneg %p6349_p6 }
 0x484   : > { %p6356_p1 = por %p6355_p11, %p6354_p8 }
 0x486   : > { %p6357_p3 = pnand %p6356_p1, %p6350_p10 }
 0x488   : > { %6360 = shalt.err (!%p6357_p3)
}
 0x489   : > { %s6414_s28 = smov 128   ;;  %s6415_s15 = smov 8  }
 0x48a   : > { %6039 = dma.vmem_to_hbm [thread:$0]  (%p8009_p0), %s7939_s30, 4096, %s7937_s9, %s4706_s22, %s6414_s28, %s6414_s28, %s6415_s15  }
 0x48b PF: > { %s4734_s16 = sand.u32 1, %s6391_s18   ;;  %p8010_p7 = scmp.ne.s32.totalorder %s7996_s25, 0 }
 0x48c   : > { %p8011_p9 = scmp.ge.s32.totalorder %s6403_s21, 2  ;;  %s4735_s12 = scalar_lea.sflag [#allocation11], %s4734_s16 }
 0x48e   : > { %p6053_p12 = pnand %p8011_p9, %p8010_p7 }
 0x490   : > { %6386 = dma.done.wait (!%p6053_p12), %s4735_s12, 4096  }
 0x491   : > { %6388 = vsyncadd (!%p6053_p12), %s4735_s12, 4294963200  ;;  %p19_p2 = scmp.ge.s32.totalorder %s6556_s14, 4   ;;  %s8012_s18 = smov %s6395_s19 }
 0x492   : > { %s8013_s19 = smov %s6399_s20  ;;  %s8014_s20 = smov %s6572_s27 }
 0x493   : > { %s8015_s21 = smov %s6556_s14  ;;  %21 = sbr.rel (!%p19_p2) target bundleno = 6 (0x6), region = 116 }
 0x49a   :  { %4740 = vsyncpa [#allocation10], 1 }
 0x49b   :  { %4742 = vsyncpa [#allocation10 + $0x1], 1 }
 0x49c   :  { %4743 = vsyncpa [#allocation13], 1 }
 0x49d   :  { %4744 = vsyncpa [#allocation11], 1 }
 0x49e   :  { %4746 = vsyncpa [#allocation11 + $0x1], 1 }

</bundles_post_ra>
